<compile_context>
chip_gen: v5e
topology: v5e:2x2
jax: 0.10.0
libtpu: 0.0.40
codegen_flags: <defaults>
</compile_context>

<pallas_src>
import functools

import jax
import jax.numpy as jnp
from jax.experimental import pallas as pl
from jax.experimental.pallas import tpu as pltpu

# ---------------- model config (small, consistent with the module) ----------------
FLOW_SIZE = 6              # flow_size
PASS = 3                   # pass_through_size
TRANS = FLOW_SIZE - PASS   # transform_size
NBINS = 8                  # n_bins
HIDDEN = (32, 32)          # NN_layers
ZDIM = TRANS * (2 * NBINS + 1)
BN_EPS = 1e-5
F32 = jnp.float32

H1, H2 = HIDDEN
NV = TRANS * (NBINS + 1)   # 27 "V" logit rows
NW = TRANS * NBINS         # 24 "W" logit rows

# packed MLP small-parameter column offsets (gammas/betas; last-layer biases
# travel with the stage-2 weights)
_OFF_G0 = 0
_OFF_B0 = _OFF_G0 + PASS
_OFF_G1 = _OFF_B0 + PASS
_OFF_B1 = _OFF_G1 + H1
_OFF_G2 = _OFF_B1 + H1
_OFF_B2 = _OFF_G2 + H2
PMLP = _OFF_B2 + H2        # 134

# explicit stage-1 VMEM budget (v5e scoped default is only 16 MiB, v7x 32 MiB)
_STAGE1_VMEM_BYTES = 48 * 1024 * 1024


def _round_up(n, m):
    return ((n + m - 1) // m) * m


# ------------------------- stage 1: BN + MLP (global batch stats) -------------------
def _make_mlp_kernel(b_actual):
    inv_n = 1.0 / float(b_actual)

    def kernel(x_ref, p_ref, w1_ref, w2_ref, h2_ref):
        bp = h2_ref.shape[1]
        lane = jax.lax.broadcasted_iota(jnp.int32, (1, bp), 1)
        mask = (lane < b_actual).astype(F32)        # exclude pad lanes from BN stats

        def seg(off, n):                            # packed param column
            return p_ref[off:off + n, :]            # [n, 1]

        def bn(h, g, b):
            # scale/shift form: one column rsqrt, no full-width divide/sqrt
            m = jnp.sum(h * mask, axis=1, keepdims=True) * inv_n
            d = h - m
            v = jnp.sum(d * d * mask, axis=1, keepdims=True) * inv_n   # biased var
            scale = g * jax.lax.rsqrt(v + BN_EPS)
            return h * scale + (b - m * scale)

        xa = x_ref[:PASS, :]                        # [PASS, bp]
        h = bn(xa, seg(_OFF_G0, PASS), seg(_OFF_B0, PASS))

        # first Linear has contraction dim = 3: VPU broadcast-MACs, skip the MXU
        w1c = w1_ref[...]                           # [H1, PASS]
        acc = w1c[:, 0:1] * h[0:1, :]
        for c in range(1, PASS):
            acc = acc + w1c[:, c:c + 1] * h[c:c + 1, :]
        h = jnp.maximum(bn(acc, seg(_OFF_G1, H1), seg(_OFF_B1, H1)), 0.0)

        h = jnp.dot(w2_ref[...], h, preferred_element_type=F32)        # [H2, bp]
        h = jnp.maximum(bn(h, seg(_OFF_G2, H2), seg(_OFF_B2, H2)), 0.0)
        h2_ref[...] = h

    return kernel


def _mlp_h2(x_t, pvec, w1, w2, b_actual):
    bp = x_t.shape[1]
    # BatchNorm training-mode statistics require the whole batch in one block.
    # TODO(synk): for bp beyond ~64k rows, restructure stage 1 as a tiled
    # two-pass BN (grid over batch accumulating sum/sum-sq, then apply pass).
    assert bp * 768 <= _STAGE1_VMEM_BYTES, (
        f"stage-1 whole-batch block ({bp} lanes) exceeds the VMEM budget")
    args = (x_t, pvec, w1, w2)
    in_specs = [pl.BlockSpec(a.shape, lambda i: (0, 0)) for a in args]
    return pl.pallas_call(
        _make_mlp_kernel(b_actual),
        out_shape=jax.ShapeDtypeStruct((H2, bp), F32),
        grid=(1,),
        in_specs=in_specs,
        out_specs=pl.BlockSpec((H2, bp), lambda i: (0, 0)),
        compiler_params=pltpu.CompilerParams(vmem_limit_bytes=_STAGE1_VMEM_BYTES),
    )(*args)


# ------------------- stage 2: piecewise-quadratic transform (batch-tiled) -----------
def _pwquad_kernel(x_ref, h2_ref, w3v_ref, w3w_ref, b3v_ref, b3w_ref, out_ref):
    K = NBINS
    TB = out_ref.shape[1]

    # lower-triangular ones: tri @ A == cumsum(A, axis=0)   (hoisted constants)
    r = jax.lax.broadcasted_iota(jnp.int32, (K, K), 0)
    c = jax.lax.broadcasted_iota(jnp.int32, (K, K), 1)
    tri = (c <= r).astype(F32)
    kK = jax.lax.broadcasted_iota(jnp.int32, (K, TB), 0)
    kK1 = jax.lax.broadcasted_iota(jnp.int32, (K + 1, TB), 0)

    xin = x_ref[...]                                  # [FLOW_SIZE+1, TB]
    xa = xin[:PASS, :]
    xb_all = xin[PASS:FLOW_SIZE, :]
    jac_prod = xin[FLOW_SIZE:FLOW_SIZE + 1, :]
    xb_all = jnp.where(xb_all > 1.0 - 1e-6, 1.0 - 1e-6, xb_all)

    h2 = h2_ref[...]                                  # [H2, TB]

    yb = []
    # NOTE: TRANS == 3, kept Python-unrolled; spills (if any) sit under the
    # EUP/HBM slack on v5e/v6e — revisit only if bundle dumps show vld/vst binding.
    for j in range(TRANS):
        # final Linear for this transform dim, fused into the tile
        zv = jnp.dot(w3v_ref[j], h2, preferred_element_type=F32) + b3v_ref[j]   # [K+1, TB]
        zw = jnp.dot(w3w_ref[j], h2, preferred_element_type=F32) + b3w_ref[j]   # [K,   TB]
        Vr = jnp.exp(zv)
        Wr = jnp.exp(zw)

        # trapezoids from RAW W (the 1/Wtot factor cancels in shift / V-normalization)
        # -> the two cumsums are independent -> one fused tri-matmul
        trap_r = (Vr[:K, :] + Vr[1:, :]) * 0.5 * Wr
        cums = jnp.dot(tri, jnp.concatenate([Wr, trap_r], axis=1),
                       preferred_element_type=F32)    # [K, 2*TB]
        Wsum_r = cums[:, :TB]                         # raw cumsum(W)
        Vcum_r = cums[:, TB:]                         # raw cumsum(trapezoids)

        wn = Wsum_r[K - 1:K, :]                       # [1, TB]
        inv_wn = 1.0 / wn
        W = Wr * inv_wn
        Wsum = Wsum_r * inv_wn
        inv_vr = 1.0 / Vcum_r[K - 1:K, :]
        V = Vr * (wn * inv_vr)                        # normalized V

        xb = xb_all[j:j + 1, :]                       # [1, TB]
        # div_ind == #{k : Wsum[k] <= xB}; clamp for float-rounding safety
        cnt = jnp.sum((Wsum <= xb).astype(jnp.int32), axis=0, keepdims=True)
        cnt = jnp.minimum(cnt, K - 1)

        ohW = (kK == cnt).astype(F32)                 # index div_ind   (len K)
        ohWp = ((kK + 1) == cnt).astype(F32)          # index div_ind-1 (zero if 0)
        ohV = (kK1 == cnt).astype(F32)                # index div_ind   (len K+1)
        ohV1 = (kK1 == cnt + 1).astype(F32)           # index div_ind+1

        W_d = jnp.sum(W * ohW, axis=0, keepdims=True)
        Wsum_prev = jnp.sum(Wsum * ohWp, axis=0, keepdims=True)
        shift = jnp.sum(Vcum_r * ohWp, axis=0, keepdims=True) * inv_vr
        V_d = jnp.sum(V * ohV, axis=0, keepdims=True)
        V_d1 = jnp.sum(V * ohV1, axis=0, keepdims=True)

        alphas = (xb - Wsum_prev) / W_d
        yb.append((0.5 * alphas * alphas) * (V_d1 - V_d) * W_d
                  + alphas * V_d * W_d + shift)
        jac_prod = jac_prod * (V_d + alphas * (V_d1 - V_d))   # lerp(V_d, V_d1, alphas)

    # one coalesced, full-lane-width store of the whole [FLOW_SIZE+1, TB] tile
    out_ref[...] = jnp.concatenate([xa] + yb + [jac_prod], axis=0)


# ------------------------------- parameter plumbing ---------------------------------
def _prep_params(params):
    """torch-layout params -> kernel-layout arrays (packed columns, per-slice weights)."""
    g0, b0, w1, g1, b1, w2, g2, b2, w3, b3 = params
    w3r = w3.reshape(TRANS, 2 * NBINS + 1, H2)
    b3r = b3.reshape(TRANS, 2 * NBINS + 1)
    w3v_s = w3r[:, :NBINS + 1, :].astype(F32)                 # [TRANS, K+1, H2]
    w3w_s = w3r[:, NBINS + 1:, :].astype(F32)                 # [TRANS, K,   H2]
    b3v_s = b3r[:, :NBINS + 1, None].astype(F32)              # [TRANS, K+1, 1]
    b3w_s = b3r[:, NBINS + 1:, None].astype(F32)              # [TRANS, K,   1]
    pvec = jnp.concatenate([g0, b0, g1, b1, g2, b2]).astype(F32)[:, None]   # [PMLP, 1]
    return pvec, w1.astype(F32), w2.astype(F32), w3v_s, w3w_s, b3v_s, b3w_s


# ------------------------------------ wrapper ---------------------------------------
def pwquad_forward(x, params, *, tb=4096):
    B = x.shape[0]
    x = x.astype(F32)
    pvec, w1, w2, w3v_s, w3w_s, b3v_s, b3w_s = _prep_params(params)

    tb = min(tb, _round_up(B, 128))
    bp = _round_up(B, tb)
    pad = bp - B

    x_t = x.T                                       # [FLOW_SIZE+1, B], batch on lanes
    if pad:                                         # pad ONCE, before stage 1 (28 B/row)
        x_t = jnp.pad(x_t, ((0, 0), (0, pad)))

    # Stage 1: masked-global-stats BN + MLP, already bp lanes wide -> h2 [H2, bp]
    h2 = _mlp_h2(x_t, pvec, w1, w2, b_actual=B)

    # Stage 2: batch-tiled, lane-dense piecewise transform (+ fused final Linear)
    out_t = pl.pallas_call(
        _pwquad_kernel,
        out_shape=jax.ShapeDtypeStruct((FLOW_SIZE + 1, bp), F32),
        grid=(bp // tb,),
        in_specs=[
            pl.BlockSpec((FLOW_SIZE + 1, tb), lambda i: (0, i)),
            pl.BlockSpec((H2, tb), lambda i: (0, i)),
            pl.BlockSpec((TRANS, NBINS + 1, H2), lambda i: (0, 0, 0)),
            pl.BlockSpec((TRANS, NBINS, H2), lambda i: (0, 0, 0)),
            pl.BlockSpec((TRANS, NBINS + 1, 1), lambda i: (0, 0, 0)),
            pl.BlockSpec((TRANS, NBINS, 1), lambda i: (0, 0, 0)),
        ],
        out_specs=pl.BlockSpec((FLOW_SIZE + 1, tb), lambda i: (0, i)),
        compiler_params=pltpu.CompilerParams(dimension_semantics=("parallel",)),
    )(x_t, h2, w3v_s, w3w_s, b3v_s, b3w_s)

    return out_t[:, :B].T                            # back to [B, FLOW_SIZE+1]


# ----------------------- deterministic parameter init (torch layouts) ---------------
def init_params(key):
    ks = jax.random.split(key, 10)

    def lin_w(k, fo, fi):
        bound = 1.0 / (fi ** 0.5)
        return jax.random.uniform(k, (fo, fi), F32, -bound, bound)

    g0 = 1.0 + 0.1 * jax.random.normal(ks[0], (PASS,), F32)
    b0 = 0.1 * jax.random.normal(ks[1], (PASS,), F32)
    w1 = lin_w(ks[2], H1, PASS)
    g1 = 1.0 + 0.1 * jax.random.normal(ks[3], (H1,), F32)
    b1 = 0.1 * jax.random.normal(ks[4], (H1,), F32)
    w2 = lin_w(ks[5], H2, H1)
    g2 = 1.0 + 0.1 * jax.random.normal(ks[6], (H2,), F32)
    b2 = 0.1 * jax.random.normal(ks[7], (H2,), F32)
    w3 = lin_w(ks[8], ZDIM, H2)
    bound3 = 1.0 / (H2 ** 0.5)
    b3 = jax.random.uniform(ks[9], (ZDIM,), F32, -bound3, bound3)
    return (g0, b0, w1, g1, b1, w2, g2, b2, w3, b3)


# -------------------- pure-JAX reference (mirrors the torch code) -------------------
def reference(x, params):
    g0, b0, w1, g1, b1, w2, g2, b2, w3, b3 = params
    B = x.shape[0]
    K = NBINS
    xA = x[:, :PASS]
    xB = x[:, PASS:FLOW_SIZE]
    xB = jnp.where(xB > 1.0 - 1e-6, 1.0 - 1e-6, xB)
    jac = x[:, FLOW_SIZE:FLOW_SIZE + 1]

    def bn(h, g, b):
        m = h.mean(0, keepdims=True)
        v = ((h - m) ** 2).mean(0, keepdims=True)
        return (h - m) / jnp.sqrt(v + BN_EPS) * g + b

    hp = jax.lax.Precision.HIGHEST
    h = bn(xA, g0, b0)
    h = jax.nn.relu(bn(jnp.dot(h, w1.T, precision=hp), g1, b1))
    h = jax.nn.relu(bn(jnp.dot(h, w2.T, precision=hp), g2, b2))
    Z = (jnp.dot(h, w3.T, precision=hp) + b3).reshape(B, TRANS, 2 * K + 1)

    V = jnp.exp(Z[:, :, :K + 1])
    W = jnp.exp(Z[:, :, K + 1:])
    Wsum = jnp.cumsum(W, -1)
    Wn = Wsum[:, :, -1:]
    W, Wsum = W / Wn, Wsum / Wn
    Vnorms = jnp.cumsum((V[:, :, :-1] + V[:, :, 1:]) / 2 * W, -1)
    V = V / Vnorms[:, :, -1:]
    Wsum2 = jnp.concatenate([jnp.zeros((B, TRANS, 1), F32), Wsum], -1)
    finder = jnp.where(Wsum > xB[:, :, None], 0.0, 1.0)
    div_ind = jnp.argmax(
        jnp.concatenate([jnp.full((B, TRANS, 1), 1e-30, F32), finder * Wsum], -1), -1)[..., None]
    alphas = (xB - jnp.take_along_axis(Wsum2, div_ind, -1)[..., 0]) / \
        jnp.take_along_axis(W, div_ind, -1)[..., 0]
    VW = jnp.concatenate(
        [jnp.zeros((B, TRANS, 1), F32),
         jnp.cumsum((V[:, :, :-1] + V[:, :, 1:]) / 2 * W, -1)], -1)
    shift = jnp.take_along_axis(VW, div_ind, -1)[..., 0]
    Vd = jnp.take_along_axis(V, div_ind, -1)[..., 0]
    Vd1 = jnp.take_along_axis(V, div_ind + 1, -1)[..., 0]
    Wd = jnp.take_along_axis(W, div_ind, -1)[..., 0]
    yB = alphas ** 2 / 2 * (Vd1 - Vd) * Wd + alphas * Vd * Wd + shift
    jac_new = jac * jnp.prod(Vd + alphas * (Vd1 - Vd), -1, keepdims=True)
    return jnp.concatenate([xA, yB, jac_new], -1)


# ------------------------------------ main ------------------------------------------
if __name__ == "__main__":
    key = jax.random.PRNGKey(0)
    kx, kj, kp = jax.random.split(key, 3)
    B = 650                                                      # exercises tiling, padding, masked BN
    xflow = jax.random.uniform(kx, (B, FLOW_SIZE), F32)          # coords in [0, 1)
    jac0 = jax.random.uniform(kj, (B, 1), F32, minval=0.5, maxval=1.5)
    x = jnp.concatenate([xflow, jac0], axis=-1)                  # [B, FLOW_SIZE + 1]
    params = init_params(kp)

    fwd = jax.jit(functools.partial(pwquad_forward, tb=256))     # small tb: multi-step grid
    out = jax.block_until_ready(fwd(x, params))
    ref = reference(x, params)

    assert out.shape == (B, FLOW_SIZE + 1)
    assert bool(jnp.all(jnp.isfinite(out)))
    assert bool(jnp.allclose(out, ref, rtol=2e-4, atol=2e-4)), (out, ref)
    print("KERNEL_OK")
</pallas_src>

<mosaic_0001>
module attributes {stable_mosaic.version = 11 : i64} {
  func.func @kernel(%arg0: i32, %arg1: memref<7x768xf32, #tpu.memory_space<vmem>>, %arg2: memref<134x1xf32, #tpu.memory_space<vmem>>, %arg3: memref<32x3xf32, #tpu.memory_space<vmem>>, %arg4: memref<32x32xf32, #tpu.memory_space<vmem>>, %arg5: memref<32x768xf32, #tpu.memory_space<vmem>>) attributes {dimension_semantics = [#tpu.dimension_semantics<arbitrary>], iteration_bounds = array<i64: 1>, scalar_prefetch = 0 : i64, scratch_operands = 0 : i64, tpu.core_type = #tpu.core_type<tc>, window_params = [{pipeline_mode = #tpu.pipeline_mode<synchronous>, transform_indices = @transform_0, window_bounds = array<i64: 7, 768>}, {pipeline_mode = #tpu.pipeline_mode<synchronous>, transform_indices = @transform_1, window_bounds = array<i64: 134, 1>}, {pipeline_mode = #tpu.pipeline_mode<synchronous>, transform_indices = @transform_2, window_bounds = array<i64: 32, 3>}, {pipeline_mode = #tpu.pipeline_mode<synchronous>, transform_indices = @transform_3, window_bounds = array<i64: 32, 32>}, {pipeline_mode = #tpu.pipeline_mode<synchronous>, transform_indices = @transform_4, window_bounds = array<i64: 32, 768>}]} {
    %0 = tpu.iota {dimensions = array<i32: 1>} : vector<1x768xi32>
    %c650_i32 = arith.constant 650 : i32
    %1 = vector.broadcast %c650_i32 : i32 to vector<1x768xi32>
    %2 = arith.cmpi slt, %0, %1 : vector<1x768xi32>
    %3 = arith.extui %2 : vector<1x768xi1> to vector<1x768xi32>
    %4 = arith.sitofp %3 : vector<1x768xi32> to vector<1x768xf32>
    %c0 = arith.constant 0 : index
    %c0_0 = arith.constant 0 : index
    %5 = vector.load %arg1[%c0, %c0_0] : memref<7x768xf32, #tpu.memory_space<vmem>>, vector<3x768xf32>
    %c0_1 = arith.constant 0 : index
    %c0_2 = arith.constant 0 : index
    %6 = vector.load %arg2[%c0_1, %c0_2] : memref<134x1xf32, #tpu.memory_space<vmem>>, vector<3x1xf32>
    %c3 = arith.constant 3 : index
    %c0_3 = arith.constant 0 : index
    %7 = vector.load %arg2[%c3, %c0_3] : memref<134x1xf32, #tpu.memory_space<vmem>>, vector<3x1xf32>
    %8 = vector.broadcast %4 : vector<1x768xf32> to vector<3x768xf32>
    %9 = arith.mulf %5, %8 : vector<3x768xf32>
    %cst = arith.constant dense<0.000000e+00> : vector<3xf32>
    %10 = vector.multi_reduction <add>, %9, %cst [1] : vector<3x768xf32> to vector<3xf32>
    %11 = vector.shape_cast %10 : vector<3xf32> to vector<3x1xf32>
    %cst_4 = arith.constant 0.00153846154 : f32
    %12 = vector.broadcast %cst_4 : f32 to vector<3x1xf32>
    %13 = arith.mulf %11, %12 : vector<3x1xf32>
    %14 = vector.broadcast %13 : vector<3x1xf32> to vector<3x768xf32>
    %15 = arith.subf %5, %14 : vector<3x768xf32>
    %16 = arith.mulf %15, %15 : vector<3x768xf32>
    %17 = vector.broadcast %4 : vector<1x768xf32> to vector<3x768xf32>
    %18 = arith.mulf %16, %17 : vector<3x768xf32>
    %cst_5 = arith.constant dense<0.000000e+00> : vector<3xf32>
    %19 = vector.multi_reduction <add>, %18, %cst_5 [1] : vector<3x768xf32> to vector<3xf32>
    %20 = vector.shape_cast %19 : vector<3xf32> to vector<3x1xf32>
    %cst_6 = arith.constant 0.00153846154 : f32
    %21 = vector.broadcast %cst_6 : f32 to vector<3x1xf32>
    %22 = arith.mulf %20, %21 : vector<3x1xf32>
    %cst_7 = arith.constant 9.99999974E-6 : f32
    %23 = vector.broadcast %cst_7 : f32 to vector<3x1xf32>
    %24 = arith.addf %22, %23 : vector<3x1xf32>
    %25 = math.rsqrt %24 : vector<3x1xf32>
    %26 = arith.mulf %6, %25 : vector<3x1xf32>
    %27 = vector.broadcast %26 : vector<3x1xf32> to vector<3x768xf32>
    %28 = arith.mulf %5, %27 : vector<3x768xf32>
    %29 = arith.mulf %13, %26 : vector<3x1xf32>
    %30 = arith.subf %7, %29 : vector<3x1xf32>
    %31 = vector.broadcast %30 : vector<3x1xf32> to vector<3x768xf32>
    %32 = arith.addf %28, %31 : vector<3x768xf32>
    %c0_8 = arith.constant 0 : index
    %c0_9 = arith.constant 0 : index
    %33 = vector.load %arg3[%c0_8, %c0_9] : memref<32x3xf32, #tpu.memory_space<vmem>>, vector<32x3xf32>
    %34 = vector.extract_strided_slice %33 {offsets = [0, 0], sizes = [32, 1], strides = [1, 1]} : vector<32x3xf32> to vector<32x1xf32>
    %35 = vector.extract_strided_slice %32 {offsets = [0, 0], sizes = [1, 768], strides = [1, 1]} : vector<3x768xf32> to vector<1x768xf32>
    %36 = vector.broadcast %34 : vector<32x1xf32> to vector<32x768xf32>
    %37 = vector.broadcast %35 : vector<1x768xf32> to vector<32x768xf32>
    %38 = arith.mulf %36, %37 : vector<32x768xf32>
    %39 = vector.extract_strided_slice %33 {offsets = [0, 1], sizes = [32, 1], strides = [1, 1]} : vector<32x3xf32> to vector<32x1xf32>
    %40 = vector.extract_strided_slice %32 {offsets = [1, 0], sizes = [1, 768], strides = [1, 1]} : vector<3x768xf32> to vector<1x768xf32>
    %41 = vector.broadcast %39 : vector<32x1xf32> to vector<32x768xf32>
    %42 = vector.broadcast %40 : vector<1x768xf32> to vector<32x768xf32>
    %43 = arith.mulf %41, %42 : vector<32x768xf32>
    %44 = arith.addf %38, %43 : vector<32x768xf32>
    %45 = vector.extract_strided_slice %33 {offsets = [0, 2], sizes = [32, 1], strides = [1, 1]} : vector<32x3xf32> to vector<32x1xf32>
    %46 = vector.extract_strided_slice %32 {offsets = [2, 0], sizes = [1, 768], strides = [1, 1]} : vector<3x768xf32> to vector<1x768xf32>
    %47 = vector.broadcast %45 : vector<32x1xf32> to vector<32x768xf32>
    %48 = vector.broadcast %46 : vector<1x768xf32> to vector<32x768xf32>
    %49 = arith.mulf %47, %48 : vector<32x768xf32>
    %50 = arith.addf %44, %49 : vector<32x768xf32>
    %c6 = arith.constant 6 : index
    %c0_10 = arith.constant 0 : index
    %51 = vector.load %arg2[%c6, %c0_10] : memref<134x1xf32, #tpu.memory_space<vmem>>, vector<32x1xf32>
    %c38 = arith.constant 38 : index
    %c0_11 = arith.constant 0 : index
    %52 = vector.load %arg2[%c38, %c0_11] : memref<134x1xf32, #tpu.memory_space<vmem>>, vector<32x1xf32>
    %53 = vector.broadcast %4 : vector<1x768xf32> to vector<32x768xf32>
    %54 = arith.mulf %50, %53 : vector<32x768xf32>
    %cst_12 = arith.constant dense<0.000000e+00> : vector<32xf32>
    %55 = vector.multi_reduction <add>, %54, %cst_12 [1] : vector<32x768xf32> to vector<32xf32>
    %56 = vector.shape_cast %55 : vector<32xf32> to vector<32x1xf32>
    %cst_13 = arith.constant 0.00153846154 : f32
    %57 = vector.broadcast %cst_13 : f32 to vector<32x1xf32>
    %58 = arith.mulf %56, %57 : vector<32x1xf32>
    %59 = vector.broadcast %58 : vector<32x1xf32> to vector<32x768xf32>
    %60 = arith.subf %50, %59 : vector<32x768xf32>
    %61 = arith.mulf %60, %60 : vector<32x768xf32>
    %62 = vector.broadcast %4 : vector<1x768xf32> to vector<32x768xf32>
    %63 = arith.mulf %61, %62 : vector<32x768xf32>
    %cst_14 = arith.constant dense<0.000000e+00> : vector<32xf32>
    %64 = vector.multi_reduction <add>, %63, %cst_14 [1] : vector<32x768xf32> to vector<32xf32>
    %65 = vector.shape_cast %64 : vector<32xf32> to vector<32x1xf32>
    %cst_15 = arith.constant 0.00153846154 : f32
    %66 = vector.broadcast %cst_15 : f32 to vector<32x1xf32>
    %67 = arith.mulf %65, %66 : vector<32x1xf32>
    %cst_16 = arith.constant 9.99999974E-6 : f32
    %68 = vector.broadcast %cst_16 : f32 to vector<32x1xf32>
    %69 = arith.addf %67, %68 : vector<32x1xf32>
    %70 = math.rsqrt %69 : vector<32x1xf32>
    %71 = arith.mulf %51, %70 : vector<32x1xf32>
    %72 = vector.broadcast %71 : vector<32x1xf32> to vector<32x768xf32>
    %73 = arith.mulf %50, %72 : vector<32x768xf32>
    %74 = arith.mulf %58, %71 : vector<32x1xf32>
    %75 = arith.subf %52, %74 : vector<32x1xf32>
    %76 = vector.broadcast %75 : vector<32x1xf32> to vector<32x768xf32>
    %77 = arith.addf %73, %76 : vector<32x768xf32>
    %cst_17 = arith.constant 0.000000e+00 : f32
    %78 = vector.broadcast %cst_17 : f32 to vector<32x768xf32>
    %79 = arith.maximumf %77, %78 : vector<32x768xf32>
    %c0_18 = arith.constant 0 : index
    %c0_19 = arith.constant 0 : index
    %80 = vector.load %arg4[%c0_18, %c0_19] : memref<32x32xf32, #tpu.memory_space<vmem>>, vector<32x32xf32>
    %cst_20 = arith.constant dense<0.000000e+00> : vector<32x768xf32>
    %81 = tpu.matmul %80, %79, %cst_20 {dimension_numbers = #tpu.dot_dimension_numbers<[1], [0], [0], [1], [0, 0, 1, 1], [], []>} : vector<32x32xf32>, vector<32x768xf32>, vector<32x768xf32> -> vector<32x768xf32>
    %c70 = arith.constant 70 : index
    %c0_21 = arith.constant 0 : index
    %82 = vector.load %arg2[%c70, %c0_21] : memref<134x1xf32, #tpu.memory_space<vmem>>, vector<32x1xf32>
    %c102 = arith.constant 102 : index
    %c0_22 = arith.constant 0 : index
    %83 = vector.load %arg2[%c102, %c0_22] : memref<134x1xf32, #tpu.memory_space<vmem>>, vector<32x1xf32>
    %84 = vector.broadcast %4 : vector<1x768xf32> to vector<32x768xf32>
    %85 = arith.mulf %81, %84 : vector<32x768xf32>
    %cst_23 = arith.constant dense<0.000000e+00> : vector<32xf32>
    %86 = vector.multi_reduction <add>, %85, %cst_23 [1] : vector<32x768xf32> to vector<32xf32>
    %87 = vector.shape_cast %86 : vector<32xf32> to vector<32x1xf32>
    %cst_24 = arith.constant 0.00153846154 : f32
    %88 = vector.broadcast %cst_24 : f32 to vector<32x1xf32>
    %89 = arith.mulf %87, %88 : vector<32x1xf32>
    %90 = vector.broadcast %89 : vector<32x1xf32> to vector<32x768xf32>
    %91 = arith.subf %81, %90 : vector<32x768xf32>
    %92 = arith.mulf %91, %91 : vector<32x768xf32>
    %93 = vector.broadcast %4 : vector<1x768xf32> to vector<32x768xf32>
    %94 = arith.mulf %92, %93 : vector<32x768xf32>
    %cst_25 = arith.constant dense<0.000000e+00> : vector<32xf32>
    %95 = vector.multi_reduction <add>, %94, %cst_25 [1] : vector<32x768xf32> to vector<32xf32>
    %96 = vector.shape_cast %95 : vector<32xf32> to vector<32x1xf32>
    %cst_26 = arith.constant 0.00153846154 : f32
    %97 = vector.broadcast %cst_26 : f32 to vector<32x1xf32>
    %98 = arith.mulf %96, %97 : vector<32x1xf32>
    %cst_27 = arith.constant 9.99999974E-6 : f32
    %99 = vector.broadcast %cst_27 : f32 to vector<32x1xf32>
    %100 = arith.addf %98, %99 : vector<32x1xf32>
    %101 = math.rsqrt %100 : vector<32x1xf32>
    %102 = arith.mulf %82, %101 : vector<32x1xf32>
    %103 = vector.broadcast %102 : vector<32x1xf32> to vector<32x768xf32>
    %104 = arith.mulf %81, %103 : vector<32x768xf32>
    %105 = arith.mulf %89, %102 : vector<32x1xf32>
    %106 = arith.subf %83, %105 : vector<32x1xf32>
    %107 = vector.broadcast %106 : vector<32x1xf32> to vector<32x768xf32>
    %108 = arith.addf %104, %107 : vector<32x768xf32>
    %cst_28 = arith.constant 0.000000e+00 : f32
    %109 = vector.broadcast %cst_28 : f32 to vector<32x768xf32>
    %110 = arith.maximumf %108, %109 : vector<32x768xf32>
    %c0_29 = arith.constant 0 : index
    %c0_30 = arith.constant 0 : index
    %111 = vector.load %arg5[%c0_29, %c0_30] : memref<32x768xf32, #tpu.memory_space<vmem>>, vector<32x768xf32>
    tpu.vector_store %arg5[%c0_29, %c0_30], %110 {strides = array<i32>} : memref<32x768xf32, #tpu.memory_space<vmem>>, vector<32x768xf32>,
    return
  }
  func.func @transform_0(%arg0: i32) -> (i32, i32) {
    %c0_i32 = arith.constant 0 : i32
    %c0_i32_0 = arith.constant 0 : i32
    %c0_i32_1 = arith.constant 0 : i32
    return %c0_i32, %c0_i32_0 : i32, i32
  }
  func.func @transform_1(%arg0: i32) -> (i32, i32) {
    %c0_i32 = arith.constant 0 : i32
    %c0_i32_0 = arith.constant 0 : i32
    %c0_i32_1 = arith.constant 0 : i32
    return %c0_i32, %c0_i32_0 : i32, i32
  }
  func.func @transform_2(%arg0: i32) -> (i32, i32) {
    %c0_i32 = arith.constant 0 : i32
    %c0_i32_0 = arith.constant 0 : i32
    %c0_i32_1 = arith.constant 0 : i32
    return %c0_i32, %c0_i32_0 : i32, i32
  }
  func.func @transform_3(%arg0: i32) -> (i32, i32) {
    %c0_i32 = arith.constant 0 : i32
    %c0_i32_0 = arith.constant 0 : i32
    %c0_i32_1 = arith.constant 0 : i32
    return %c0_i32, %c0_i32_0 : i32, i32
  }
  func.func @transform_4(%arg0: i32) -> (i32, i32) {
    %c0_i32 = arith.constant 0 : i32
    %c0_i32_0 = arith.constant 0 : i32
    %c0_i32_1 = arith.constant 0 : i32
    return %c0_i32, %c0_i32_0 : i32, i32
  }
}

module attributes {stable_mosaic.version = 11 : i64} {
  func.func @_pwquad_kernel(%arg0: i32, %arg1: memref<7x256xf32, #tpu.memory_space<vmem>>, %arg2: memref<32x256xf32, #tpu.memory_space<vmem>>, %arg3: memref<3x9x32xf32, #tpu.memory_space<vmem>>, %arg4: memref<3x8x32xf32, #tpu.memory_space<vmem>>, %arg5: memref<3x9x1xf32, #tpu.memory_space<vmem>>, %arg6: memref<3x8x1xf32, #tpu.memory_space<vmem>>, %arg7: memref<7x256xf32, #tpu.memory_space<vmem>>) attributes {dimension_semantics = [#tpu.dimension_semantics<parallel>], iteration_bounds = array<i64: 3>, scalar_prefetch = 0 : i64, scratch_operands = 0 : i64, tpu.core_type = #tpu.core_type<tc>, window_params = [{transform_indices = @transform_0, window_bounds = array<i64: 7, 256>}, {transform_indices = @transform_1, window_bounds = array<i64: 32, 256>}, {pipeline_mode = #tpu.pipeline_mode<synchronous>, transform_indices = @transform_2, window_bounds = array<i64: 3, 9, 32>}, {pipeline_mode = #tpu.pipeline_mode<synchronous>, transform_indices = @transform_3, window_bounds = array<i64: 3, 8, 32>}, {pipeline_mode = #tpu.pipeline_mode<synchronous>, transform_indices = @transform_4, window_bounds = array<i64: 3, 9, 1>}, {pipeline_mode = #tpu.pipeline_mode<synchronous>, transform_indices = @transform_5, window_bounds = array<i64: 3, 8, 1>}, {transform_indices = @transform_6, window_bounds = array<i64: 7, 256>}]} {
    %0 = tpu.iota {dimensions = array<i32: 0>} : vector<8x8xi32>
    %1 = tpu.iota {dimensions = array<i32: 1>} : vector<8x8xi32>
    %2 = arith.cmpi sle, %1, %0 : vector<8x8xi32>
    %3 = arith.extui %2 : vector<8x8xi1> to vector<8x8xi32>
    %4 = arith.sitofp %3 : vector<8x8xi32> to vector<8x8xf32>
    %5 = tpu.iota {dimensions = array<i32: 0>} : vector<8x256xi32>
    %6 = tpu.iota {dimensions = array<i32: 0>} : vector<9x256xi32>
    %c0 = arith.constant 0 : index
    %c0_0 = arith.constant 0 : index
    %7 = vector.load %arg1[%c0, %c0_0] : memref<7x256xf32, #tpu.memory_space<vmem>>, vector<7x256xf32>
    %8 = vector.extract_strided_slice %7 {offsets = [0, 0], sizes = [3, 256], strides = [1, 1]} : vector<7x256xf32> to vector<3x256xf32>
    %9 = vector.extract_strided_slice %7 {offsets = [3, 0], sizes = [3, 256], strides = [1, 1]} : vector<7x256xf32> to vector<3x256xf32>
    %10 = vector.extract_strided_slice %7 {offsets = [6, 0], sizes = [1, 256], strides = [1, 1]} : vector<7x256xf32> to vector<1x256xf32>
    %cst = arith.constant 0.999998986 : f32
    %11 = vector.broadcast %cst : f32 to vector<3x256xf32>
    %12 = arith.cmpf ogt, %9, %11 : vector<3x256xf32>
    %cst_1 = arith.constant 0.999998986 : f32
    %13 = vector.broadcast %cst_1 : f32 to vector<3x256xf32>
    %14 = arith.select %12, %13, %9 : vector<3x256xi1>, vector<3x256xf32>
    %c0_2 = arith.constant 0 : index
    %c0_3 = arith.constant 0 : index
    %15 = vector.load %arg2[%c0_2, %c0_3] : memref<32x256xf32, #tpu.memory_space<vmem>>, vector<32x256xf32>
    %c0_4 = arith.constant 0 : index
    %c0_5 = arith.constant 0 : index
    %c0_6 = arith.constant 0 : index
    %16 = vector.load %arg3[%c0_4, %c0_5, %c0_6] : memref<3x9x32xf32, #tpu.memory_space<vmem>>, vector<1x9x32xf32>
    %17 = vector.shape_cast %16 : vector<1x9x32xf32> to vector<9x32xf32>
    %cst_7 = arith.constant dense<0.000000e+00> : vector<9x256xf32>
    %18 = tpu.matmul %17, %15, %cst_7 {dimension_numbers = #tpu.dot_dimension_numbers<[1], [0], [0], [1], [0, 0, 1, 1], [], []>} : vector<9x32xf32>, vector<32x256xf32>, vector<9x256xf32> -> vector<9x256xf32>
    %c0_8 = arith.constant 0 : index
    %c0_9 = arith.constant 0 : index
    %c0_10 = arith.constant 0 : index
    %19 = vector.load %arg5[%c0_8, %c0_9, %c0_10] : memref<3x9x1xf32, #tpu.memory_space<vmem>>, vector<1x9x1xf32>
    %20 = vector.shape_cast %19 : vector<1x9x1xf32> to vector<9x1xf32>
    %21 = vector.broadcast %20 : vector<9x1xf32> to vector<9x256xf32>
    %22 = arith.addf %18, %21 : vector<9x256xf32>
    %c0_11 = arith.constant 0 : index
    %c0_12 = arith.constant 0 : index
    %c0_13 = arith.constant 0 : index
    %23 = vector.load %arg4[%c0_11, %c0_12, %c0_13] : memref<3x8x32xf32, #tpu.memory_space<vmem>>, vector<1x8x32xf32>
    %24 = vector.shape_cast %23 : vector<1x8x32xf32> to vector<8x32xf32>
    %cst_14 = arith.constant dense<0.000000e+00> : vector<8x256xf32>
    %25 = tpu.matmul %24, %15, %cst_14 {dimension_numbers = #tpu.dot_dimension_numbers<[1], [0], [0], [1], [0, 0, 1, 1], [], []>} : vector<8x32xf32>, vector<32x256xf32>, vector<8x256xf32> -> vector<8x256xf32>
    %c0_15 = arith.constant 0 : index
    %c0_16 = arith.constant 0 : index
    %c0_17 = arith.constant 0 : index
    %26 = vector.load %arg6[%c0_15, %c0_16, %c0_17] : memref<3x8x1xf32, #tpu.memory_space<vmem>>, vector<1x8x1xf32>
    %27 = vector.shape_cast %26 : vector<1x8x1xf32> to vector<8x1xf32>
    %28 = vector.broadcast %27 : vector<8x1xf32> to vector<8x256xf32>
    %29 = arith.addf %25, %28 : vector<8x256xf32>
    %30 = math.exp %22 : vector<9x256xf32>
    %31 = math.exp %29 : vector<8x256xf32>
    %32 = vector.extract_strided_slice %30 {offsets = [0, 0], sizes = [8, 256], strides = [1, 1]} : vector<9x256xf32> to vector<8x256xf32>
    %33 = vector.extract_strided_slice %30 {offsets = [1, 0], sizes = [8, 256], strides = [1, 1]} : vector<9x256xf32> to vector<8x256xf32>
    %34 = arith.addf %32, %33 : vector<8x256xf32>
    %cst_18 = arith.constant 5.000000e-01 : f32
    %35 = vector.broadcast %cst_18 : f32 to vector<8x256xf32>
    %36 = arith.mulf %34, %35 : vector<8x256xf32>
    %37 = arith.mulf %36, %31 : vector<8x256xf32>
    %38 = tpu.concatenate %31, %37 in 1 : vector<8x256xf32>, vector<8x256xf32> -> vector<8x512xf32>
    %cst_19 = arith.constant dense<0.000000e+00> : vector<8x512xf32>
    %39 = tpu.matmul %4, %38, %cst_19 {dimension_numbers = #tpu.dot_dimension_numbers<[1], [0], [0], [1], [0, 0, 1, 1], [], []>} : vector<8x8xf32>, vector<8x512xf32>, vector<8x512xf32> -> vector<8x512xf32>
    %40 = vector.extract_strided_slice %39 {offsets = [0, 0], sizes = [8, 256], strides = [1, 1]} : vector<8x512xf32> to vector<8x256xf32>
    %41 = vector.extract_strided_slice %39 {offsets = [0, 256], sizes = [8, 256], strides = [1, 1]} : vector<8x512xf32> to vector<8x256xf32>
    %42 = vector.extract_strided_slice %40 {offsets = [7, 0], sizes = [1, 256], strides = [1, 1]} : vector<8x256xf32> to vector<1x256xf32>
    %cst_20 = arith.constant 1.000000e+00 : f32
    %43 = vector.broadcast %cst_20 : f32 to vector<1x256xf32>
    %44 = arith.divf %43, %42 : vector<1x256xf32>
    %45 = vector.broadcast %44 : vector<1x256xf32> to vector<8x256xf32>
    %46 = arith.mulf %31, %45 : vector<8x256xf32>
    %47 = vector.broadcast %44 : vector<1x256xf32> to vector<8x256xf32>
    %48 = arith.mulf %40, %47 : vector<8x256xf32>
    %49 = vector.extract_strided_slice %41 {offsets = [7, 0], sizes = [1, 256], strides = [1, 1]} : vector<8x256xf32> to vector<1x256xf32>
    %cst_21 = arith.constant 1.000000e+00 : f32
    %50 = vector.broadcast %cst_21 : f32 to vector<1x256xf32>
    %51 = arith.divf %50, %49 : vector<1x256xf32>
    %52 = arith.mulf %42, %51 : vector<1x256xf32>
    %53 = vector.broadcast %52 : vector<1x256xf32> to vector<9x256xf32>
    %54 = arith.mulf %30, %53 : vector<9x256xf32>
    %55 = vector.extract_strided_slice %14 {offsets = [0, 0], sizes = [1, 256], strides = [1, 1]} : vector<3x256xf32> to vector<1x256xf32>
    %56 = vector.broadcast %55 : vector<1x256xf32> to vector<8x256xf32>
    %57 = arith.cmpf ole, %48, %56 : vector<8x256xf32>
    %58 = arith.extui %57 : vector<8x256xi1> to vector<8x256xi32>
    %cst_22 = arith.constant dense<0> : vector<256xi32>
    %59 = vector.multi_reduction <add>, %58, %cst_22 [0] : vector<8x256xi32> to vector<256xi32>
    %60 = vector.shape_cast %59 : vector<256xi32> to vector<1x256xi32>
    %c7_i32 = arith.constant 7 : i32
    %61 = vector.broadcast %c7_i32 : i32 to vector<1x256xi32>
    %62 = arith.minsi %60, %61 : vector<1x256xi32>
    %63 = vector.broadcast %62 : vector<1x256xi32> to vector<8x256xi32>
    %64 = arith.cmpi eq, %5, %63 : vector<8x256xi32>
    %65 = arith.extui %64 : vector<8x256xi1> to vector<8x256xi32>
    %66 = arith.sitofp %65 : vector<8x256xi32> to vector<8x256xf32>
    %c1_i32 = arith.constant 1 : i32
    %67 = vector.broadcast %c1_i32 : i32 to vector<8x256xi32>
    %68 = arith.addi %5, %67 : vector<8x256xi32>
    %69 = vector.broadcast %62 : vector<1x256xi32> to vector<8x256xi32>
    %70 = arith.cmpi eq, %68, %69 : vector<8x256xi32>
    %71 = arith.extui %70 : vector<8x256xi1> to vector<8x256xi32>
    %72 = arith.sitofp %71 : vector<8x256xi32> to vector<8x256xf32>
    %73 = vector.broadcast %62 : vector<1x256xi32> to vector<9x256xi32>
    %74 = arith.cmpi eq, %6, %73 : vector<9x256xi32>
    %75 = arith.extui %74 : vector<9x256xi1> to vector<9x256xi32>
    %76 = arith.sitofp %75 : vector<9x256xi32> to vector<9x256xf32>
    %c1_i32_23 = arith.constant 1 : i32
    %77 = vector.broadcast %c1_i32_23 : i32 to vector<1x256xi32>
    %78 = arith.addi %62, %77 : vector<1x256xi32>
    %79 = vector.broadcast %78 : vector<1x256xi32> to vector<9x256xi32>
    %80 = arith.cmpi eq, %6, %79 : vector<9x256xi32>
    %81 = arith.extui %80 : vector<9x256xi1> to vector<9x256xi32>
    %82 = arith.sitofp %81 : vector<9x256xi32> to vector<9x256xf32>
    %83 = arith.mulf %46, %66 : vector<8x256xf32>
    %cst_24 = arith.constant dense<0.000000e+00> : vector<256xf32>
    %84 = vector.multi_reduction <add>, %83, %cst_24 [0] : vector<8x256xf32> to vector<256xf32>
    %85 = vector.shape_cast %84 : vector<256xf32> to vector<1x256xf32>
    %86 = arith.mulf %48, %72 : vector<8x256xf32>
    %cst_25 = arith.constant dense<0.000000e+00> : vector<256xf32>
    %87 = vector.multi_reduction <add>, %86, %cst_25 [0] : vector<8x256xf32> to vector<256xf32>
    %88 = vector.shape_cast %87 : vector<256xf32> to vector<1x256xf32>
    %89 = arith.mulf %41, %72 : vector<8x256xf32>
    %cst_26 = arith.constant dense<0.000000e+00> : vector<256xf32>
    %90 = vector.multi_reduction <add>, %89, %cst_26 [0] : vector<8x256xf32> to vector<256xf32>
    %91 = vector.shape_cast %90 : vector<256xf32> to vector<1x256xf32>
    %92 = arith.mulf %91, %51 : vector<1x256xf32>
    %93 = arith.mulf %54, %76 : vector<9x256xf32>
    %cst_27 = arith.constant dense<0.000000e+00> : vector<256xf32>
    %94 = vector.multi_reduction <add>, %93, %cst_27 [0] : vector<9x256xf32> to vector<256xf32>
    %95 = vector.shape_cast %94 : vector<256xf32> to vector<1x256xf32>
    %96 = arith.mulf %54, %82 : vector<9x256xf32>
    %cst_28 = arith.constant dense<0.000000e+00> : vector<256xf32>
    %97 = vector.multi_reduction <add>, %96, %cst_28 [0] : vector<9x256xf32> to vector<256xf32>
    %98 = vector.shape_cast %97 : vector<256xf32> to vector<1x256xf32>
    %99 = arith.subf %55, %88 : vector<1x256xf32>
    %100 = arith.divf %99, %85 : vector<1x256xf32>
    %cst_29 = arith.constant 5.000000e-01 : f32
    %101 = vector.broadcast %cst_29 : f32 to vector<1x256xf32>
    %102 = arith.mulf %101, %100 : vector<1x256xf32>
    %103 = arith.mulf %102, %100 : vector<1x256xf32>
    %104 = arith.subf %98, %95 : vector<1x256xf32>
    %105 = arith.mulf %103, %104 : vector<1x256xf32>
    %106 = arith.mulf %105, %85 : vector<1x256xf32>
    %107 = arith.mulf %100, %95 : vector<1x256xf32>
    %108 = arith.mulf %107, %85 : vector<1x256xf32>
    %109 = arith.addf %106, %108 : vector<1x256xf32>
    %110 = arith.addf %109, %92 : vector<1x256xf32>
    %111 = arith.subf %98, %95 : vector<1x256xf32>
    %112 = arith.mulf %100, %111 : vector<1x256xf32>
    %113 = arith.addf %95, %112 : vector<1x256xf32>
    %114 = arith.mulf %10, %113 : vector<1x256xf32>
    %c1 = arith.constant 1 : index
    %c0_30 = arith.constant 0 : index
    %c0_31 = arith.constant 0 : index
    %115 = vector.load %arg3[%c1, %c0_30, %c0_31] : memref<3x9x32xf32, #tpu.memory_space<vmem>>, vector<1x9x32xf32>
    %116 = vector.shape_cast %115 : vector<1x9x32xf32> to vector<9x32xf32>
    %cst_32 = arith.constant dense<0.000000e+00> : vector<9x256xf32>
    %117 = tpu.matmul %116, %15, %cst_32 {dimension_numbers = #tpu.dot_dimension_numbers<[1], [0], [0], [1], [0, 0, 1, 1], [], []>} : vector<9x32xf32>, vector<32x256xf32>, vector<9x256xf32> -> vector<9x256xf32>
    %c1_33 = arith.constant 1 : index
    %c0_34 = arith.constant 0 : index
    %c0_35 = arith.constant 0 : index
    %118 = vector.load %arg5[%c1_33, %c0_34, %c0_35] : memref<3x9x1xf32, #tpu.memory_space<vmem>>, vector<1x9x1xf32>
    %119 = vector.shape_cast %118 : vector<1x9x1xf32> to vector<9x1xf32>
    %120 = vector.broadcast %119 : vector<9x1xf32> to vector<9x256xf32>
    %121 = arith.addf %117, %120 : vector<9x256xf32>
    %c1_36 = arith.constant 1 : index
    %c0_37 = arith.constant 0 : index
    %c0_38 = arith.constant 0 : index
    %122 = vector.load %arg4[%c1_36, %c0_37, %c0_38] : memref<3x8x32xf32, #tpu.memory_space<vmem>>, vector<1x8x32xf32>
    %123 = vector.shape_cast %122 : vector<1x8x32xf32> to vector<8x32xf32>
    %cst_39 = arith.constant dense<0.000000e+00> : vector<8x256xf32>
    %124 = tpu.matmul %123, %15, %cst_39 {dimension_numbers = #tpu.dot_dimension_numbers<[1], [0], [0], [1], [0, 0, 1, 1], [], []>} : vector<8x32xf32>, vector<32x256xf32>, vector<8x256xf32> -> vector<8x256xf32>
    %c1_40 = arith.constant 1 : index
    %c0_41 = arith.constant 0 : index
    %c0_42 = arith.constant 0 : index
    %125 = vector.load %arg6[%c1_40, %c0_41, %c0_42] : memref<3x8x1xf32, #tpu.memory_space<vmem>>, vector<1x8x1xf32>
    %126 = vector.shape_cast %125 : vector<1x8x1xf32> to vector<8x1xf32>
    %127 = vector.broadcast %126 : vector<8x1xf32> to vector<8x256xf32>
    %128 = arith.addf %124, %127 : vector<8x256xf32>
    %129 = math.exp %121 : vector<9x256xf32>
    %130 = math.exp %128 : vector<8x256xf32>
    %131 = vector.extract_strided_slice %129 {offsets = [0, 0], sizes = [8, 256], strides = [1, 1]} : vector<9x256xf32> to vector<8x256xf32>
    %132 = vector.extract_strided_slice %129 {offsets = [1, 0], sizes = [8, 256], strides = [1, 1]} : vector<9x256xf32> to vector<8x256xf32>
    %133 = arith.addf %131, %132 : vector<8x256xf32>
    %cst_43 = arith.constant 5.000000e-01 : f32
    %134 = vector.broadcast %cst_43 : f32 to vector<8x256xf32>
    %135 = arith.mulf %133, %134 : vector<8x256xf32>
    %136 = arith.mulf %135, %130 : vector<8x256xf32>
    %137 = tpu.concatenate %130, %136 in 1 : vector<8x256xf32>, vector<8x256xf32> -> vector<8x512xf32>
    %cst_44 = arith.constant dense<0.000000e+00> : vector<8x512xf32>
    %138 = tpu.matmul %4, %137, %cst_44 {dimension_numbers = #tpu.dot_dimension_numbers<[1], [0], [0], [1], [0, 0, 1, 1], [], []>} : vector<8x8xf32>, vector<8x512xf32>, vector<8x512xf32> -> vector<8x512xf32>
    %139 = vector.extract_strided_slice %138 {offsets = [0, 0], sizes = [8, 256], strides = [1, 1]} : vector<8x512xf32> to vector<8x256xf32>
    %140 = vector.extract_strided_slice %138 {offsets = [0, 256], sizes = [8, 256], strides = [1, 1]} : vector<8x512xf32> to vector<8x256xf32>
    %141 = vector.extract_strided_slice %139 {offsets = [7, 0], sizes = [1, 256], strides = [1, 1]} : vector<8x256xf32> to vector<1x256xf32>
    %cst_45 = arith.constant 1.000000e+00 : f32
    %142 = vector.broadcast %cst_45 : f32 to vector<1x256xf32>
    %143 = arith.divf %142, %141 : vector<1x256xf32>
    %144 = vector.broadcast %143 : vector<1x256xf32> to vector<8x256xf32>
    %145 = arith.mulf %130, %144 : vector<8x256xf32>
    %146 = vector.broadcast %143 : vector<1x256xf32> to vector<8x256xf32>
    %147 = arith.mulf %139, %146 : vector<8x256xf32>
    %148 = vector.extract_strided_slice %140 {offsets = [7, 0], sizes = [1, 256], strides = [1, 1]} : vector<8x256xf32> to vector<1x256xf32>
    %cst_46 = arith.constant 1.000000e+00 : f32
    %149 = vector.broadcast %cst_46 : f32 to vector<1x256xf32>
    %150 = arith.divf %149, %148 : vector<1x256xf32>
    %151 = arith.mulf %141, %150 : vector<1x256xf32>
    %152 = vector.broadcast %151 : vector<1x256xf32> to vector<9x256xf32>
    %153 = arith.mulf %129, %152 : vector<9x256xf32>
    %154 = vector.extract_strided_slice %14 {offsets = [1, 0], sizes = [1, 256], strides = [1, 1]} : vector<3x256xf32> to vector<1x256xf32>
    %155 = vector.broadcast %154 : vector<1x256xf32> to vector<8x256xf32>
    %156 = arith.cmpf ole, %147, %155 : vector<8x256xf32>
    %157 = arith.extui %156 : vector<8x256xi1> to vector<8x256xi32>
    %cst_47 = arith.constant dense<0> : vector<256xi32>
    %158 = vector.multi_reduction <add>, %157, %cst_47 [0] : vector<8x256xi32> to vector<256xi32>
    %159 = vector.shape_cast %158 : vector<256xi32> to vector<1x256xi32>
    %c7_i32_48 = arith.constant 7 : i32
    %160 = vector.broadcast %c7_i32_48 : i32 to vector<1x256xi32>
    %161 = arith.minsi %159, %160 : vector<1x256xi32>
    %162 = vector.broadcast %161 : vector<1x256xi32> to vector<8x256xi32>
    %163 = arith.cmpi eq, %5, %162 : vector<8x256xi32>
    %164 = arith.extui %163 : vector<8x256xi1> to vector<8x256xi32>
    %165 = arith.sitofp %164 : vector<8x256xi32> to vector<8x256xf32>
    %c1_i32_49 = arith.constant 1 : i32
    %166 = vector.broadcast %c1_i32_49 : i32 to vector<8x256xi32>
    %167 = arith.addi %5, %166 : vector<8x256xi32>
    %168 = vector.broadcast %161 : vector<1x256xi32> to vector<8x256xi32>
    %169 = arith.cmpi eq, %167, %168 : vector<8x256xi32>
    %170 = arith.extui %169 : vector<8x256xi1> to vector<8x256xi32>
    %171 = arith.sitofp %170 : vector<8x256xi32> to vector<8x256xf32>
    %172 = vector.broadcast %161 : vector<1x256xi32> to vector<9x256xi32>
    %173 = arith.cmpi eq, %6, %172 : vector<9x256xi32>
    %174 = arith.extui %173 : vector<9x256xi1> to vector<9x256xi32>
    %175 = arith.sitofp %174 : vector<9x256xi32> to vector<9x256xf32>
    %c1_i32_50 = arith.constant 1 : i32
    %176 = vector.broadcast %c1_i32_50 : i32 to vector<1x256xi32>
    %177 = arith.addi %161, %176 : vector<1x256xi32>
    %178 = vector.broadcast %177 : vector<1x256xi32> to vector<9x256xi32>
    %179 = arith.cmpi eq, %6, %178 : vector<9x256xi32>
    %180 = arith.extui %179 : vector<9x256xi1> to vector<9x256xi32>
    %181 = arith.sitofp %180 : vector<9x256xi32> to vector<9x256xf32>
    %182 = arith.mulf %145, %165 : vector<8x256xf32>
    %cst_51 = arith.constant dense<0.000000e+00> : vector<256xf32>
    %183 = vector.multi_reduction <add>, %182, %cst_51 [0] : vector<8x256xf32> to vector<256xf32>
    %184 = vector.shape_cast %183 : vector<256xf32> to vector<1x256xf32>
    %185 = arith.mulf %147, %171 : vector<8x256xf32>
    %cst_52 = arith.constant dense<0.000000e+00> : vector<256xf32>
    %186 = vector.multi_reduction <add>, %185, %cst_52 [0] : vector<8x256xf32> to vector<256xf32>
    %187 = vector.shape_cast %186 : vector<256xf32> to vector<1x256xf32>
    %188 = arith.mulf %140, %171 : vector<8x256xf32>
    %cst_53 = arith.constant dense<0.000000e+00> : vector<256xf32>
    %189 = vector.multi_reduction <add>, %188, %cst_53 [0] : vector<8x256xf32> to vector<256xf32>
    %190 = vector.shape_cast %189 : vector<256xf32> to vector<1x256xf32>
    %191 = arith.mulf %190, %150 : vector<1x256xf32>
    %192 = arith.mulf %153, %175 : vector<9x256xf32>
    %cst_54 = arith.constant dense<0.000000e+00> : vector<256xf32>
    %193 = vector.multi_reduction <add>, %192, %cst_54 [0] : vector<9x256xf32> to vector<256xf32>
    %194 = vector.shape_cast %193 : vector<256xf32> to vector<1x256xf32>
    %195 = arith.mulf %153, %181 : vector<9x256xf32>
    %cst_55 = arith.constant dense<0.000000e+00> : vector<256xf32>
    %196 = vector.multi_reduction <add>, %195, %cst_55 [0] : vector<9x256xf32> to vector<256xf32>
    %197 = vector.shape_cast %196 : vector<256xf32> to vector<1x256xf32>
    %198 = arith.subf %154, %187 : vector<1x256xf32>
    %199 = arith.divf %198, %184 : vector<1x256xf32>
    %cst_56 = arith.constant 5.000000e-01 : f32
    %200 = vector.broadcast %cst_56 : f32 to vector<1x256xf32>
    %201 = arith.mulf %200, %199 : vector<1x256xf32>
    %202 = arith.mulf %201, %199 : vector<1x256xf32>
    %203 = arith.subf %197, %194 : vector<1x256xf32>
    %204 = arith.mulf %202, %203 : vector<1x256xf32>
    %205 = arith.mulf %204, %184 : vector<1x256xf32>
    %206 = arith.mulf %199, %194 : vector<1x256xf32>
    %207 = arith.mulf %206, %184 : vector<1x256xf32>
    %208 = arith.addf %205, %207 : vector<1x256xf32>
    %209 = arith.addf %208, %191 : vector<1x256xf32>
    %210 = arith.subf %197, %194 : vector<1x256xf32>
    %211 = arith.mulf %199, %210 : vector<1x256xf32>
    %212 = arith.addf %194, %211 : vector<1x256xf32>
    %213 = arith.mulf %114, %212 : vector<1x256xf32>
    %c2 = arith.constant 2 : index
    %c0_57 = arith.constant 0 : index
    %c0_58 = arith.constant 0 : index
    %214 = vector.load %arg3[%c2, %c0_57, %c0_58] : memref<3x9x32xf32, #tpu.memory_space<vmem>>, vector<1x9x32xf32>
    %215 = vector.shape_cast %214 : vector<1x9x32xf32> to vector<9x32xf32>
    %cst_59 = arith.constant dense<0.000000e+00> : vector<9x256xf32>
    %216 = tpu.matmul %215, %15, %cst_59 {dimension_numbers = #tpu.dot_dimension_numbers<[1], [0], [0], [1], [0, 0, 1, 1], [], []>} : vector<9x32xf32>, vector<32x256xf32>, vector<9x256xf32> -> vector<9x256xf32>
    %c2_60 = arith.constant 2 : index
    %c0_61 = arith.constant 0 : index
    %c0_62 = arith.constant 0 : index
    %217 = vector.load %arg5[%c2_60, %c0_61, %c0_62] : memref<3x9x1xf32, #tpu.memory_space<vmem>>, vector<1x9x1xf32>
    %218 = vector.shape_cast %217 : vector<1x9x1xf32> to vector<9x1xf32>
    %219 = vector.broadcast %218 : vector<9x1xf32> to vector<9x256xf32>
    %220 = arith.addf %216, %219 : vector<9x256xf32>
    %c2_63 = arith.constant 2 : index
    %c0_64 = arith.constant 0 : index
    %c0_65 = arith.constant 0 : index
    %221 = vector.load %arg4[%c2_63, %c0_64, %c0_65] : memref<3x8x32xf32, #tpu.memory_space<vmem>>, vector<1x8x32xf32>
    %222 = vector.shape_cast %221 : vector<1x8x32xf32> to vector<8x32xf32>
    %cst_66 = arith.constant dense<0.000000e+00> : vector<8x256xf32>
    %223 = tpu.matmul %222, %15, %cst_66 {dimension_numbers = #tpu.dot_dimension_numbers<[1], [0], [0], [1], [0, 0, 1, 1], [], []>} : vector<8x32xf32>, vector<32x256xf32>, vector<8x256xf32> -> vector<8x256xf32>
    %c2_67 = arith.constant 2 : index
    %c0_68 = arith.constant 0 : index
    %c0_69 = arith.constant 0 : index
    %224 = vector.load %arg6[%c2_67, %c0_68, %c0_69] : memref<3x8x1xf32, #tpu.memory_space<vmem>>, vector<1x8x1xf32>
    %225 = vector.shape_cast %224 : vector<1x8x1xf32> to vector<8x1xf32>
    %226 = vector.broadcast %225 : vector<8x1xf32> to vector<8x256xf32>
    %227 = arith.addf %223, %226 : vector<8x256xf32>
    %228 = math.exp %220 : vector<9x256xf32>
    %229 = math.exp %227 : vector<8x256xf32>
    %230 = vector.extract_strided_slice %228 {offsets = [0, 0], sizes = [8, 256], strides = [1, 1]} : vector<9x256xf32> to vector<8x256xf32>
    %231 = vector.extract_strided_slice %228 {offsets = [1, 0], sizes = [8, 256], strides = [1, 1]} : vector<9x256xf32> to vector<8x256xf32>
    %232 = arith.addf %230, %231 : vector<8x256xf32>
    %cst_70 = arith.constant 5.000000e-01 : f32
    %233 = vector.broadcast %cst_70 : f32 to vector<8x256xf32>
    %234 = arith.mulf %232, %233 : vector<8x256xf32>
    %235 = arith.mulf %234, %229 : vector<8x256xf32>
    %236 = tpu.concatenate %229, %235 in 1 : vector<8x256xf32>, vector<8x256xf32> -> vector<8x512xf32>
    %cst_71 = arith.constant dense<0.000000e+00> : vector<8x512xf32>
    %237 = tpu.matmul %4, %236, %cst_71 {dimension_numbers = #tpu.dot_dimension_numbers<[1], [0], [0], [1], [0, 0, 1, 1], [], []>} : vector<8x8xf32>, vector<8x512xf32>, vector<8x512xf32> -> vector<8x512xf32>
    %238 = vector.extract_strided_slice %237 {offsets = [0, 0], sizes = [8, 256], strides = [1, 1]} : vector<8x512xf32> to vector<8x256xf32>
    %239 = vector.extract_strided_slice %237 {offsets = [0, 256], sizes = [8, 256], strides = [1, 1]} : vector<8x512xf32> to vector<8x256xf32>
    %240 = vector.extract_strided_slice %238 {offsets = [7, 0], sizes = [1, 256], strides = [1, 1]} : vector<8x256xf32> to vector<1x256xf32>
    %cst_72 = arith.constant 1.000000e+00 : f32
    %241 = vector.broadcast %cst_72 : f32 to vector<1x256xf32>
    %242 = arith.divf %241, %240 : vector<1x256xf32>
    %243 = vector.broadcast %242 : vector<1x256xf32> to vector<8x256xf32>
    %244 = arith.mulf %229, %243 : vector<8x256xf32>
    %245 = vector.broadcast %242 : vector<1x256xf32> to vector<8x256xf32>
    %246 = arith.mulf %238, %245 : vector<8x256xf32>
    %247 = vector.extract_strided_slice %239 {offsets = [7, 0], sizes = [1, 256], strides = [1, 1]} : vector<8x256xf32> to vector<1x256xf32>
    %cst_73 = arith.constant 1.000000e+00 : f32
    %248 = vector.broadcast %cst_73 : f32 to vector<1x256xf32>
    %249 = arith.divf %248, %247 : vector<1x256xf32>
    %250 = arith.mulf %240, %249 : vector<1x256xf32>
    %251 = vector.broadcast %250 : vector<1x256xf32> to vector<9x256xf32>
    %252 = arith.mulf %228, %251 : vector<9x256xf32>
    %253 = vector.extract_strided_slice %14 {offsets = [2, 0], sizes = [1, 256], strides = [1, 1]} : vector<3x256xf32> to vector<1x256xf32>
    %254 = vector.broadcast %253 : vector<1x256xf32> to vector<8x256xf32>
    %255 = arith.cmpf ole, %246, %254 : vector<8x256xf32>
    %256 = arith.extui %255 : vector<8x256xi1> to vector<8x256xi32>
    %cst_74 = arith.constant dense<0> : vector<256xi32>
    %257 = vector.multi_reduction <add>, %256, %cst_74 [0] : vector<8x256xi32> to vector<256xi32>
    %258 = vector.shape_cast %257 : vector<256xi32> to vector<1x256xi32>
    %c7_i32_75 = arith.constant 7 : i32
    %259 = vector.broadcast %c7_i32_75 : i32 to vector<1x256xi32>
    %260 = arith.minsi %258, %259 : vector<1x256xi32>
    %261 = vector.broadcast %260 : vector<1x256xi32> to vector<8x256xi32>
    %262 = arith.cmpi eq, %5, %261 : vector<8x256xi32>
    %263 = arith.extui %262 : vector<8x256xi1> to vector<8x256xi32>
    %264 = arith.sitofp %263 : vector<8x256xi32> to vector<8x256xf32>
    %c1_i32_76 = arith.constant 1 : i32
    %265 = vector.broadcast %c1_i32_76 : i32 to vector<8x256xi32>
    %266 = arith.addi %5, %265 : vector<8x256xi32>
    %267 = vector.broadcast %260 : vector<1x256xi32> to vector<8x256xi32>
    %268 = arith.cmpi eq, %266, %267 : vector<8x256xi32>
    %269 = arith.extui %268 : vector<8x256xi1> to vector<8x256xi32>
    %270 = arith.sitofp %269 : vector<8x256xi32> to vector<8x256xf32>
    %271 = vector.broadcast %260 : vector<1x256xi32> to vector<9x256xi32>
    %272 = arith.cmpi eq, %6, %271 : vector<9x256xi32>
    %273 = arith.extui %272 : vector<9x256xi1> to vector<9x256xi32>
    %274 = arith.sitofp %273 : vector<9x256xi32> to vector<9x256xf32>
    %c1_i32_77 = arith.constant 1 : i32
    %275 = vector.broadcast %c1_i32_77 : i32 to vector<1x256xi32>
    %276 = arith.addi %260, %275 : vector<1x256xi32>
    %277 = vector.broadcast %276 : vector<1x256xi32> to vector<9x256xi32>
    %278 = arith.cmpi eq, %6, %277 : vector<9x256xi32>
    %279 = arith.extui %278 : vector<9x256xi1> to vector<9x256xi32>
    %280 = arith.sitofp %279 : vector<9x256xi32> to vector<9x256xf32>
    %281 = arith.mulf %244, %264 : vector<8x256xf32>
    %cst_78 = arith.constant dense<0.000000e+00> : vector<256xf32>
    %282 = vector.multi_reduction <add>, %281, %cst_78 [0] : vector<8x256xf32> to vector<256xf32>
    %283 = vector.shape_cast %282 : vector<256xf32> to vector<1x256xf32>
    %284 = arith.mulf %246, %270 : vector<8x256xf32>
    %cst_79 = arith.constant dense<0.000000e+00> : vector<256xf32>
    %285 = vector.multi_reduction <add>, %284, %cst_79 [0] : vector<8x256xf32> to vector<256xf32>
    %286 = vector.shape_cast %285 : vector<256xf32> to vector<1x256xf32>
    %287 = arith.mulf %239, %270 : vector<8x256xf32>
    %cst_80 = arith.constant dense<0.000000e+00> : vector<256xf32>
    %288 = vector.multi_reduction <add>, %287, %cst_80 [0] : vector<8x256xf32> to vector<256xf32>
    %289 = vector.shape_cast %288 : vector<256xf32> to vector<1x256xf32>
    %290 = arith.mulf %289, %249 : vector<1x256xf32>
    %291 = arith.mulf %252, %274 : vector<9x256xf32>
    %cst_81 = arith.constant dense<0.000000e+00> : vector<256xf32>
    %292 = vector.multi_reduction <add>, %291, %cst_81 [0] : vector<9x256xf32> to vector<256xf32>
    %293 = vector.shape_cast %292 : vector<256xf32> to vector<1x256xf32>
    %294 = arith.mulf %252, %280 : vector<9x256xf32>
    %cst_82 = arith.constant dense<0.000000e+00> : vector<256xf32>
    %295 = vector.multi_reduction <add>, %294, %cst_82 [0] : vector<9x256xf32> to vector<256xf32>
    %296 = vector.shape_cast %295 : vector<256xf32> to vector<1x256xf32>
    %297 = arith.subf %253, %286 : vector<1x256xf32>
    %298 = arith.divf %297, %283 : vector<1x256xf32>
    %cst_83 = arith.constant 5.000000e-01 : f32
    %299 = vector.broadcast %cst_83 : f32 to vector<1x256xf32>
    %300 = arith.mulf %299, %298 : vector<1x256xf32>
    %301 = arith.mulf %300, %298 : vector<1x256xf32>
    %302 = arith.subf %296, %293 : vector<1x256xf32>
    %303 = arith.mulf %301, %302 : vector<1x256xf32>
    %304 = arith.mulf %303, %283 : vector<1x256xf32>
    %305 = arith.mulf %298, %293 : vector<1x256xf32>
    %306 = arith.mulf %305, %283 : vector<1x256xf32>
    %307 = arith.addf %304, %306 : vector<1x256xf32>
    %308 = arith.addf %307, %290 : vector<1x256xf32>
    %309 = arith.subf %296, %293 : vector<1x256xf32>
    %310 = arith.mulf %298, %309 : vector<1x256xf32>
    %311 = arith.addf %293, %310 : vector<1x256xf32>
    %312 = arith.mulf %213, %311 : vector<1x256xf32>
    %313 = tpu.concatenate %8, %110, %209, %308, %312 in 0 : vector<3x256xf32>, vector<1x256xf32>, vector<1x256xf32>, vector<1x256xf32>, vector<1x256xf32> -> vector<7x256xf32>
    %c0_84 = arith.constant 0 : index
    %c0_85 = arith.constant 0 : index
    %314 = vector.load %arg7[%c0_84, %c0_85] : memref<7x256xf32, #tpu.memory_space<vmem>>, vector<7x256xf32>
    tpu.vector_store %arg7[%c0_84, %c0_85], %313 {strides = array<i32>} : memref<7x256xf32, #tpu.memory_space<vmem>>, vector<7x256xf32>,
    return
  }
  func.func @transform_0(%arg0: i32) -> (i32, i32) {
    %c0_i32 = arith.constant 0 : i32
    %c0_i32_0 = arith.constant 0 : i32
    return %c0_i32, %arg0 : i32, i32
  }
  func.func @transform_1(%arg0: i32) -> (i32, i32) {
    %c0_i32 = arith.constant 0 : i32
    %c0_i32_0 = arith.constant 0 : i32
    return %c0_i32, %arg0 : i32, i32
  }
  func.func @transform_2(%arg0: i32) -> (i32, i32, i32) {
    %c0_i32 = arith.constant 0 : i32
    %c0_i32_0 = arith.constant 0 : i32
    %c0_i32_1 = arith.constant 0 : i32
    %c0_i32_2 = arith.constant 0 : i32
    return %c0_i32, %c0_i32_0, %c0_i32_1 : i32, i32, i32
  }
  func.func @transform_3(%arg0: i32) -> (i32, i32, i32) {
    %c0_i32 = arith.constant 0 : i32
    %c0_i32_0 = arith.constant 0 : i32
    %c0_i32_1 = arith.constant 0 : i32
    %c0_i32_2 = arith.constant 0 : i32
    return %c0_i32, %c0_i32_0, %c0_i32_1 : i32, i32, i32
  }
  func.func @transform_4(%arg0: i32) -> (i32, i32, i32) {
    %c0_i32 = arith.constant 0 : i32
    %c0_i32_0 = arith.constant 0 : i32
    %c0_i32_1 = arith.constant 0 : i32
    %c0_i32_2 = arith.constant 0 : i32
    return %c0_i32, %c0_i32_0, %c0_i32_1 : i32, i32, i32
  }
  func.func @transform_5(%arg0: i32) -> (i32, i32, i32) {
    %c0_i32 = arith.constant 0 : i32
    %c0_i32_0 = arith.constant 0 : i32
    %c0_i32_1 = arith.constant 0 : i32
    %c0_i32_2 = arith.constant 0 : i32
    return %c0_i32, %c0_i32_0, %c0_i32_1 : i32, i32, i32
  }
  func.func @transform_6(%arg0: i32) -> (i32, i32) {
    %c0_i32 = arith.constant 0 : i32
    %c0_i32_0 = arith.constant 0 : i32
    return %c0_i32, %arg0 : i32, i32
  }
}

</mosaic_0001>

<bundles_post_ra>
// kernel: pwquad_forward.3
= control target key start
LH: loop header
LB: loop body
LE: loop exit
PB: predicated region body
PF: predicated region fallthrough
CT: control target
= control target key end

     0   :  { %s2207_s21 = smov 0   ;;  %s2209_s22 = smov 0   ;;  %s3053_s0 = inlined_call_operand.vmem [shape: f32[7,768], index: 0, kind: input, shape index: {}]   ;;  %s3054_s1 = inlined_call_operand.vmem [shape: f32[32,768], index: 1, kind: input, shape index: {}]   ;;  %s3055_s2 = inlined_call_operand.vmem [shape: f32[3,9,32], index: 2, kind: input, shape index: {}]   ;;  %s3056_s3 = inlined_call_operand.vmem [shape: f32[3,8,32], index: 3, kind: input, shape index: {}]   ;;  %s3057_s4 = inlined_call_operand.vmem [shape: f32[3,9,1], index: 4, kind: input, shape index: {}]   ;;  %s3058_s5 = inlined_call_operand.vmem [shape: f32[3,8,1], index: 5, kind: input, shape index: {}]   ;;  %s3059_s6 = inlined_call_operand.vmem [shape: f32[7,768], index: 6, kind: output, shape index: {}]  }
   0x1   :  { %s2211_s23 = smov 0  }
   0x2 LB: > { %s1954_s24 = sadd.s32 4294967295, %s2168_s23   ;;  %s2224_s25 = sadd.s32 1, %s2168_s23   ;;  %s2168_s23 = sphi %s2211_s23, %s3080_s23   ;;  %s2164_s22 = sphi %s2209_s22, %s3079_s22   ;;  %s2160_s21 = sphi %s2207_s21, %s3078_s21  }
   0x3   : > { %s46_s26 = ssub.s32 %s2168_s23, %s2224_s25  ;;  %s49_s27 = sadd.s32 1, %s2164_s22 }
   0x4   : > { %p47_p0 = scmp.eq.s32.totalorder %s46_s26, 0  ;;  %p56_p1 = scmp.ne.s32.totalorder %s2164_s22, %s2160_s21 }
   0x5   : > { %p57_p2 = scmp.eq.s32.totalorder %s2168_s23, 0  ;;  %p1957_p4 = scmp.ge.s32.totalorder %s2168_s23, 3 }
   0x6   : > { %s2233_s28 = scalar_select %p47_p0, %s2164_s22, %s49_s27  }
   0x7   : > { %p58_p3 = por %p57_p2, %p56_p1  ;;  %204 = sbr.rel (%p1957_p4) target bundleno = 24 (0x18), region = 32 }
   0xc   : > { %216 = sbr.rel (!%p58_p3) target bundleno = 24 (0x18), region = 40  ;;  %s218_s29 = sand.u32 (%p58_p3), 1, %s2164_s22  }
   0xd   : > { %s2042_s30 = sshll.u32 (%p58_p3), %s2168_s23, 4  ;;  %s1958_s7 = sshll.u32 (%p58_p3), %s218_s29, 6 }
   0xe   : > { %s223_s10 = scalar_lea.vmem (%p58_p3), %s3054_s1, %s2042_s30  ;;  %s220_s11 = scalar_lea.vmem (%p58_p3), [#allocation2], %s1958_s7 }
   0xf   : > { %v236_v0 = vld [vmem:[%s223_s10] sm:$0xff] (%p58_p3)  ;;  %v238_v1 = vld [vmem:[%s223_s10 + $0x8] sm:$0xff] (%p58_p3)  ;;  %v240_v2 = vld [vmem:[%s223_s10 + $0x30] sm:$0xff] (%p58_p3) }
  0x10   : > { %237 = vst [vmem:[%s220_s11] sm:$0xff] (%p58_p3), %v236_v0  ;;  %v242_v3 = vld [vmem:[%s223_s10 + $0x38] sm:$0xff] (%p58_p3)  ;;  %v244_v4 = vld [vmem:[%s223_s10 + $0x60] sm:$0xff] (%p58_p3)  ;;  %v246_v5 = vld [vmem:[%s223_s10 + $0x68] sm:$0xff] (%p58_p3) }
  0x11   : > { %239 = vst [vmem:[%s220_s11 + $0x8] sm:$0xff] %v238_v1  ;;  %v248_v6 = vld [vmem:[%s223_s10 + $0x90] sm:$0xff]  ;;  %v250_v7 = vld [vmem:[%s223_s10 + $0x98] sm:$0xff] }
  0x12   : > { %241 = vst [vmem:[%s220_s11 + $0x10] sm:$0xff] %v240_v2 }
  0x13   : > { %243 = vst [vmem:[%s220_s11 + $0x18] sm:$0xff] %v242_v3 }
  0x14   : > { %245 = vst [vmem:[%s220_s11 + $0x20] sm:$0xff] %v244_v4 }
  0x15   : > { %247 = vst [vmem:[%s220_s11 + $0x28] sm:$0xff] %v246_v5 }
  0x16   : > { %249 = vst [vmem:[%s220_s11 + $0x30] sm:$0xff] %v248_v6 }
  0x17   : > { %251 = vst [vmem:[%s220_s11 + $0x38] sm:$0xff] %v250_v7 }
  0x18 PF: > { %p1961_p5 = scmp.ge.s32.totalorder %s2168_s23, 1  ;;  %p256_p6 = scmp.lt.s32.totalorder %s2168_s23, 4 }
  0x1a   : > { %p257_p7 = pnand %p1961_p5, %p256_p6 }
  0x1b   : > { %s263_s12 = sand.u32 (!%p257_p7), 1, %s2160_s21   ;;  %s1963_s7 = sshll.u32 (!%p257_p7), %s1954_s24, 1 }
  0x1c   : > { %260 = sbr.rel (%p257_p7) target bundleno = 777 (0x309), region = 63  ;;  %s1962_s15 = sshll.u32 (!%p257_p7), %s263_s12, 6 }
  0x1d   : > { %s265_s18 = scalar_lea.vmem (!%p257_p7), [#allocation2], %s1962_s15  ;;  %p298_p8 = scmp.lt.s32.totalorder (!%p257_p7), %s1963_s7, 5 }
  0x21   : > { %v400_v8 = vld [vmem:[%s3058_s5] sm:$0xff]  ;;  %v2170_v9 = vmov 0   ;;  %v335_v10 = vld [vmem:[%s3057_s4 + $0x8] sm:$0x1]  ;;  %v2252_v11 = vld [vmem:[%s265_s18 + $0x30] sm:$0xff]  ;;  %vm346_vm0 = vcmask 261120   ;;  %v310_v32 = vlaneseq }
  0x22   : > { %2069 = vset.pattern.permute.xlu0 %v2170_v9  ;;  %2070 = vset.pattern.permute.xlu1 %v2170_v9  ;;  %v2254_v12 = vld [vmem:[%s265_s18 + $0x38] sm:$0xff]  ;;  %v2256_v13 = vld [vmem:[%s265_s18 + $0x20] sm:$0xff]  ;;  %v2261_v14 = vld [vmem:[%s265_s18 + $0x28] sm:$0xff]  ;;  %v2171_v54 = vmov 0.0   ;;  %vm480_vm2 = vcmask 64512   ;;  %vm465_vm3 = vcmask 1046528  }
  0x23   : > { %403 = vperm.xlu0 %2069, %v400_v8   ;;  %343 = vperm.xlu1 %2070, %v335_v10   ;;  %v2265_v15 = vld [vmem:[%s265_s18 + $0x10] sm:$0xff]  ;;  %v2267_v16 = vld [vmem:[%s265_s18 + $0x18] sm:$0xff]  ;;  %v2273_v17 = vld [vmem:[%s265_s18] sm:$0xff]  ;;  %v2315_v45 = vshrl.u32 %v310_v32, 7  ;;  %v313_v48 = vand.u32 127, %v310_v32  ;;  %s3082_s7 = smov (!%p298_p8, %s1963_s7), 5 }
  0x24   : > { %2071 = vset.pattern.permute.xlu2 %v2170_v9  ;;  %365 = vmatpush.msra.mxu0 %v2252_v11  ;;  %v2275_v18 = vld [vmem:[%s265_s18 + $0x8] sm:$0xff]  ;;  %v332_v19 = vld [vmem:[%s3055_s2] sm:$0xff]  ;;  %v1990_v22 = vld [vmem:[%s3057_s4 + $0x10] sm:$0xff]  ;;  %s1964_s8 = sshll.u32 %s3082_s7, 3 }
  0x25   : > { %388 = vmatpush.msra.mxu1 %v2254_v12  ;;  %421 = vmatpush.msra.mxu2 %v2252_v11  ;;  %v399_v20 = vld [vmem:[%s3056_s3] sm:$0xff]  ;;  %v333_v23 = vld [vmem:[%s3055_s2 + $0x8] sm:$0x1]  ;;  %v2023_v24 = vld [vmem:[%s3058_s5 + $0x10] sm:$0xff]  ;;  %vm314_vm1 = vcmp.le.s32.totalorder %v313_v48, %v2315_v45  ;;  %s2400_s11 = scalar_lea.vmem %s3053_s0, %s1964_s8  ;;  %s308_s18 = scalar_lea.vmem %s3059_s6, %s1964_s8 }
  0x26   : > { %441 = vmatpush.msra.mxu3 %v2254_v12  ;;  %366 = vmatpush.msra.mxu0 %v2256_v13  ;;  %v334_v21 = vld [vmem:[%s3057_s4] sm:$0xff]  ;;  %v1991_v42 = vld [vmem:[%s3057_s4 + $0x18] sm:$0x1]  ;;  %v1997_v51 = vld [vmem:[%s3058_s5 + $0x8] sm:$0xff]  ;;  %v2326_v55 = vsel %vm314_vm1, 1.0, %v2171_v54 }
  0x27   : > { %389 = vmatpush.msra.mxu1 %v2261_v14  ;;  %422 = vmatpush.msra.mxu2 %v2256_v13  ;;  %v2016_v25 = vld [vmem:[%s3057_s4 + $0x20] sm:$0xff]  ;;  %v2017_v0 = vld [vmem:[%s3057_s4 + $0x28] sm:$0x1]  ;;  %v1988_v4 = vld [vmem:[%s3055_s2 + $0x10] sm:$0xff] }
  0x28   : > { %442 = vmatpush.msra.mxu3 %v2261_v14  ;;  %367 = vmatpush.msra.mxu0 %v2265_v15 }
  0x29   : > { %390 = vmatpush.msra.mxu1 %v2267_v16  ;;  %423 = vmatpush.msra.mxu2 %v2265_v15 }
  0x2a   : > { %443 = vmatpush.msra.mxu3 %v2267_v16  ;;  %368 = vmatpush.msra.mxu0 %v2273_v17 }
  0x2b   : > { %391 = vmatpush.msra.mxu1 %v2275_v18  ;;  %424 = vmatpush.msra.mxu2 %v2273_v17 }
  0x2c   : > { %444 = vmatpush.msra.mxu3 %v2275_v18  ;;  %1968 = vmatmul.msk.f32.vlgmr.msra.gmra.mxu0 %vm346_vm0, %v332_v19 }
  0x2d   : > { %1970 = vmatmul.msk.f32.vlgmr.msra.gmra.mxu1 %vm346_vm0, %v332_v19  ;;  %1972 = vmatmul.msk.f32.vlgmr.msra.gmra.mxu2 %vm346_vm0, %v399_v20  ;;  %v1989_v19 = vld [vmem:[%s3055_s2 + $0x18] sm:$0x1] }
  0x2e   : > { %1973 = vmatmul.msk.f32.vlgmr.msra.gmra.mxu3 %vm346_vm0, %v399_v20  ;;  %338 = vperm.xlu0 %2069, %v334_v21   ;;  %v1996_v20 = vld [vmem:[%s3056_s3 + $0x8] sm:$0xff]  ;;  %v318_v21 = vld [vmem:[%s2400_s11] sm:$0x7f] }
  0x2f   : > { %854 = vperm.xlu1 %2070, %v1990_v22   ;;  %859 = vperm.xlu2 %2071, %v1991_v42   ;;  %v319_v22 = vld [vmem:[%s2400_s11 + $0x8] sm:$0x7f]  ;;  %vm320_vm4 = vcmp.gt.f32.partialorder %v318_v21, 0.999999 }
  0x30   : > { %vm321_vm5 = vcmp.gt.f32.partialorder %v319_v22, 0.999999 }
  0x34   : > { %1969 = vmatmul.msk.f32.gmra.mxu0 %vm346_vm0, %v333_v23 }
  0x35   : > { %1971 = vmatmul.msk.f32.gmra.mxu1 %vm346_vm0, %v333_v23 }
  0x36   : > { %1430 = vperm.xlu0 %2069, %v2023_v24  }
  0x37   : > { %1364 = vperm.xlu1 %2070, %v2016_v25   ;;  %920 = vperm.xlu2 %2071, %v1997_v51  }
  0x3f   : > { %1369 = vperm.xlu2 %2071, %v2017_v0  }
  0x89   : > { %v2410_v25 = vpop.permute.xlu2 %859 }
  0x95   : > { %v404_v26 = vpop.permute.xlu0 %403  ;;  %v344_v34 = vpop.permute.xlu1 %343 }
  0xa0   : > { %v339_v29 = vpop.permute.xlu0 %338 }
  0xa9   : > { %v370_v27 = vpop.f32.mrf.mxu0 }
  0xaa   : > { %v393_v28 = vpop.f32.mrf.mxu1  ;;  %v371_v30 = vadd.f32 %v370_v27, %v339_v29 }
  0xab   : > { %v394_v31 = vadd.f32 %v393_v28, %v339_v29  ;;  %v2415_v28 = vsel %vm321_vm5, 0.999999, %v319_v22 }
  0xac   : > { %v449_v33 = vmul.f32 1.442695, %v371_v30 }
  0xad   : > { %v451_v35 = vmul.f32 1.442695, %v394_v31 }
  0xae   : > { %2072 = vpow2.f32 %v449_v33 }
  0xaf   : > { %2074 = vpow2.f32 %v451_v35 }
  0xb0   : > { %v426_v36 = vpop.f32.mrf.mxu2 }
  0xb1   : > { %v446_v37 = vpop.f32.mrf.mxu3  ;;  %v427_v38 = vadd.f32 %v426_v36, %v404_v26  ;;  %v373_v40 = vpop.f32.mrf.mxu0 }
  0xb2   : > { %v447_v39 = vadd.f32 %v446_v37, %v404_v26  ;;  %v396_v41 = vpop.f32.mrf.mxu1  ;;  %v374_v43 = vadd.f32 %v373_v40, %v344_v34  ;;  %v2412_v26 = vsel %vm320_vm4, 0.999999, %v318_v21 }
  0xb3   : > { %v397_v44 = vadd.f32 %v396_v41, %v344_v34  ;;  %v457_v46 = vmul.f32 1.442695, %v427_v38  ;;  %v638_v37 = vperm.slane %v2412_v26, 3  ;;  %v639_v38 = vperm.slane %v2415_v28, 3 }
  0xb4   : > { %v459_v47 = vmul.f32 1.442695, %v447_v39  ;;  %v453_v49 = vmul.f32 1.442695, %v374_v43  ;;  %v2321_v52 = vpop.eup %2072 }
  0xb5   : > { %v455_v50 = vmul.f32 1.442695, %v397_v44  ;;  %2076 = vpow2.f32 %v457_v46  ;;  %v2323_v53 = vpop.eup %2074  ;;  %v466_v61 = vrot.slane %v2321_v52, 1 }
  0xb6   : > { %2078 = vpow2.f32 %v459_v47  ;;  %v469_v63 = vrot.slane %v2323_v53, 1 }
  0xb7   : > { %2080 = vpow2.f32 %v453_v49 }
  0xb8   : > { %2082 = vpow2.f32 %v455_v50 }
  0xbb   : > { %v2328_v56 = vpop.eup %2076 }
  0xbc   : > { %v2330_v57 = vpop.eup %2078  ;;  %499 = vmatpush.msrb.mxu2 %v2328_v56 }
  0xbd   : > { %v2333_v58 = vpop.eup %2080  ;;  %519 = vmatpush.msrb.mxu3 %v2330_v57  ;;  %1974 = vmatmul.msk.f32.vlgmr.msrb.gmra.mxu2 %vm480_vm2, %v2326_v55 }
  0xbe   : > { %v2338_v59 = vpop.eup %2082  ;;  %v467_v60 = vrot.slane %v2333_v58, 1  ;;  %1975 = vmatmul.msk.f32.vlgmr.msrb.gmra.mxu3 %vm480_vm2, %v2326_v55  ;;  %880 = vmatpush.msra.mxu2 %v2252_v11 }
  0xbf   : > { %v470_v62 = vrot.slane %v2338_v59, 1  ;;  %903 = vmatpush.msra.mxu3 %v2254_v12 }
  0xc0   : > { %881 = vmatpush.msra.mxu2 %v2256_v13  ;;  %v468_v1 = vsel %vm465_vm3, %v466_v61, %v467_v60 }
  0xc1   : > { %904 = vmatpush.msra.mxu3 %v2261_v14  ;;  %v474_v2 = vadd.f32 %v2321_v52, %v468_v1  ;;  %v471_v3 = vsel %vm465_vm3, %v469_v63, %v470_v62  ;;  %v2445_v62 = vpop.permute.xlu1 %854 }
  0xc2   : > { %882 = vmatpush.msra.mxu2 %v2265_v15  ;;  %v475_v5 = vadd.f32 %v2323_v53, %v471_v3 }
  0xc3   : > { %905 = vmatpush.msra.mxu3 %v2267_v16  ;;  %v476_v6 = vmul.f32 0.5, %v474_v2 }
  0xc4   : > { %883 = vmatpush.msra.mxu2 %v2273_v17  ;;  %v477_v7 = vmul.f32 0.5, %v475_v5 }
  0xc5   : > { %906 = vmatpush.msra.mxu3 %v2275_v18  ;;  %1992 = vmatmul.msk.f32.vlgmr.msra.gmra.mxu2 %vm346_vm0, %v1988_v4  ;;  %v478_v8 = vmul.f32 %v2328_v56, %v476_v6  ;;  %v921_v6 = vpop.permute.xlu2 %920 }
  0xc6   : > { %1994 = vmatmul.msk.f32.vlgmr.msra.gmra.mxu3 %vm346_vm0, %v1988_v4  ;;  %v479_v10 = vmul.f32 %v2330_v57, %v477_v7 }
  0xc7   : > { %539 = vmatpush.msrb.mxu0 %v478_v8 }
  0xc8   : > { %559 = vmatpush.msrb.mxu1 %v479_v10  ;;  %1976 = vmatmul.msk.f32.vlgmr.msrb.gmra.mxu0 %vm480_vm2, %v2326_v55 }
  0xc9   : > { %1977 = vmatmul.msk.f32.vlgmr.msrb.gmra.mxu1 %vm480_vm2, %v2326_v55  ;;  %938 = vmatpush.msra.mxu0 %v2252_v11 }
  0xca   : > { %958 = vmatpush.msra.mxu1 %v2254_v12 }
  0xcb   : > { %939 = vmatpush.msra.mxu0 %v2256_v13 }
  0xcc   : > { %959 = vmatpush.msra.mxu1 %v2261_v14 }
  0xcd   : > { %1993 = vmatmul.msk.f32.gmra.mxu2 %vm346_vm0, %v1989_v19  ;;  %940 = vmatpush.msra.mxu0 %v2265_v15 }
  0xce   : > { %1995 = vmatmul.msk.f32.gmra.mxu3 %vm346_vm0, %v1989_v19  ;;  %960 = vmatpush.msra.mxu1 %v2267_v16 }
  0xcf   : > { %941 = vmatpush.msra.mxu0 %v2273_v17 }
  0xd0   : > { %961 = vmatpush.msra.mxu1 %v2275_v18  ;;  %1998 = vmatmul.msk.f32.vlgmr.msra.gmra.mxu0 %vm346_vm0, %v1996_v20 }
  0xd1   : > { %1999 = vmatmul.msk.f32.vlgmr.msra.gmra.mxu1 %vm346_vm0, %v1996_v20 }
 0x140   : > { %v2404_v23 = vpop.f32.mrf.mxu2 }
 0x141   : > { %2084 = vrcp.f32 %v2404_v23  ;;  %v2407_v24 = vpop.f32.mrf.mxu3  ;;  %v573_v27 = vand.u32 2147483647, %v2404_v23  ;;  %v575_v30 = vand.u32 2147483648, %v2404_v23  ;;  %vm569_vm6 = vweird.f32 %v2404_v23 }
 0x142   : > { %2086 = vrcp.f32 %v2407_v24  ;;  %v588_v31 = vand.u32 2147483647, %v2407_v24  ;;  %v590_v34 = vand.u32 2147483648, %v2407_v24  ;;  %vm584_vm8 = vweird.f32 %v2407_v24 }
 0x143   : > { %vm2430_vm7 = vcmp.eq.f32.partialorder %v573_v27, 8.507059e+37  ;;  %v576_v43 = vor.u32 1.1754944e-38, %v575_v30 }
 0x144   : > { %vm2436_vm9 = vcmp.eq.f32.partialorder %v588_v31, 8.507059e+37  ;;  %v591_v48 = vor.u32 1.1754944e-38, %v590_v34 }
 0x145   : > { %v2417_v29 = vpop.f32.mrf.mxu0 }
 0x146   : > { %2088 = vrcp.f32 %v2417_v29  ;;  %v2422_v32 = vpop.f32.mrf.mxu1  ;;  %v611_v46 = vand.u32 2147483648, %v2417_v29  ;;  %vm605_vm10 = vweird.f32 %v2417_v29  ;;  %v609_v49 = vand.u32 2147483647, %v2417_v29 }
 0x147   : > { %v2085_v33 = vpop.eup %2084  ;;  %2090 = vrcp.f32 %v2422_v32  ;;  %vm620_vm12 = vweird.f32 %v2422_v32  ;;  %v624_v60 = vand.u32 2147483647, %v2422_v32  ;;  %v626_v1 = vand.u32 2147483648, %v2422_v32 }
 0x148   : > { %v2087_v35 = vpop.eup %2086  ;;  %v565_v36 = vmul.f32 %v2085_v33, %v2404_v23  ;;  %v885_v39 = vpop.f32.mrf.mxu2  ;;  %vm570_vm11 = vweird.f32 %v2085_v33  ;;  %v612_v4 = vor.u32 1.1754944e-38, %v611_v46 }
 0x149   : > { %v580_v41 = vmul.f32 %v2087_v35, %v2407_v24  ;;  %vm585_vm13 = vweird.f32 %v2087_v35  ;;  %v886_v7 = vadd.f32 %v885_v39, %v2445_v62  ;;  %vm571_vm14 = vmor %vm569_vm6, %vm570_vm11  ;;  %v908_v27 = vpop.f32.mrf.mxu3  ;;  %vm610_vm6 = vcmp.eq.f32.partialorder %v609_v49, 8.507059e+37 }
 0x14a   : > { %v566_v42 = vsub.f32 1.0, %v565_v36  ;;  %vm586_vm1 = vmor %vm584_vm8, %vm585_vm13  ;;  %vm625_vm8 = vcmp.eq.f32.partialorder %v624_v60, 8.507059e+37  ;;  %vm741_vm11 = vcmask 1040384  }
 0x14b   : > { %v581_v47 = vsub.f32 1.0, %v580_v41 }
 0x14c   : > { %v2089_v50 = vpop.eup %2088  ;;  %v567_v51 = vmul.f32 %v2085_v33, %v566_v42 }
 0x14d   : > { %v2091_v61 = vpop.eup %2090  ;;  %v582_v63 = vmul.f32 %v2087_v35, %v581_v47  ;;  %v601_v0 = vmul.f32 %v2089_v50, %v2417_v29  ;;  %v943_v2 = vpop.f32.mrf.mxu0  ;;  %vm606_vm15 = vweird.f32 %v2089_v50 }
 0x14e   : > { %v568_v3 = vadd.f32 %v2085_v33, %v567_v51  ;;  %v616_v5 = vmul.f32 %v2091_v61, %v2422_v32  ;;  %v963_v8 = vpop.f32.mrf.mxu1  ;;  %v944_v20 = vadd.f32 %v943_v2, %v921_v6  ;;  %vm621_vm4 = vweird.f32 %v2091_v61  ;;  %vm607_vm5 = vmor %vm605_vm10, %vm606_vm15 }
 0x14f   : > { %v583_v10 = vadd.f32 %v2087_v35, %v582_v63  ;;  %v602_v19 = vsub.f32 1.0, %v601_v0  ;;  %v964_v30 = vadd.f32 %v963_v8, %v921_v6  ;;  %v627_v0 = vor.u32 1.1754944e-38, %v626_v1 }
 0x150   : > { %v572_v21 = vsel %vm571_vm14, %v2085_v33, %v568_v3  ;;  %v617_v22 = vsub.f32 1.0, %v616_v5  ;;  %v974_v39 = vmul.f32 1.442695, %v944_v20  ;;  %v888_v41 = vpop.f32.mrf.mxu2  ;;  %v966_v3 = vmul.f32 1.442695, %v886_v7 }
 0x151   : > { %v2459_v31 = vsel %vm2430_vm7, %v576_v43, %v572_v21  ;;  %v587_v34 = vsel %vm586_vm1, %v2087_v35, %v583_v10  ;;  %v603_v36 = vmul.f32 %v2089_v50, %v602_v19  ;;  %v976_v47 = vmul.f32 1.442695, %v964_v30  ;;  %vm622_vm7 = vmor %vm620_vm12, %vm621_vm4 }
 0x152   : > { %v594_v42 = vperm.slane %v2459_v31, 7  ;;  %v2464_v33 = vsel %vm2436_vm9, %v591_v48, %v587_v34  ;;  %v618_v46 = vmul.f32 %v2091_v61, %v617_v22  ;;  %2092 = vpow2.f32 %v974_v39 }
 0x153   : > { %v595_v51 = vperm.slane %v2464_v33, 7  ;;  %v604_v63 = vadd.f32 %v2089_v50, %v603_v36  ;;  %2094 = vpow2.f32 %v976_v47  ;;  %v889_v43 = vadd.f32 %v888_v41, %v2410_v25  ;;  %v2014_v36 = vld [vmem:[%s3055_s2 + $0x20] sm:$0xff] }
 0x154   : > { %v2470_v35 = vmul.f32 %v594_v42, %v2404_v23  ;;  %v619_v40 = vadd.f32 %v2091_v61, %v618_v46  ;;  %2096 = vpow2.f32 %v966_v3  ;;  %v909_v19 = vadd.f32 %v908_v27, %v2445_v62 }
 0x155   : > { %v2479_v44 = vmul.f32 %v595_v51, %v2407_v24  ;;  %v608_v48 = vsel %vm607_vm5, %v2089_v50, %v604_v63  ;;  %v2528_v47 = vadd.s32 8, %v2315_v45 }
 0x156   : > { %vm640_vm9 = vcmp.le.f32.partialorder %v2470_v35, %v638_v37  ;;  %v2487_v1 = vsel %vm610_vm6, %v612_v4, %v608_v48  ;;  %v623_v2 = vsel %vm622_vm7, %v2091_v61, %v619_v40  ;;  %v970_v61 = vmul.f32 1.442695, %v889_v43 }
 0x157   : > { %v642_v5 = vsel %vm640_vm9, 1, %v2170_v9  ;;  %vm641_vm10 = vcmp.le.f32.partialorder %v2479_v44, %v639_v38  ;;  %v630_v49 = vmul.f32 %v2487_v1, %v2404_v23  ;;  %v2495_v50 = vsel %vm625_vm8, %v627_v0, %v623_v2  ;;  %v911_v38 = vpop.f32.mrf.mxu3 }
 0x158   : > { %v644_v60 = vrot.slane %v642_v5, 4  ;;  %v643_v6 = vsel %vm641_vm10, 1, %v2170_v9  ;;  %v2500_v37 = vmul.f32 %v2495_v50, %v2407_v24  ;;  %v2502_v4 = vpop.eup %2092  ;;  %2098 = vpow2.f32 %v970_v61 }
 0x159   : > { %v650_v7 = vrot.slane %v643_v6, 4  ;;  %v2504_v8 = vpop.eup %2094  ;;  %1011 = vmatpush.msrb.mxu0 %v2502_v4  ;;  %v912_v21 = vadd.f32 %v911_v38, %v2410_v25  ;;  %v968_v27 = vmul.f32 1.442695, %v909_v19  ;;  %v632_v30 = vperm.slane %v630_v49, 7 }
 0x15a   : > { %v645_v10 = vadd.s32 %v644_v60, %v642_v5  ;;  %1031 = vmatpush.msrb.mxu1 %v2504_v8  ;;  %2000 = vmatmul.msk.f32.vlgmr.msrb.gmra.mxu0 %vm480_vm2, %v2326_v55  ;;  %v2522_v39 = vpop.eup %2096  ;;  %v2531_v0 = vadd.s32 1, %v2315_v45  ;;  %v596_v40 = vmul.f32 %v2328_v56, %v594_v42  ;;  %v597_v43 = vmul.f32 %v2330_v57, %v595_v51  ;;  %v2015_v60 = vld [vmem:[%s3055_s2 + $0x28] sm:$0x1] }
 0x15b   : > { %v651_v23 = vadd.s32 %v650_v7, %v643_v6  ;;  %2001 = vmatmul.msk.f32.vlgmr.msrb.gmra.mxu1 %vm480_vm2, %v2326_v55  ;;  %1390 = vmatpush.msra.mxu0 %v2252_v11  ;;  %v972_v41 = vmul.f32 1.442695, %v912_v21  ;;  %2100 = vpow2.f32 %v968_v27  ;;  %v634_v2 = vmul.f32 %v2321_v52, %v632_v30 }
 0x15c   : > { %v646_v24 = vrot.slane %v645_v10, 2  ;;  %1413 = vmatpush.msra.mxu1 %v2254_v12  ;;  %v636_v3 = vmul.f32 %v2333_v58, %v632_v30  ;;  %v982_v31 = vrot.slane %v2522_v39, 1 }
 0x15d   : > { %v652_v20 = vrot.slane %v651_v23, 2  ;;  %1391 = vmatpush.msra.mxu0 %v2256_v13  ;;  %2102 = vpow2.f32 %v972_v41 }
 0x15e   : > { %v647_v22 = vadd.s32 %v646_v24, %v645_v10  ;;  %1414 = vmatpush.msra.mxu1 %v2261_v14  ;;  %v2525_v46 = vpop.eup %2098 }
 0x15f   : > { %v653_v62 = vadd.s32 %v652_v20, %v651_v23  ;;  %1392 = vmatpush.msra.mxu0 %v2265_v15  ;;  %v983_v42 = vrot.slane %v2525_v46, 1 }
 0x160   : > { %v648_v34 = vrot.slane %v647_v22, 1  ;;  %1415 = vmatpush.msra.mxu1 %v2267_v16 }
 0x161   : > { %v654_v25 = vrot.slane %v653_v62, 1  ;;  %1393 = vmatpush.msra.mxu0 %v2273_v17  ;;  %v2561_v6 = vpop.eup %2100 }
 0x162   : > { %v649_v63 = vadd.s32 %v648_v34, %v647_v22  ;;  %1416 = vmatpush.msra.mxu1 %v2275_v18  ;;  %2018 = vmatmul.msk.f32.vlgmr.msra.gmra.mxu0 %vm346_vm0, %v2014_v36  ;;  %v985_v34 = vrot.slane %v2561_v6, 1 }
 0x163   : > { %v655_v48 = vadd.s32 %v654_v25, %v653_v62  ;;  %2020 = vmatmul.msk.f32.vlgmr.msra.gmra.mxu1 %vm346_vm0, %v2014_v36  ;;  %v2566_v21 = vpop.eup %2102  ;;  %v633_v62 = vperm.slane %v2500_v37, 7 }
 0x164   : > { %vm656_vm12 = vcmp.lt.s32.totalorder %v649_v63, 7 }
 0x165   : > { %v657_v56 = vsel %vm656_vm12, %v649_v63, 7  ;;  %vm658_vm13 = vcmp.lt.s32.totalorder %v655_v48, 7 }
 0x166   : > { %vm660_vm14 = vcmp.eq.s32.totalorder %v2315_v45, %v657_v56  ;;  %vm667_vm15 = vcmp.eq.s32.totalorder %v2531_v0, %v657_v56  ;;  %vm673_vm1 = vcmp.eq.s32.totalorder %v2528_v47, %v657_v56  ;;  %v679_v57 = vadd.s32 1, %v657_v56 }
 0x167   : > { %v1978_v52 = vsel %vm660_vm14, 1.0, %v2171_v54  ;;  %v1980_v58 = vsel %vm667_vm15, 1.0, %v2171_v54  ;;  %v1982_v33 = vsel %vm673_vm1, 1.0, %v2171_v54  ;;  %v2553_v51 = vsel %vm658_vm13, %v655_v48, 7 }
 0x168   : > { %vm681_vm4 = vcmp.eq.s32.totalorder %v2315_v45, %v679_v57  ;;  %vm683_vm5 = vcmp.eq.s32.totalorder %v2528_v47, %v679_v57  ;;  %v693_v5 = vmul.f32 %v1978_v52, %v596_v40  ;;  %v707_v49 = vmul.f32 %v1980_v58, %v2470_v35 }
 0x169   : > { %v1984_v61 = vsel %vm681_vm4, 1.0, %v2171_v54  ;;  %v1986_v7 = vsel %vm683_vm5, 1.0, %v2171_v54  ;;  %v721_v10 = vmul.f32 %v1980_v58, %v2417_v29  ;;  %v737_v38 = vmul.f32 %v1978_v52, %v634_v2 }
 0x16a   : > { %v695_v23 = vrot.slane %v693_v5, 4  ;;  %v709_v19 = vrot.slane %v707_v49, 4  ;;  %v739_v24 = vmul.f32 %v1982_v33, %v636_v3  ;;  %v758_v20 = vmul.f32 %v1984_v61, %v634_v2  ;;  %2019 = vmatmul.msk.f32.gmra.mxu0 %vm346_vm0, %v2015_v60 }
 0x16b   : > { %v723_v35 = vrot.slane %v721_v10, 4  ;;  %v760_v22 = vmul.f32 %v1986_v7, %v636_v3  ;;  %vm661_vm6 = vcmp.eq.s32.totalorder %v2315_v45, %v2553_v51  ;;  %2021 = vmatmul.msk.f32.gmra.mxu1 %vm346_vm0, %v2015_v60  ;;  %vm668_vm7 = vcmp.eq.s32.totalorder %v2531_v0, %v2553_v51 }
 0x16c   : > { %v696_v27 = vadd.f32 %v695_v23, %v693_v5  ;;  %v710_v30 = vadd.f32 %v709_v19, %v707_v49  ;;  %v742_v29 = vsel %vm741_vm11, %v739_v24, 0.0  ;;  %v1979_v63 = vsel %vm661_vm6, 1.0, %v2171_v54 }
 0x16d   : > { %v724_v36 = vadd.f32 %v723_v35, %v721_v10  ;;  %v743_v25 = vadd.f32 %v742_v29, %v737_v38  ;;  %v762_v41 = vsel %vm741_vm11, %v760_v22, 0.0  ;;  %v984_v48 = vsel %vm465_vm3, %v982_v31, %v983_v42 }
 0x16e   : > { %v697_v37 = vrot.slane %v696_v27, 2  ;;  %v763_v40 = vadd.f32 %v762_v41, %v758_v20  ;;  %v711_v2 = vrot.slane %v710_v30, 2  ;;  %v680_v57 = vadd.s32 1, %v2553_v51 }
 0x16f   : > { %v725_v3 = vrot.slane %v724_v36, 2  ;;  %v744_v56 = vrot.slane %v743_v25, 4  ;;  %v635_v33 = vmul.f32 %v2323_v53, %v633_v62  ;;  %v694_v5 = vmul.f32 %v1979_v63, %v597_v43 }
 0x170   : > { %v698_v52 = vadd.f32 %v697_v37, %v696_v27  ;;  %v764_v58 = vrot.slane %v763_v40, 4  ;;  %v986_v61 = vrot.slane %v2566_v21, 1  ;;  %v990_v7 = vadd.f32 %v2522_v39, %v984_v48 }
 0x171   : > { %v726_v49 = vadd.f32 %v725_v3, %v724_v36  ;;  %v745_v60 = vadd.f32 %v744_v56, %v743_v25  ;;  %v1981_v31 = vsel %vm668_vm7, 1.0, %v2171_v54  ;;  %vm674_vm8 = vcmp.eq.s32.totalorder %v2528_v47, %v2553_v51 }
 0x172   : > { %v699_v10 = vrot.slane %v698_v52, 1  ;;  %v765_v38 = vadd.f32 %v764_v58, %v763_v40  ;;  %v712_v42 = vadd.f32 %v711_v2, %v710_v30  ;;  %vm682_vm9 = vcmp.eq.s32.totalorder %v2315_v45, %v680_v57 }
 0x173   : > { %v727_v23 = vrot.slane %v726_v49, 1  ;;  %v746_v53 = vrot.slane %v745_v60, 2  ;;  %vm684_vm10 = vcmp.eq.s32.totalorder %v2528_v47, %v680_v57  ;;  %v701_v24 = vrot.slane %v694_v5, 4 }
 0x174   : > { %v2591_v43 = vadd.f32 %v699_v10, %v698_v52  ;;  %v766_v19 = vrot.slane %v765_v38, 2  ;;  %v708_v22 = vmul.f32 %v1981_v31, %v2479_v44  ;;  %v722_v27 = vmul.f32 %v1981_v31, %v2422_v32 }
 0x175   : > { %v728_v20 = vadd.f32 %v727_v23, %v726_v49  ;;  %v747_v35 = vadd.f32 %v746_v53, %v745_v60  ;;  %v1983_v51 = vsel %vm674_vm8, 1.0, %v2171_v54  ;;  %v987_v30 = vsel %vm465_vm3, %v985_v34, %v986_v61 }
 0x176   : > { %v767_v29 = vadd.f32 %v766_v19, %v765_v38  ;;  %2104 = vrcp.f32 %v2591_v43  ;;  %v713_v36 = vrot.slane %v712_v42, 1  ;;  %v1985_v37 = vsel %vm682_vm9, 1.0, %v2171_v54 }
 0x177   : > { %v2600_v25 = vmul.f32 %v728_v20, %v2487_v1  ;;  %v748_v41 = vrot.slane %v747_v35, 1  ;;  %v1987_v44 = vsel %vm684_vm10, 1.0, %v2171_v54  ;;  %v702_v32 = vadd.f32 %v701_v24, %v694_v5 }
 0x178   : > { %v768_v40 = vrot.slane %v767_v29, 1  ;;  %v729_v48 = vrot.slane %v722_v27, 4  ;;  %v637_v2 = vmul.f32 %v2338_v59, %v633_v62  ;;  %v715_v3 = vrot.slane %v708_v22, 4 }
 0x179   : > { %v992_v56 = vmul.f32 0.5, %v990_v7  ;;  %v991_v34 = vadd.f32 %v2561_v6, %v987_v30  ;;  %v2608_v52 = vadd.f32 %v748_v41, %v747_v35  ;;  %v703_v58 = vrot.slane %v702_v32, 2 }
 0x17a   : > { %v769_v1 = vadd.f32 %v768_v40, %v767_v29  ;;  %v730_v49 = vadd.f32 %v729_v48, %v722_v27  ;;  %v738_v60 = vmul.f32 %v1979_v63, %v635_v33  ;;  %v740_v61 = vmul.f32 %v1983_v51, %v637_v2 }
 0x17b   : > { %v759_v57 = vmul.f32 %v1985_v37, %v635_v33  ;;  %v761_v10 = vmul.f32 %v1987_v44, %v637_v2  ;;  %v714_v31 = vadd.f32 %v713_v36, %v712_v42  ;;  %v704_v23 = vadd.f32 %v703_v58, %v702_v32 }
 0x17c   : > { %v2105_v38 = vpop.eup %2104  ;;  %v2611_v5 = vsub.f32 %v769_v1, %v2608_v52  ;;  %v731_v59 = vrot.slane %v730_v49, 2  ;;  %v789_v7 = vand.u32 2147483647, %v2591_v43  ;;  %v750_v53 = vsel %vm741_vm11, %v740_v61, 0.0 }
 0x17d   : > { %v781_v62 = vmul.f32 %v2105_v38, %v2591_v43  ;;  %v770_v19 = vsel %vm741_vm11, %v761_v10, 0.0  ;;  %v705_v24 = vrot.slane %v704_v23, 1  ;;  %v716_v63 = vadd.f32 %v715_v3, %v708_v22 }
 0x17e   : > { %v732_v20 = vadd.f32 %v731_v59, %v730_v49  ;;  %v751_v33 = vadd.f32 %v750_v53, %v738_v60  ;;  %v771_v27 = vadd.f32 %v770_v19, %v759_v57  ;;  %v994_v42 = vmul.f32 %v2502_v4, %v992_v56 }
 0x17f   : > { %v782_v35 = vsub.f32 1.0, %v781_v62  ;;  %v993_v29 = vmul.f32 0.5, %v991_v34  ;;  %v791_v51 = vand.u32 2147483648, %v2591_v43  ;;  %v2619_v30 = vadd.f32 %v705_v24, %v704_v23 }
 0x180   : > { %v733_v36 = vrot.slane %v732_v20, 1  ;;  %v752_v41 = vrot.slane %v751_v33, 4  ;;  %vm786_vm12 = vweird.f32 %v2105_v38  ;;  %v772_v40 = vrot.slane %v771_v27, 4  ;;  %1051 = vmatpush.msrb.mxu2 %v994_v42 }
 0x181   : > { %v783_v37 = vmul.f32 %v2105_v38, %v782_v35  ;;  %v995_v44 = vmul.f32 %v2504_v8, %v993_v29  ;;  %v717_v22 = vrot.slane %v716_v63, 2  ;;  %2106 = vrcp.f32 %v2619_v30  ;;  %2002 = vmatmul.msk.f32.vlgmr.msrb.gmra.mxu2 %vm480_vm2, %v2326_v55 }
 0x182   : > { %v734_v32 = vadd.f32 %v733_v36, %v732_v20  ;;  %v753_v48 = vadd.f32 %v752_v41, %v751_v33  ;;  %vm785_vm13 = vweird.f32 %v2591_v43  ;;  %v773_v3 = vadd.f32 %v772_v40, %v771_v27  ;;  %1448 = vmatpush.msra.mxu2 %v2252_v11 }
 0x183   : > { %v784_v2 = vadd.f32 %v2105_v38, %v783_v37  ;;  %1071 = vmatpush.msrb.mxu3 %v995_v44  ;;  %vm787_vm14 = vmor %vm785_vm13, %vm786_vm12  ;;  %v792_v56 = vor.u32 1.1754944e-38, %v791_v51  ;;  %v778_v58 = vsub.f32 %v2412_v26, %v714_v31  ;;  %vm790_vm15 = vcmp.eq.f32.partialorder %v789_v7, 8.507059e+37 }
 0x184   : > { %v2628_v34 = vmul.f32 %v734_v32, %v2495_v50  ;;  %v754_v1 = vrot.slane %v753_v48, 2  ;;  %2003 = vmatmul.msk.f32.vlgmr.msrb.gmra.mxu3 %vm480_vm2, %v2326_v55  ;;  %v774_v60 = vrot.slane %v773_v3, 2  ;;  %1449 = vmatpush.msra.mxu2 %v2256_v13  ;;  %v718_v11 = vadd.f32 %v717_v22, %v716_v63  ;;  %v2022_v50 = vld [vmem:[%s3056_s3 + $0x10] sm:$0xff] }
 0x185   : > { %v788_v49 = vsel %vm787_vm14, %v2105_v38, %v784_v2  ;;  %1468 = vmatpush.msra.mxu3 %v2254_v12  ;;  %v804_v42 = vand.u32 2147483647, %v2619_v30  ;;  %vm800_vm4 = vweird.f32 %v2619_v30 }
 0x186   : > { %v793_v61 = vsel %vm790_vm15, %v792_v56, %v788_v49  ;;  %v755_v57 = vadd.f32 %v754_v1, %v753_v48  ;;  %v775_v23 = vadd.f32 %v774_v60, %v773_v3  ;;  %1450 = vmatpush.msra.mxu2 %v2265_v15  ;;  %v719_v7 = vrot.slane %v718_v11, 1 }
 0x187   : > { %v794_v10 = vmul.f32 %v793_v61, %v778_v58  ;;  %1469 = vmatpush.msra.mxu3 %v2261_v14  ;;  %v2107_v38 = vpop.eup %2106  ;;  %v829_v58 = vrot.slane %v2628_v34, 4 }
 0x188   : > { %v756_v31 = vrot.slane %v755_v57, 1  ;;  %v776_v62 = vrot.slane %v775_v23, 1  ;;  %1451 = vmatpush.msra.mxu2 %v2273_v17  ;;  %v796_v15 = vmul.f32 %v2107_v38, %v2619_v30  ;;  %v806_v17 = vand.u32 2147483648, %v2619_v30 }
 0x189   : > { %v810_v59 = vmul.f32 0.5, %v794_v10  ;;  %v820_v12 = vmul.f32 %v794_v10, %v2608_v52  ;;  %v834_v13 = vmul.f32 %v2611_v5, %v794_v10  ;;  %1470 = vmatpush.msra.mxu3 %v2267_v16  ;;  %2024 = vmatmul.msk.f32.vlgmr.msra.gmra.mxu2 %vm346_vm0, %v2022_v50  ;;  %v720_v35 = vadd.f32 %v719_v7, %v718_v11 }
 0x18a   : > { %v757_v14 = vadd.f32 %v756_v31, %v755_v57  ;;  %v777_v63 = vadd.f32 %v776_v62, %v775_v23  ;;  %v797_v20 = vsub.f32 1.0, %v796_v15  ;;  %vm801_vm1 = vweird.f32 %v2107_v38 }
 0x18b   : > { %v812_v53 = vmul.f32 %v810_v59, %v794_v10  ;;  %v822_v19 = vmul.f32 %v820_v12, %v2591_v43  ;;  %v2648_v24 = vadd.f32 %v834_v13, %v2608_v52  ;;  %1471 = vmatpush.msra.mxu3 %v2275_v18  ;;  %v828_v18 = vrot.slane %v2600_v25, 4  ;;  %vm802_vm5 = vmor %vm800_vm4, %vm801_vm1 }
 0x18c   : > { %2025 = vmatmul.msk.f32.vlgmr.msra.gmra.mxu3 %vm346_vm0, %v2022_v50  ;;  %v815_v33 = vsub.f32 %v777_v63, %v757_v14  ;;  %v798_v27 = vmul.f32 %v2107_v38, %v797_v20  ;;  %v807_v36 = vor.u32 1.1754944e-38, %v806_v17  ;;  %vm805_vm0 = vcmp.eq.f32.partialorder %v804_v42, 8.507059e+37 }
 0x18d   : > { %v816_v16 = vmul.f32 %v2611_v5, %v812_v53  ;;  %v779_v5 = vsub.f32 %v2415_v28, %v720_v35  ;;  %v1151_v42 = vperm.slane %v2415_v28, 4 }
 0x18e   : > { %v799_v52 = vadd.f32 %v2107_v38, %v798_v27 }
 0x18f   : > { %v818_v29 = vmul.f32 %v816_v16, %v2591_v43 }
 0x190   : > { %v803_v41 = vsel %vm802_vm5, %v2107_v38, %v799_v52 }
 0x191   : > { %v824_v51 = vadd.f32 %v822_v19, %v818_v29  ;;  %v808_v40 = vsel %vm805_vm0, %v807_v36, %v803_v41 }
 0x192   : > { %v809_v44 = vmul.f32 %v808_v40, %v779_v5 }
 0x193   : > { %v2659_v37 = vadd.f32 %v828_v18, %v824_v51  ;;  %v1365_v18 = vpop.permute.xlu1 %1364 }
 0x194   : > { %v811_v22 = vmul.f32 0.5, %v809_v44  ;;  %v821_v32 = vmul.f32 %v809_v44, %v757_v14  ;;  %v835_v48 = vmul.f32 %v815_v33, %v809_v44 }
 0x196   : > { %v813_v43 = vmul.f32 %v811_v22, %v809_v44  ;;  %v823_v2 = vmul.f32 %v821_v32, %v2619_v30  ;;  %v2662_v3 = vadd.f32 %v835_v48, %v757_v14  ;;  %v1370_v32 = vpop.permute.xlu2 %1369 }
 0x198   : > { %v817_v56 = vmul.f32 %v815_v33, %v813_v43  ;;  %v1150_v33 = vperm.slane %v2412_v26, 4 }
 0x19a   : > { %v819_v25 = vmul.f32 %v817_v56, %v2619_v30 }
 0x19c   : > { %v825_v1 = vadd.f32 %v823_v2, %v819_v25 }
 0x19e   : > { %v2666_v49 = vadd.f32 %v829_v58, %v825_v1 }
 0x1d7   : > { %v2668_v60 = vpop.f32.mrf.mxu0 }
 0x1d8   : > { %2108 = vrcp.f32 %v2668_v60  ;;  %v2671_v61 = vpop.f32.mrf.mxu1  ;;  %vm1081_vm6 = vweird.f32 %v2668_v60  ;;  %v1087_v30 = vand.u32 2147483648, %v2668_v60  ;;  %v1085_v50 = vand.u32 2147483647, %v2668_v60 }
 0x1d9   : > { %2110 = vrcp.f32 %v2671_v61  ;;  %v1102_v38 = vand.u32 2147483648, %v2671_v61  ;;  %vm1096_vm8 = vweird.f32 %v2671_v61  ;;  %v1100_v59 = vand.u32 2147483647, %v2671_v61 }
 0x1da   : > { %v1088_v13 = vor.u32 1.1754944e-38, %v1087_v30  ;;  %vm1086_vm12 = vcmp.eq.f32.partialorder %v1085_v50, 8.507059e+37 }
 0x1db   : > { %v1103_v14 = vor.u32 1.1754944e-38, %v1102_v38  ;;  %vm1101_vm14 = vcmp.eq.f32.partialorder %v1100_v59, 8.507059e+37 }
 0x1de   : > { %v2109_v11 = vpop.eup %2108 }
 0x1df   : > { %v2111_v57 = vpop.eup %2110  ;;  %v1077_v10 = vmul.f32 %v2109_v11, %v2668_v60  ;;  %vm1082_vm7 = vweird.f32 %v2109_v11  ;;  %v1395_v15 = vpop.f32.mrf.mxu0 }
 0x1e0   : > { %v1092_v34 = vmul.f32 %v2111_v57, %v2671_v61  ;;  %vm1097_vm9 = vweird.f32 %v2111_v57  ;;  %vm1083_vm10 = vmor %vm1081_vm6, %vm1082_vm7  ;;  %v1418_v19 = vpop.f32.mrf.mxu1  ;;  %v1396_v44 = vadd.f32 %v1395_v15, %v1365_v18 }
 0x1e1   : > { %v1078_v23 = vsub.f32 1.0, %v1077_v10  ;;  %vm1098_vm13 = vmor %vm1096_vm8, %vm1097_vm9  ;;  %v1419_v43 = vadd.f32 %v1418_v19, %v1365_v18 }
 0x1e2   : > { %v1093_v31 = vsub.f32 1.0, %v1092_v34 }
 0x1e3   : > { %v1079_v12 = vmul.f32 %v2109_v11, %v1078_v23  ;;  %v1478_v10 = vmul.f32 1.442695, %v1419_v43 }
 0x1e4   : > { %v1094_v62 = vmul.f32 %v2111_v57, %v1093_v31 }
 0x1e5   : > { %v1080_v7 = vadd.f32 %v2109_v11, %v1079_v12 }
 0x1e6   : > { %v1095_v53 = vadd.f32 %v2111_v57, %v1094_v62 }
 0x1e7   : > { %v1084_v63 = vsel %vm1083_vm10, %v2109_v11, %v1080_v7  ;;  %v1398_v41 = vpop.f32.mrf.mxu0  ;;  %v1476_v11 = vmul.f32 1.442695, %v1396_v44 }
 0x1e8   : > { %v1089_v20 = vsel %vm1086_vm12, %v1088_v13, %v1084_v63  ;;  %v1099_v16 = vsel %vm1098_vm13, %v2111_v57, %v1095_v53  ;;  %v1421_v22 = vpop.f32.mrf.mxu1  ;;  %v1399_v56 = vadd.f32 %v1398_v41, %v1370_v32 }
 0x1e9   : > { %v1106_v17 = vperm.slane %v1089_v20, 7  ;;  %v1104_v35 = vsel %vm1101_vm14, %v1103_v14, %v1099_v16  ;;  %v1422_v1 = vadd.f32 %v1421_v22, %v1370_v32  ;;  %2112 = vpow2.f32 %v1476_v11 }
 0x1ea   : > { %v1107_v27 = vperm.slane %v1104_v35, 7  ;;  %v1480_v34 = vmul.f32 1.442695, %v1399_v56  ;;  %2114 = vpow2.f32 %v1478_v10 }
 0x1eb   : > { %v1110_v29 = vmul.f32 %v1106_v17, %v2668_v60  ;;  %v1482_v23 = vmul.f32 1.442695, %v1422_v1  ;;  %v1108_v13 = vmul.f32 %v2502_v4, %v1106_v17 }
 0x1ec   : > { %v1111_v52 = vmul.f32 %v1107_v27, %v2671_v61  ;;  %2116 = vpow2.f32 %v1480_v34  ;;  %v1109_v4 = vmul.f32 %v2504_v8, %v1107_v27 }
 0x1ed   : > { %vm1152_vm15 = vcmp.le.f32.partialorder %v1110_v29, %v1150_v33  ;;  %2118 = vpow2.f32 %v1482_v23 }
 0x1ee   : > { %v1154_v51 = vsel %vm1152_vm15, 1, %v2170_v9  ;;  %vm1153_vm1 = vcmp.le.f32.partialorder %v1111_v52, %v1151_v42 }
 0x1ef   : > { %v1156_v36 = vrot.slane %v1154_v51, 4  ;;  %v1155_v5 = vsel %vm1153_vm1, 1, %v2170_v9  ;;  %v2691_v62 = vpop.eup %2112 }
 0x1f0   : > { %v1162_v40 = vrot.slane %v1155_v5, 4  ;;  %v2697_v53 = vpop.eup %2114  ;;  %v1492_v44 = vrot.slane %v2691_v62, 1 }
 0x1f1   : > { %v1157_v48 = vadd.s32 %v1156_v36, %v1154_v51  ;;  %v1495_v22 = vrot.slane %v2697_v53, 1 }
 0x1f2   : > { %v1163_v2 = vadd.s32 %v1162_v40, %v1155_v5  ;;  %v2700_v20 = vpop.eup %2116 }
 0x1f3   : > { %v1158_v25 = vrot.slane %v1157_v48, 2  ;;  %v2705_v17 = vpop.eup %2118  ;;  %v1493_v8 = vrot.slane %v2700_v20, 1 }
 0x1f4   : > { %v1164_v58 = vrot.slane %v1163_v2, 2  ;;  %v1496_v41 = vrot.slane %v2705_v17, 1 }
 0x1f5   : > { %v1159_v57 = vadd.s32 %v1158_v25, %v1157_v48 }
 0x1f6   : > { %v1165_v30 = vadd.s32 %v1164_v58, %v1163_v2 }
 0x1f7   : > { %v1160_v50 = vrot.slane %v1159_v57, 1 }
 0x1f8   : > { %v1166_v38 = vrot.slane %v1165_v30, 1 }
 0x1f9   : > { %v1161_v31 = vadd.s32 %v1160_v50, %v1159_v57 }
 0x1fa   : > { %v1167_v59 = vadd.s32 %v1166_v38, %v1165_v30 }
 0x1fb   : > { %vm1168_vm4 = vcmp.lt.s32.totalorder %v1161_v31, 7 }
 0x1fc   : > { %v1169_v12 = vsel %vm1168_vm4, %v1161_v31, 7  ;;  %vm1170_vm5 = vcmp.lt.s32.totalorder %v1167_v59, 7 }
 0x1fd   : > { %vm1172_vm0 = vcmp.eq.s32.totalorder %v2315_v45, %v1169_v12  ;;  %vm1178_vm6 = vcmp.eq.s32.totalorder %v2531_v0, %v1169_v12  ;;  %v1171_v15 = vsel %vm1170_vm5, %v1167_v59, 7  ;;  %v1190_v16 = vadd.s32 1, %v1169_v12 }
 0x1fe   : > { %v2694_v7 = vsel %vm1172_vm0, 1.0, %v2171_v54  ;;  %v2006_v14 = vsel %vm1178_vm6, 1.0, %v2171_v54  ;;  %vm1173_vm7 = vcmp.eq.s32.totalorder %v2315_v45, %v1171_v15  ;;  %vm1179_vm8 = vcmp.eq.s32.totalorder %v2531_v0, %v1171_v15 }
 0x1ff   : > { %v1204_v19 = vmul.f32 %v2694_v7, %v1108_v13  ;;  %v1218_v63 = vmul.f32 %v2006_v14, %v1110_v29  ;;  %v2708_v42 = vsel %vm1173_vm7, 1.0, %v2171_v54  ;;  %v2007_v51 = vsel %vm1179_vm8, 1.0, %v2171_v54 }
 0x200   : > { %vm1184_vm9 = vcmp.eq.s32.totalorder %v2528_v47, %v1169_v12  ;;  %v1205_v29 = vmul.f32 %v2708_v42, %v1109_v4  ;;  %v1219_v18 = vmul.f32 %v2007_v51, %v1111_v52  ;;  %v1191_v5 = vadd.s32 1, %v1171_v15 }
 0x201   : > { %v1206_v33 = vrot.slane %v1204_v19, 4  ;;  %v1220_v35 = vrot.slane %v1218_v63, 4  ;;  %vm1192_vm10 = vcmp.eq.s32.totalorder %v2315_v45, %v1190_v16  ;;  %v2722_v32 = vsel %vm1184_vm9, 1.0, %v2171_v54 }
 0x202   : > { %v1212_v52 = vrot.slane %v1205_v29, 4  ;;  %v1226_v48 = vrot.slane %v1219_v18, 4  ;;  %vm1194_vm12 = vcmp.eq.s32.totalorder %v2528_v47, %v1190_v16  ;;  %v2729_v1 = vsel %vm1192_vm10, 1.0, %v2171_v54 }
 0x203   : > { %v1207_v27 = vadd.f32 %v1206_v33, %v1204_v19  ;;  %v1221_v36 = vadd.f32 %v1220_v35, %v1218_v63  ;;  %vm1185_vm13 = vcmp.eq.s32.totalorder %v2528_v47, %v1171_v15  ;;  %vm1193_vm14 = vcmp.eq.s32.totalorder %v2315_v45, %v1191_v5 }
 0x204   : > { %v2715_v40 = vpop.f32.mrf.mxu2  ;;  %v2737_v30 = vsel %vm1194_vm12, 1.0, %v2171_v54  ;;  %v1213_v23 = vadd.f32 %v1212_v52, %v1205_v29  ;;  %v1227_v50 = vadd.f32 %v1226_v48, %v1219_v18  ;;  %v2740_v59 = vsel %vm1185_vm13, 1.0, %v2171_v54 }
 0x205   : > { %2120 = vrcp.f32 %v2715_v40  ;;  %v1208_v43 = vrot.slane %v1207_v27, 2  ;;  %v1222_v2 = vrot.slane %v1221_v36, 2  ;;  %v1232_v56 = vmul.f32 %v2006_v14, %v2715_v40 }
 0x206   : > { %v1121_v58 = vand.u32 2147483647, %v2715_v40  ;;  %v1123_v11 = vand.u32 2147483648, %v2715_v40  ;;  %v2743_v12 = vsel %vm465_vm3, %v1492_v44, %v1493_v8  ;;  %vm1117_vm15 = vweird.f32 %v2715_v40 }
 0x207   : > { %v2726_v25 = vpop.f32.mrf.mxu3  ;;  %v1209_v57 = vadd.f32 %v1208_v43, %v1207_v27  ;;  %v1234_v10 = vrot.slane %v1232_v56, 4  ;;  %v1223_v34 = vadd.f32 %v1222_v2, %v1221_v36  ;;  %vm1195_vm1 = vcmp.eq.s32.totalorder %v2528_v47, %v1191_v5 }
 0x208   : > { %2122 = vrcp.f32 %v2726_v25  ;;  %v2750_v14 = vsel %vm1193_vm14, 1.0, %v2171_v54  ;;  %v1214_v15 = vrot.slane %v1213_v23, 2  ;;  %vm2753_vm4 = vcmp.eq.f32.partialorder %v1121_v58, 8.507059e+37 }
 0x209   : > { %v1210_v38 = vrot.slane %v1209_v57, 1  ;;  %v1235_v31 = vadd.f32 %v1234_v10, %v1232_v56  ;;  %v1124_v4 = vor.u32 1.1754944e-38, %v1123_v11  ;;  %v1228_v33 = vrot.slane %v1227_v50, 2 }
 0x20a   : > { %v1224_v29 = vrot.slane %v1223_v34, 1  ;;  %v1215_v8 = vadd.f32 %v1214_v15, %v1213_v23  ;;  %v1233_v27 = vmul.f32 %v2007_v51, %v2726_v25  ;;  %v1136_v44 = vand.u32 2147483647, %v2726_v25 }
 0x20b   : > { %v2121_v13 = vpop.eup %2120  ;;  %v2757_v16 = vadd.f32 %v1210_v38, %v1209_v57  ;;  %v1236_v18 = vrot.slane %v1235_v31, 2  ;;  %v1138_v52 = vand.u32 2147483648, %v2726_v25  ;;  %vm1132_vm5 = vweird.f32 %v2726_v25 }
 0x20c   : > { %v1113_v19 = vmul.f32 %v2121_v13, %v2715_v40  ;;  %v2768_v2 = vsel %vm1195_vm1, 1.0, %v2171_v54  ;;  %vm1118_vm0 = vweird.f32 %v2121_v13  ;;  %v1216_v51 = vrot.slane %v1215_v8, 1 }
 0x20d   : > { %2124 = vrcp.f32 %v2757_v16  ;;  %v1237_v48 = vadd.f32 %v1236_v18, %v1235_v31  ;;  %v1229_v58 = vadd.f32 %v1228_v33, %v1227_v50  ;;  %v2770_v11 = vadd.f32 %v1224_v29, %v1223_v34  ;;  %vm1119_vm7 = vmor %vm1117_vm15, %vm1118_vm0 }
 0x20e   : > { %v2123_v35 = vpop.eup %2122  ;;  %v1114_v36 = vsub.f32 1.0, %v1113_v19  ;;  %v1240_v23 = vrot.slane %v1233_v27, 4  ;;  %vm2772_vm6 = vcmp.eq.f32.partialorder %v1136_v44, 8.507059e+37  ;;  %v1139_v15 = vor.u32 1.1754944e-38, %v1138_v52  ;;  %v1453_v44 = vpop.f32.mrf.mxu2 }
 0x20f   : > { %v1128_v43 = vmul.f32 %v2123_v35, %v2726_v25  ;;  %v1238_v57 = vrot.slane %v1237_v48, 1  ;;  %v2776_v19 = vadd.f32 %v1216_v51, %v1215_v8  ;;  %v1299_v18 = vand.u32 2147483647, %v2757_v16 }
 0x210   : > { %v1115_v56 = vmul.f32 %v2121_v13, %v1114_v36  ;;  %v1301_v34 = vand.u32 2147483648, %v2757_v16  ;;  %vm1133_vm8 = vweird.f32 %v2123_v35  ;;  %v1230_v36 = vrot.slane %v1229_v58, 1 }
 0x211   : > { %v1129_v10 = vsub.f32 1.0, %v1128_v43  ;;  %v1239_v5 = vadd.f32 %v1238_v57, %v1237_v48  ;;  %2126 = vrcp.f32 %v2776_v19  ;;  %v1288_v40 = vsub.f32 %v2412_v26, %v2770_v11  ;;  %v1473_v43 = vpop.f32.mrf.mxu3  ;;  %vm1134_vm12 = vmor %vm1132_vm5, %vm1133_vm8 }
 0x212   : > { %v1116_v38 = vadd.f32 %v2121_v13, %v1115_v56  ;;  %v2788_v48 = vadd.f32 %v1240_v23, %v1233_v27  ;;  %v1431_v56 = vpop.permute.xlu0 %1430  ;;  %vm1295_vm9 = vweird.f32 %v2757_v16  ;;  %vm2794_vm10 = vcmp.eq.f32.partialorder %v1299_v18, 8.507059e+37 }
 0x213   : > { %v1130_v50 = vmul.f32 %v2123_v35, %v1129_v10  ;;  %v2125_v33 = vpop.eup %2124  ;;  %v1454_v27 = vadd.f32 %v1453_v44, %v1431_v56  ;;  %vm1310_vm14 = vweird.f32 %v2776_v19  ;;  %vm1869_vm0 = vcmask 1043456  }
 0x214   : > { %v1120_v29 = vsel %vm1119_vm7, %v2121_v13, %v1116_v38  ;;  %v1291_v52 = vmul.f32 %v2125_v33, %v2757_v16  ;;  %v2801_v38 = vadd.f32 %v1230_v36, %v1229_v58  ;;  %vm1296_vm13 = vweird.f32 %v2125_v33 }
 0x215   : > { %v1125_v8 = vsel %vm2753_vm4, %v1124_v4, %v1120_v29  ;;  %v1131_v57 = vadd.f32 %v2123_v35, %v1130_v50  ;;  %v1302_v4 = vor.u32 1.1754944e-38, %v1301_v34  ;;  %v1242_v18 = vrot.slane %v2788_v48, 2  ;;  %vm1297_vm15 = vmor %vm1295_vm9, %vm1296_vm13 }
 0x216   : > { %v1142_v51 = vmul.f32 %v1125_v8, %v2668_v60  ;;  %v2791_v13 = vmul.f32 %v1239_v5, %v1125_v8  ;;  %v1292_v10 = vsub.f32 1.0, %v1291_v52  ;;  %v1474_v60 = vadd.f32 %v1473_v43, %v1431_v56 }
 0x217   : > { %v1135_v23 = vsel %vm1134_vm12, %v2123_v35, %v1131_v57  ;;  %v2127_v29 = vpop.eup %2126  ;;  %v1314_v36 = vand.u32 2147483647, %v2776_v19  ;;  %v1484_v31 = vmul.f32 1.442695, %v1454_v27  ;;  %v1316_v56 = vand.u32 2147483648, %v2776_v19 }
 0x218   : > { %v1144_v11 = vperm.slane %v1142_v51, 7  ;;  %v1293_v5 = vmul.f32 %v2125_v33, %v1292_v10  ;;  %v2805_v50 = vsel %vm2772_vm6, %v1139_v15, %v1135_v23  ;;  %v1306_v58 = vmul.f32 %v2127_v29, %v2776_v19 }
 0x219   : > { %v1143_v44 = vmul.f32 %v2805_v50, %v2671_v61  ;;  %2128 = vpow2.f32 %v1484_v31  ;;  %vm2828_vm1 = vcmp.eq.f32.partialorder %v1314_v36, 8.507059e+37  ;;  %vm1311_vm4 = vweird.f32 %v2127_v29 }
 0x21a   : > { %v1146_v34 = vmul.f32 %v2522_v39, %v1144_v11  ;;  %v1148_v25 = vmul.f32 %v2525_v46, %v1144_v11  ;;  %v1294_v35 = vadd.f32 %v2125_v33, %v1293_v5  ;;  %v1307_v43 = vsub.f32 1.0, %v1306_v58  ;;  %vm1312_vm5 = vmor %vm1310_vm14, %vm1311_vm4 }
 0x21b   : > { %v1145_v61 = vperm.slane %v1143_v44, 7  ;;  %v1486_v11 = vmul.f32 1.442695, %v1474_v60 }
 0x21c   : > { %v1248_v15 = vmul.f32 %v2694_v7, %v1146_v34  ;;  %v1250_v8 = vmul.f32 %v2722_v32, %v1148_v25  ;;  %v1268_v52 = vmul.f32 %v2729_v1, %v1146_v34  ;;  %v1270_v39 = vmul.f32 %v2737_v30, %v1148_v25 }
 0x21d   : > { %v1298_v46 = vsel %vm1297_vm15, %v2125_v33, %v1294_v35  ;;  %v1147_v30 = vmul.f32 %v2561_v6, %v1145_v61  ;;  %v1149_v33 = vmul.f32 %v2566_v21, %v1145_v61  ;;  %v1308_v27 = vmul.f32 %v2127_v29, %v1307_v43 }
 0x21e   : > { %v1252_v51 = vsel %vm741_vm11, %v1250_v8, 0.0  ;;  %v1272_v57 = vsel %vm741_vm11, %v1270_v39, 0.0  ;;  %v1303_v7 = vsel %vm2794_vm10, %v1302_v4, %v1298_v46  ;;  %v1317_v21 = vor.u32 1.1754944e-38, %v1316_v56 }
 0x21f   : > { %v1253_v32 = vadd.f32 %v1252_v51, %v1248_v15  ;;  %v1273_v1 = vadd.f32 %v1272_v57, %v1268_v52  ;;  %v1304_v34 = vmul.f32 %v1303_v7, %v1288_v40  ;;  %v1249_v63 = vmul.f32 %v2708_v42, %v1147_v30  ;;  %v2839_v60 = vpop.eup %2128 }
 0x220   : > { %v1251_v4 = vmul.f32 %v2740_v59, %v1149_v33  ;;  %v1269_v25 = vmul.f32 %v2750_v14, %v1147_v30  ;;  %v1271_v6 = vmul.f32 %v2768_v2, %v1149_v33  ;;  %v1309_v44 = vadd.f32 %v2127_v29, %v1308_v27  ;;  %1521 = vmatpush.msrb.mxu2 %v2839_v60 }
 0x221   : > { %v1254_v23 = vrot.slane %v1253_v32, 4  ;;  %v1274_v5 = vrot.slane %v1273_v1, 4  ;;  %2130 = vpow2.f32 %v1486_v11  ;;  %v1500_v59 = vadd.f32 %v2691_v62, %v2743_v12  ;;  %2026 = vmatmul.msk.f32.vlgmr.msrb.gmra.mxu2 %vm480_vm2, %v2326_v55 }
 0x222   : > { %v1260_v40 = vsel %vm741_vm11, %v1251_v4, 0.0  ;;  %v1280_v42 = vsel %vm741_vm11, %v1271_v6, 0.0  ;;  %v1313_v36 = vsel %vm1312_vm5, %v2127_v29, %v1309_v44  ;;  %v1320_v8 = vmul.f32 0.5, %v1304_v34 }
 0x223   : > { %v1255_v35 = vadd.f32 %v1254_v23, %v1253_v32  ;;  %v1275_v58 = vadd.f32 %v1274_v5, %v1273_v1  ;;  %v1261_v31 = vadd.f32 %v1260_v40, %v1249_v63  ;;  %v1281_v15 = vadd.f32 %v1280_v42, %v1269_v25 }
 0x224   : > { %v1318_v52 = vsel %vm2828_vm1, %v1317_v21, %v1313_v36  ;;  %v1502_v39 = vmul.f32 0.5, %v1500_v59  ;;  %v1497_v12 = vsel %vm465_vm3, %v1495_v22, %v1496_v41  ;;  %v1289_v56 = vsub.f32 %v2415_v28, %v2801_v38 }
 0x225   : > { %v1256_v14 = vrot.slane %v1255_v35, 2  ;;  %v1276_v2 = vrot.slane %v1275_v58, 2  ;;  %v1262_v61 = vrot.slane %v1261_v31, 4  ;;  %v1282_v43 = vrot.slane %v1281_v15, 4 }
 0x226   : > { %v1504_v51 = vmul.f32 %v2839_v60, %v1502_v39  ;;  %v1501_v57 = vadd.f32 %v2697_v53, %v1497_v12  ;;  %v1322_v33 = vmul.f32 %v1320_v8, %v1304_v34  ;;  %v1243_v41 = vadd.f32 %v1242_v18, %v2788_v48  ;;  %v2144_v8 = vld [vmem:[%s2400_s11] sm:$0x7f] }
 0x227   : > { %v1257_v29 = vadd.f32 %v1256_v14, %v1255_v35  ;;  %v1277_v46 = vadd.f32 %v1276_v2, %v1275_v58  ;;  %v2859_v7 = vpop.eup %2130  ;;  %v1263_v30 = vadd.f32 %v1262_v61, %v1261_v31  ;;  %v1283_v10 = vadd.f32 %v1282_v43, %v1281_v15 }
 0x228   : > { %v1319_v22 = vmul.f32 %v1318_v52, %v1289_v56  ;;  %1541 = vmatpush.msrb.mxu3 %v2859_v7  ;;  %1561 = vmatpush.msrb.mxu0 %v1504_v51  ;;  %v1503_v38 = vmul.f32 0.5, %v1501_v57  ;;  %v840_v6 = vrot.slane %v2648_v24, 5  ;;  %v1244_v44 = vrot.slane %v1243_v41, 1 }
 0x229   : > { %v1258_v32 = vrot.slane %v1257_v29, 1  ;;  %v1278_v1 = vrot.slane %v1277_v46, 1  ;;  %v1264_v23 = vrot.slane %v1263_v30, 2  ;;  %v1284_v5 = vrot.slane %v1283_v10, 2  ;;  %2027 = vmatmul.msk.f32.vlgmr.msrb.gmra.mxu3 %vm480_vm2, %v2326_v55  ;;  %2028 = vmatmul.msk.f32.vlgmr.msrb.gmra.mxu0 %vm480_vm2, %v2326_v55 }
 0x22a   : > { %v1505_v63 = vmul.f32 %v2859_v7, %v1503_v38  ;;  %v1321_v35 = vmul.f32 0.5, %v1319_v22  ;;  %vm1866_vm3 = vcmask 1042432   ;;  %v1245_v31 = vadd.f32 %v1244_v44, %v1243_v41 }
 0x22b   : > { %v1259_v27 = vadd.f32 %v1258_v32, %v1257_v29  ;;  %v1279_v11 = vadd.f32 %v1278_v1, %v1277_v46  ;;  %v1265_v48 = vadd.f32 %v1264_v23, %v1263_v30  ;;  %v1285_v18 = vadd.f32 %v1284_v5, %v1283_v10  ;;  %v2145_v10 = vld [vmem:[%s2400_s11 + $0x8] sm:$0x7f] }
 0x22c   : > { %1581 = vmatpush.msrb.mxu1 %v1505_v63  ;;  %v1323_v15 = vmul.f32 %v1321_v35, %v1319_v22  ;;  %v844_v52 = vmul.f32 %v2144_v8, %v840_v6  ;;  %v1338_v12 = vrot.slane %v2791_v13, 3  ;;  %v841_v43 = vrot.slane %v2662_v3, 5 }
 0x22d   : > { %v1324_v4 = vsub.f32 %v1279_v11, %v1259_v27  ;;  %v1330_v25 = vmul.f32 %v1304_v34, %v1259_v27  ;;  %v1266_v42 = vrot.slane %v1265_v48, 1  ;;  %2029 = vmatmul.msk.f32.vlgmr.msrb.gmra.mxu1 %vm480_vm2, %v2326_v55  ;;  %v1286_v36 = vrot.slane %v1285_v18, 1 }
 0x22e   : > { %v1867_v55 = vsel %vm1866_vm3, %v2144_v8, %v2659_v37  ;;  %v1247_v56 = vmul.f32 %v1245_v31, %v2805_v50  ;;  %v1868_v3 = vsel %vm1866_vm3, %v2145_v10, %v2666_v49 }
 0x22f   : > { %v1326_v58 = vmul.f32 %v1324_v4, %v1322_v33  ;;  %v1332_v21 = vmul.f32 %v1330_v25, %v2757_v16  ;;  %v1344_v40 = vmul.f32 %v1324_v4, %v1304_v34  ;;  %v1267_v2 = vadd.f32 %v1266_v42, %v1265_v48 }
 0x230   : > { %v1287_v24 = vadd.f32 %v1286_v36, %v1285_v18  ;;  %v845_v33 = vmul.f32 %v2145_v10, %v841_v43  ;;  %v1339_v41 = vrot.slane %v1247_v56, 3 }
 0x231   : > { %v1328_v59 = vmul.f32 %v1326_v58, %v2757_v16  ;;  %v1346_v14 = vadd.f32 %v1344_v40, %v1259_v27  ;;  %v1331_v46 = vmul.f32 %v1319_v22, %v1267_v2 }
 0x232   : > { %v1325_v29 = vsub.f32 %v1287_v24, %v1267_v2 }
 0x233   : > { %v1334_v39 = vadd.f32 %v1332_v21, %v1328_v59  ;;  %v1350_v34 = vrot.slane %v1346_v14, 6  ;;  %v1333_v1 = vmul.f32 %v1331_v46, %v2776_v19 }
 0x234   : > { %v1327_v51 = vmul.f32 %v1325_v29, %v1323_v15  ;;  %v1345_v57 = vmul.f32 %v1325_v29, %v1319_v22 }
 0x235   : > { %v1342_v16 = vadd.f32 %v1338_v12, %v1334_v39  ;;  %v2879_v61 = vmul.f32 %v1350_v34, %v844_v52  ;;  %v1660_v39 = vperm.slane %v2412_v26, 5 }
 0x236   : > { %v1329_v13 = vmul.f32 %v1327_v51, %v2776_v19  ;;  %v1347_v30 = vadd.f32 %v1345_v57, %v1267_v2 }
 0x237   : > { %v2884_v32 = vsel %vm1869_vm0, %v1867_v55, %v1342_v16 }
 0x238   : > { %v1335_v37 = vadd.f32 %v1333_v1, %v1329_v13  ;;  %v1351_v38 = vrot.slane %v1347_v30, 6  ;;  %v1661_v13 = vperm.slane %v2415_v28, 5 }
 0x23a   : > { %v1343_v27 = vadd.f32 %v1339_v41, %v1335_v37  ;;  %v2889_v11 = vmul.f32 %v1351_v38, %v845_v33 }
 0x23c   : > { %v2894_v50 = vsel %vm1869_vm0, %v1868_v3, %v1343_v27 }
 0x2a4   : > { %v2899_v19 = vpop.f32.mrf.mxu2 }
 0x2a5   : > { %v1597_v18 = vand.u32 2147483648, %v2899_v19  ;;  %v1595_v58 = vand.u32 2147483647, %v2899_v19  ;;  %vm1591_vm7 = vweird.f32 %v2899_v19 }
 0x2a6   : > { %v2896_v22 = vpop.f32.mrf.mxu0 }
 0x2a7   : > { %2132 = vrcp.f32 %v2896_v22  ;;  %vm1627_vm6 = vweird.f32 %v2896_v22  ;;  %v1598_v36 = vor.u32 1.1754944e-38, %v1597_v18  ;;  %vm1596_vm10 = vcmp.eq.f32.partialorder %v1595_v58, 8.507059e+37 }
 0x2a8   : > { %2134 = vrcp.f32 %v2899_v19  ;;  %v1633_v8 = vand.u32 2147483648, %v2896_v22  ;;  %v1631_v29 = vand.u32 2147483647, %v2896_v22 }
 0x2aa   : > { %v2908_v44 = vpop.f32.mrf.mxu1  ;;  %v1634_v51 = vor.u32 1.1754944e-38, %v1633_v8  ;;  %vm1632_vm5 = vcmp.eq.f32.partialorder %v1631_v29, 8.507059e+37 }
 0x2ab   : > { %vm1642_vm0 = vweird.f32 %v2908_v44 }
 0x2ac   : > { %v2902_v23 = vpop.f32.mrf.mxu3 }
 0x2ad   : > { %v2133_v5 = vpop.eup %2132  ;;  %2136 = vrcp.f32 %v2902_v23  ;;  %v1612_v2 = vand.u32 2147483648, %v2902_v23  ;;  %v1610_v15 = vand.u32 2147483647, %v2902_v23  ;;  %vm1606_vm14 = vweird.f32 %v2902_v23 }
 0x2ae   : > { %v2135_v63 = vpop.eup %2134  ;;  %v1623_v4 = vmul.f32 %v2133_v5, %v2896_v22  ;;  %2138 = vrcp.f32 %v2908_v44  ;;  %vm1628_vm9 = vweird.f32 %v2133_v5 }
 0x2af   : > { %v1587_v49 = vmul.f32 %v2135_v63, %v2899_v19  ;;  %vm1592_vm2 = vweird.f32 %v2135_v63  ;;  %vm2921_vm13 = vmor %vm1627_vm6, %vm1628_vm9  ;;  %v1613_v16 = vor.u32 1.1754944e-38, %v1612_v2  ;;  %vm1611_vm1 = vcmp.eq.f32.partialorder %v1610_v15, 8.507059e+37 }
 0x2b0   : > { %v1624_v48 = vsub.f32 1.0, %v1623_v4  ;;  %vm1593_vm8 = vmor %vm1591_vm7, %vm1592_vm2 }
 0x2b1   : > { %v1588_v25 = vsub.f32 1.0, %v1587_v49 }
 0x2b2   : > { %v1625_v42 = vmul.f32 %v2133_v5, %v1624_v48  ;;  %v1646_v48 = vand.u32 2147483647, %v2908_v44 }
 0x2b3   : > { %v2137_v6 = vpop.eup %2136  ;;  %v1589_v35 = vmul.f32 %v2135_v63, %v1588_v25 }
 0x2b4   : > { %v1602_v21 = vmul.f32 %v2137_v6, %v2902_v23  ;;  %vm1607_vm12 = vweird.f32 %v2137_v6  ;;  %v1626_v12 = vadd.f32 %v2133_v5, %v1625_v42  ;;  %v2928_v43 = vpop.eup %2138  ;;  %vm2955_vm6 = vcmp.eq.f32.partialorder %v1646_v48, 8.507059e+37 }
 0x2b5   : > { %v1590_v40 = vadd.f32 %v2135_v63, %v1589_v35  ;;  %vm1608_vm15 = vmor %vm1606_vm14, %vm1607_vm12  ;;  %v1638_v33 = vmul.f32 %v2928_v43, %v2908_v44  ;;  %v1648_v35 = vand.u32 2147483648, %v2908_v44  ;;  %vm1643_vm2 = vweird.f32 %v2928_v43 }
 0x2b6   : > { %v1603_v59 = vsub.f32 1.0, %v1602_v21  ;;  %v1630_v1 = vsel %vm2921_vm13, %v2133_v5, %v1626_v12 }
 0x2b7   : > { %v1594_v14 = vsel %vm1593_vm8, %v2135_v63, %v1590_v40  ;;  %v2944_v38 = vsel %vm1632_vm5, %v1634_v51, %v1630_v1  ;;  %v1639_v3 = vsub.f32 1.0, %v1638_v33  ;;  %vm2963_vm8 = vmor %vm1642_vm0, %vm1643_vm2 }
 0x2b8   : > { %v1599_v31 = vsel %vm1596_vm10, %v1598_v36, %v1594_v14  ;;  %v1604_v24 = vmul.f32 %v2137_v6, %v1603_v59  ;;  %v1652_v4 = vmul.f32 %v2944_v38, %v2899_v19  ;;  %v1649_v59 = vor.u32 1.1754944e-38, %v1648_v35 }
 0x2b9   : > { %v1616_v52 = vperm.slane %v1599_v31, 7 }
 0x2ba   : > { %v1605_v46 = vadd.f32 %v2137_v6, %v1604_v24  ;;  %v1654_v21 = vperm.slane %v1652_v4, 7 }
 0x2bb   : > { %v1620_v55 = vmul.f32 %v1616_v52, %v2899_v19  ;;  %v1618_v14 = vmul.f32 %v2839_v60, %v1616_v52 }
 0x2bc   : > { %v1609_v56 = vsel %vm1608_vm15, %v2137_v6, %v1605_v46  ;;  %v1640_v6 = vmul.f32 %v2928_v43, %v1639_v3  ;;  %v1656_v2 = vmul.f32 %v2691_v62, %v1654_v21  ;;  %v1658_v31 = vmul.f32 %v2700_v20, %v1654_v21 }
 0x2bd   : > { %vm1662_vm4 = vcmp.le.f32.partialorder %v1620_v55, %v1660_v39  ;;  %v2930_v57 = vsel %vm1611_vm1, %v1613_v16, %v1609_v56 }
 0x2be   : > { %v1664_v30 = vsel %vm1662_vm4, 1, %v2170_v9  ;;  %v1617_v10 = vperm.slane %v2930_v57, 7  ;;  %v1641_v36 = vadd.f32 %v2928_v43, %v1640_v6 }
 0x2bf   : > { %v1666_v37 = vrot.slane %v1664_v30, 4 }
 0x2c0   : > { %v2942_v41 = vmul.f32 %v1617_v10, %v2902_v23  ;;  %v1645_v29 = vsel %vm2963_vm8, %v2928_v43, %v1641_v36  ;;  %v1619_v21 = vmul.f32 %v2859_v7, %v1617_v10 }
 0x2c1   : > { %v1667_v27 = vadd.s32 %v1666_v37, %v1664_v30 }
 0x2c2   : > { %vm1663_vm3 = vcmp.le.f32.partialorder %v2942_v41, %v1661_v13 }
 0x2c3   : > { %v1668_v5 = vrot.slane %v1667_v27, 2  ;;  %v1665_v63 = vsel %vm1663_vm3, 1, %v2170_v9 }
 0x2c4   : > { %v1672_v49 = vrot.slane %v1665_v63, 4 }
 0x2c5   : > { %v1669_v25 = vadd.s32 %v1668_v5, %v1667_v27 }
 0x2c6   : > { %v1673_v18 = vadd.s32 %v1672_v49, %v1665_v63 }
 0x2c7   : > { %v1670_v58 = vrot.slane %v1669_v25, 1 }
 0x2c8   : > { %v1674_v40 = vrot.slane %v1673_v18, 2 }
 0x2c9   : > { %v1671_v42 = vadd.s32 %v1670_v58, %v1669_v25 }
 0x2ca   : > { %v1675_v19 = vadd.s32 %v1674_v40, %v1673_v18 }
 0x2cb   : > { %vm1678_vm7 = vcmp.lt.s32.totalorder %v1671_v42, 7 }
 0x2cc   : > { %v1679_v24 = vsel %vm1678_vm7, %v1671_v42, 7  ;;  %v1676_v15 = vrot.slane %v1675_v19, 1 }
 0x2cd   : > { %vm1682_vm9 = vcmp.eq.s32.totalorder %v2315_v45, %v1679_v24  ;;  %vm1688_vm10 = vcmp.eq.s32.totalorder %v2531_v0, %v1679_v24  ;;  %vm1694_vm12 = vcmp.eq.s32.totalorder %v2528_v47, %v1679_v24  ;;  %v1700_v39 = vadd.s32 1, %v1679_v24 }
 0x2ce   : > { %v2030_v60 = vsel %vm1682_vm9, 1.0, %v2171_v54  ;;  %v2032_v52 = vsel %vm1688_vm10, 1.0, %v2171_v54  ;;  %v2034_v62 = vsel %vm1694_vm12, 1.0, %v2171_v54  ;;  %v1677_v20 = vadd.s32 %v1676_v15, %v1675_v19 }
 0x2cf   : > { %vm1702_vm13 = vcmp.eq.s32.totalorder %v2315_v45, %v1700_v39  ;;  %vm1704_vm14 = vcmp.eq.s32.totalorder %v2528_v47, %v1700_v39  ;;  %v1714_v12 = vmul.f32 %v2030_v60, %v1618_v14  ;;  %v1728_v34 = vmul.f32 %v2032_v52, %v1620_v55 }
 0x2d0   : > { %v2036_v46 = vsel %vm1702_vm13, 1.0, %v2171_v54  ;;  %v2038_v16 = vsel %vm1704_vm14, 1.0, %v2171_v54  ;;  %v1758_v56 = vmul.f32 %v2030_v60, %v1656_v2  ;;  %v1760_v1 = vmul.f32 %v2034_v62, %v1658_v31 }
 0x2d1   : > { %v1716_v51 = vrot.slane %v1714_v12, 4  ;;  %v1730_v13 = vrot.slane %v1728_v34, 4  ;;  %v1778_v30 = vmul.f32 %v2036_v46, %v1656_v2  ;;  %v1780_v33 = vmul.f32 %v2038_v16, %v1658_v31 }
 0x2d2   : > { %vm1680_vm15 = vcmp.lt.s32.totalorder %v1677_v20, 7  ;;  %v1762_v27 = vsel %vm741_vm11, %v1760_v1, 0.0  ;;  %v2983_v55 = vsel %vm2955_vm6, %v1649_v59, %v1645_v29  ;;  %v1742_v43 = vmul.f32 %v2032_v52, %v2896_v22 }
 0x2d3   : > { %v1717_v37 = vadd.f32 %v1716_v51, %v1714_v12  ;;  %v1681_v3 = vsel %vm1680_vm15, %v1677_v20, 7  ;;  %v1763_v5 = vadd.f32 %v1762_v27, %v1758_v56  ;;  %v1782_v63 = vsel %vm741_vm11, %v1780_v33, 0.0 }
 0x2d4   : > { %v1731_v49 = vadd.f32 %v1730_v13, %v1728_v34  ;;  %v1783_v25 = vadd.f32 %v1782_v63, %v1778_v30  ;;  %vm1683_vm1 = vcmp.eq.s32.totalorder %v2315_v45, %v1681_v3  ;;  %v1653_v35 = vmul.f32 %v2983_v55, %v2902_v23 }
 0x2d5   : > { %v1718_v4 = vrot.slane %v1717_v37, 2  ;;  %v1764_v48 = vrot.slane %v1763_v5, 4  ;;  %v1744_v58 = vrot.slane %v1742_v43, 4  ;;  %v2031_v22 = vsel %vm1683_vm1, 1.0, %v2171_v54 }
 0x2d6   : > { %v1784_v6 = vrot.slane %v1783_v25, 4  ;;  %v1701_v40 = vadd.s32 1, %v1681_v3  ;;  %v1732_v9 = vrot.slane %v1731_v49, 2  ;;  %vm1689_vm4 = vcmp.eq.s32.totalorder %v2531_v0, %v1681_v3 }
 0x2d7   : > { %v1719_v18 = vadd.f32 %v1718_v4, %v1717_v37  ;;  %v1765_v36 = vadd.f32 %v1764_v48, %v1763_v5  ;;  %v1655_v14 = vperm.slane %v1653_v35, 7  ;;  %vm1695_vm5 = vcmp.eq.s32.totalorder %v2528_v47, %v1681_v3 }
 0x2d8   : > { %v1785_v19 = vadd.f32 %v1784_v6, %v1783_v25  ;;  %v1715_v23 = vmul.f32 %v2031_v22, %v1619_v21  ;;  %v1745_v2 = vadd.f32 %v1744_v58, %v1742_v43  ;;  %v2033_v57 = vsel %vm1689_vm4, 1.0, %v2171_v54 }
 0x2d9   : > { %v1720_v42 = vrot.slane %v1719_v18, 1  ;;  %vm1703_vm3 = vcmp.eq.s32.totalorder %v2315_v45, %v1701_v40  ;;  %vm1705_vm0 = vcmp.eq.s32.totalorder %v2528_v47, %v1701_v40  ;;  %v1733_v7 = vadd.f32 %v1732_v9, %v1731_v49 }
 0x2da   : > { %v1786_v10 = vrot.slane %v1785_v19, 2  ;;  %v1766_v31 = vrot.slane %v1765_v36, 2  ;;  %v2035_v0 = vsel %vm1695_vm5, 1.0, %v2171_v54  ;;  %v2037_v24 = vsel %vm1703_vm3, 1.0, %v2171_v54 }
 0x2db   : > { %v2995_v59 = vadd.f32 %v1720_v42, %v1719_v18  ;;  %v2039_v15 = vsel %vm1705_vm0, 1.0, %v2171_v54  ;;  %v1722_v8 = vrot.slane %v1715_v23, 4  ;;  %v1729_v39 = vmul.f32 %v2033_v57, %v2942_v41 }
 0x2dc   : > { %v1746_v60 = vrot.slane %v1745_v2, 2  ;;  %v1657_v52 = vmul.f32 %v2697_v53, %v1655_v14  ;;  %v1659_v45 = vmul.f32 %v2705_v17, %v1655_v14  ;;  %v1734_v47 = vrot.slane %v1733_v7, 1 }
 0x2dd   : > { %2140 = vrcp.f32 %v2995_v59  ;;  %v1787_v62 = vadd.f32 %v1786_v10, %v1785_v19  ;;  %v1723_v20 = vadd.f32 %v1722_v8, %v1715_v23  ;;  %v1736_v12 = vrot.slane %v1729_v39, 4 }
 0x2de   : > { %v1759_v34 = vmul.f32 %v2031_v22, %v1657_v52  ;;  %v1761_v29 = vmul.f32 %v2035_v0, %v1659_v45  ;;  %v1779_v46 = vmul.f32 %v2037_v24, %v1657_v52  ;;  %v1781_v16 = vmul.f32 %v2039_v15, %v1659_v45 }
 0x2df   : > { %v1767_v51 = vadd.f32 %v1766_v31, %v1765_v36  ;;  %v1724_v13 = vrot.slane %v1723_v20, 2  ;;  %v1747_v54 = vadd.f32 %v1746_v60, %v1745_v2  ;;  %v1737_v17 = vadd.f32 %v1736_v12, %v1729_v39 }
 0x2e0   : > { %v1770_v41 = vsel %vm741_vm11, %v1761_v29, 0.0  ;;  %v1790_v53 = vsel %vm741_vm11, %v1781_v16, 0.0  ;;  %v1743_v33 = vmul.f32 %v2033_v57, %v2908_v44  ;;  %v1735_v27 = vadd.f32 %v1734_v47, %v1733_v7 }
 0x2e1   : > { %v1725_v30 = vadd.f32 %v1724_v13, %v1723_v20  ;;  %v1771_v37 = vadd.f32 %v1770_v41, %v1759_v34  ;;  %v1788_v3 = vrot.slane %v1787_v62, 1  ;;  %v1791_v5 = vadd.f32 %v1790_v53, %v1779_v46 }
 0x2e2   : > { %v1768_v63 = vrot.slane %v1767_v51, 1  ;;  %v1811_v4 = vand.u32 2147483648, %v2995_v59  ;;  %v1809_v18 = vand.u32 2147483647, %v2995_v59  ;;  %v1738_v58 = vrot.slane %v1737_v17, 2 }
 0x2e3   : > { %v2141_v56 = vpop.eup %2140  ;;  %v1726_v49 = vrot.slane %v1725_v30, 1  ;;  %v1772_v25 = vrot.slane %v1771_v37, 4  ;;  %v1792_v6 = vrot.slane %v1791_v5, 4  ;;  %v1750_v21 = vrot.slane %v1743_v33, 4 }
 0x2e4   : > { %v1801_v1 = vmul.f32 %v2141_v56, %v2995_v59  ;;  %vm1806_vm2 = vweird.f32 %v2141_v56  ;;  %v1789_v44 = vadd.f32 %v1788_v3, %v1787_v62  ;;  %vm1805_vm11 = vweird.f32 %v2995_v59 }
 0x2e5   : > { %v3014_v35 = vadd.f32 %v1726_v49, %v1725_v30  ;;  %v1793_v40 = vadd.f32 %v1792_v6, %v1791_v5  ;;  %v1748_v42 = vrot.slane %v1747_v54, 1  ;;  %vm1807_vm6 = vmor %vm1805_vm11, %vm1806_vm2  ;;  %v1812_v9 = vor.u32 1.1754944e-38, %v1811_v4 }
 0x2e6   : > { %v1802_v43 = vsub.f32 1.0, %v1801_v1  ;;  %v1773_v19 = vadd.f32 %v1772_v25, %v1771_v37  ;;  %v1769_v36 = vadd.f32 %v1768_v63, %v1767_v51  ;;  %v1798_v14 = vsub.f32 %v2412_v26, %v1735_v27 }
 0x2e7   : > { %2142 = vrcp.f32 %v3014_v35  ;;  %vm1810_vm7 = vcmp.eq.f32.partialorder %v1809_v18, 8.507059e+37  ;;  %v1739_v57 = vadd.f32 %v1738_v58, %v1737_v17  ;;  %v1751_v7 = vadd.f32 %v1750_v21, %v1743_v33 }
 0x2e8   : > { %v1803_v48 = vmul.f32 %v2141_v56, %v1802_v43  ;;  %v1794_v10 = vrot.slane %v1793_v40, 2  ;;  %v1834_v0 = vsub.f32 %v1789_v44, %v1769_v36  ;;  %v1774_v24 = vrot.slane %v1773_v19, 2 }
 0x2e9   : > { %v1749_v15 = vadd.f32 %v1748_v42, %v1747_v54  ;;  %v1740_v52 = vrot.slane %v1739_v57, 1  ;;  %v1752_v45 = vrot.slane %v1751_v7, 2  ;;  %v1824_v41 = vand.u32 2147483647, %v3014_v35 }
 0x2ea   : > { %v1804_v22 = vadd.f32 %v2141_v56, %v1803_v48  ;;  %v1795_v47 = vadd.f32 %v1794_v10, %v1793_v40  ;;  %v1775_v26 = vadd.f32 %v1774_v24, %v1773_v19  ;;  %v1826_v53 = vand.u32 2147483648, %v3014_v35 }
 0x2eb   : > { %v1756_v29 = vmul.f32 %v1749_v15, %v2944_v38  ;;  %v1741_v16 = vadd.f32 %v1740_v52, %v1739_v57  ;;  %vm1872_vm9 = vcmask 1044480   ;;  %vm1875_vm10 = vcmask 1045504  }
 0x2ec   : > { %v1808_v23 = vsel %vm1807_vm6, %v2141_v56, %v1804_v22  ;;  %v1753_v56 = vadd.f32 %v1752_v45, %v1751_v7  ;;  %v1796_v51 = vrot.slane %v1795_v47, 1  ;;  %v1776_v17 = vrot.slane %v1775_v26, 1 }
 0x2ed   : > { %v1813_v2 = vsel %vm1810_vm7, %v1812_v9, %v1808_v23  ;;  %v2143_v60 = vpop.eup %2142  ;;  %v1848_v38 = vrot.slane %v1756_v29, 2  ;;  %vm1820_vm12 = vweird.f32 %v3014_v35  ;;  %v1827_v63 = vor.u32 1.1754944e-38, %v1826_v53 }
 0x2ee   : > { %v1814_v31 = vmul.f32 %v1813_v2, %v1798_v14  ;;  %v1816_v34 = vmul.f32 %v2143_v60, %v3014_v35  ;;  %vm1821_vm8 = vweird.f32 %v2143_v60  ;;  %v1797_v27 = vadd.f32 %v1796_v51, %v1795_v47 }
 0x2ef   : > { %v1754_v5 = vrot.slane %v1753_v56, 1  ;;  %vm1822_vm13 = vmor %vm1820_vm12, %vm1821_vm8  ;;  %v1777_v49 = vadd.f32 %v1776_v17, %v1775_v26  ;;  %vm1825_vm14 = vcmp.eq.f32.partialorder %v1824_v41, 8.507059e+37 }
 0x2f0   : > { %v1830_v8 = vmul.f32 0.5, %v1814_v31  ;;  %v1854_v39 = vmul.f32 %v1834_v0, %v1814_v31  ;;  %v1840_v20 = vmul.f32 %v1814_v31, %v1769_v36  ;;  %v1817_v13 = vsub.f32 1.0, %v1816_v34 }
 0x2f1   : > { %v1755_v21 = vadd.f32 %v1754_v5, %v1753_v56 }
 0x2f2   : > { %v1832_v62 = vmul.f32 %v1830_v8, %v1814_v31  ;;  %v1856_v12 = vadd.f32 %v1854_v39, %v1769_v36  ;;  %v1842_v1 = vmul.f32 %v1840_v20, %v2995_v59  ;;  %v1818_v33 = vmul.f32 %v2143_v60, %v1817_v13 }
 0x2f4   : > { %v1836_v46 = vmul.f32 %v1834_v0, %v1832_v62  ;;  %v1860_v30 = vrot.slane %v1856_v12, 7  ;;  %v1819_v3 = vadd.f32 %v2143_v60, %v1818_v33 }
 0x2f6   : > { %v1838_v54 = vmul.f32 %v1836_v46, %v2995_v59  ;;  %v1799_v59 = vsub.f32 %v2415_v28, %v1741_v16  ;;  %v1864_v4 = vmul.f32 %v1860_v30, %v2879_v61  ;;  %v1823_v25 = vsel %vm1822_vm13, %v2143_v60, %v1819_v3 }
 0x2f7   : > { %v1828_v18 = vsel %vm1825_vm14, %v1827_v63, %v1823_v25  ;;  %v1835_v28 = vsub.f32 %v1797_v27, %v1777_v49  ;;  %v1757_v61 = vmul.f32 %v1755_v21, %v2983_v55 }
 0x2f8   : > { %v1844_v37 = vadd.f32 %v1842_v1, %v1838_v54  ;;  %v1829_v58 = vmul.f32 %v1828_v18, %v1799_v59 }
 0x2f9   : > { %v1849_v2 = vrot.slane %v1757_v61, 2 }
 0x2fa   : > { %v1852_v43 = vadd.f32 %v1848_v38, %v1844_v37  ;;  %v1831_v44 = vmul.f32 0.5, %v1829_v58  ;;  %v1855_v22 = vmul.f32 %v1835_v28, %v1829_v58  ;;  %v1841_v42 = vmul.f32 %v1829_v58, %v1777_v49 }
 0x2fc   : > { %v1873_v48 = vsel %vm1872_vm9, %v2884_v32, %v1852_v43  ;;  %v1833_v40 = vmul.f32 %v1831_v44, %v1829_v58  ;;  %v1857_v9 = vadd.f32 %v1855_v22, %v1777_v49  ;;  %v1843_v14 = vmul.f32 %v1841_v42, %v3014_v35 }
 0x2fd   : > { %v1876_v6 = vsel %vm1875_vm10, %v1873_v48, %v1864_v4 }
 0x2fe   : > { %1878 = vst [vmem:[%s308_s18] sm:$0x7f] %v1876_v6  ;;  %v1837_v19 = vmul.f32 %v1835_v28, %v1833_v40  ;;  %v1861_v32 = vrot.slane %v1857_v9, 7 }
 0x300   : > { %v1839_v36 = vmul.f32 %v1837_v19, %v3014_v35  ;;  %v1865_v7 = vmul.f32 %v1861_v32, %v2889_v11 }
 0x302   : > { %v1845_v23 = vadd.f32 %v1843_v14, %v1839_v36 }
 0x304   : > { %v1853_v57 = vadd.f32 %v1849_v2, %v1845_v23 }
 0x306   : > { %v1874_v10 = vsel %vm1872_vm9, %v2894_v50, %v1853_v57 }
 0x307   : > { %v1877_v31 = vsel %vm1875_vm10, %v1874_v10, %v1865_v7 }
 0x308   : > { %1879 = vst [vmem:[%s308_s18 + $0x8] sm:$0x7f] %v1877_v31 }
 0x309 PF: > { %p13_p9 = scmp.ge.s32.totalorder %s2224_s25, 5   ;;  %s3078_s21 = smov %s2164_s22 }
 0x30a   : > { %s3079_s22 = smov %s2233_s28  ;;  %s3080_s23 = smov %s2224_s25 }
 0x30b   :  { %15 = sbr.rel (!%p13_p9) target bundleno = 2 (0x2), region = 113 }

// kernel: pwquad_forward.2
= control target key start
LH: loop header
LB: loop body
LE: loop exit
PB: predicated region body
PF: predicated region fallthrough
CT: control target
= control target key end

     0   :  { %v17_v0 = vlaneseq  ;;  %vm56_vm0 = vcmask 1042432   ;;  %v1294_v15 = vmov 0.0   ;;  %v1295_v24 = vmov 1   ;;  %s2135_s0 = inlined_call_operand.vmem [shape: f32[7,768], index: 0, kind: input, shape index: {}]   ;;  %s2136_s2 = inlined_call_operand.vmem [shape: f32[32,3], index: 2, kind: input, shape index: {}]   ;;  %s2137_s1 = inlined_call_operand.vmem [shape: f32[134,1], index: 1, kind: input, shape index: {}]   ;;  %s2138_s3 = inlined_call_operand.vmem [shape: f32[32,32], index: 3, kind: input, shape index: {}]   ;;  %s2139_s4 = inlined_call_operand.vmem [shape: f32[32,768], index: 4, kind: output, shape index: {}]  }
   0x1   :  { %v1326_v1 = vld [vmem:[%s2135_s0] sm:$0x7]  ;;  %v1331_v2 = vld [vmem:[%s2135_s0 + $0x8] sm:$0x7]  ;;  %v1336_v3 = vld [vmem:[%s2135_s0 + $0x10] sm:$0x7]  ;;  %1264 = vset.pattern.permute.xlu1 %v1295_v24 }
   0x2   :  { %v18_v4 = vand.u32 127, %v17_v0  ;;  %v1341_v5 = vld [vmem:[%s2135_s0 + $0x18] sm:$0x7]  ;;  %v57_v6 = vsel %vm56_vm0, %v1326_v1, 0.0  ;;  %v58_v7 = vsel %vm56_vm0, %v1331_v2, 0.0  ;;  %v60_v8 = vsel %vm56_vm0, %v1336_v3, 0.0 }
   0x3   :  { %v1352_v10 = vld [vmem:[%s2135_s0 + $0x20] sm:$0x7]  ;;  %v59_v11 = vadd.f32 %v58_v7, %v57_v6  ;;  %v1357_v12 = vld [vmem:[%s2135_s0 + $0x28] sm:$0x7]  ;;  %v62_v13 = vsel %vm56_vm0, %v1341_v5, 0.0  ;;  %v141_v23 = vld [vmem:[%s2136_s2 + $0x10] sm:$0xff] }
   0x4   :  { %v23_v9 = vadd.s32 640, %v18_v4  ;;  %v64_v17 = vsel %vm56_vm0, %v1352_v10, 0.0  ;;  %202 = vperm.xlu1 %1264, %v141_v23   ;;  %v1296_v51 = vmov 0   ;;  %v140_v52 = vld [vmem:[%s2136_s2 + $0x8] sm:$0xff]  ;;  %v1297_v53 = vmov 2   ;;  %v142_v54 = vld [vmem:[%s2136_s2 + $0x18] sm:$0xff] }
   0x5   :  { %v61_v14 = vadd.f32 %v60_v8, %v59_v11  ;;  %1261 = vset.pattern.permute.xlu2 %v1296_v51  ;;  %1263 = vset.pattern.permute.xlu0 %v1296_v51  ;;  %v48_v63 = vld [vmem:[%s2137_s1] sm:$0x7] }
   0x6   :  { %vm29_vm1 = vcmp.lt.s32.totalorder %v23_v9, 650  ;;  %160 = vperm.xlu2 %1261, %v142_v54   ;;  %v139_v4 = vld [vmem:[%s2136_s2] sm:$0xff] }
   0x7   :  { %v1361_v16 = vsel %vm29_vm1, 1.0, %v1294_v15  ;;  %v63_v19 = vadd.f32 %v62_v13, %v61_v14  ;;  %v49_v9 = vld [vmem:[%s2137_s1 + $0x3] sm:$0x7]  ;;  %vm673_vm1 = vcmask 261120  }
   0x8   :  { %v55_v18 = vmul.f32 %v1361_v16, %v1357_v12 }
   0x9   :  { %v65_v20 = vadd.f32 %v64_v17, %v63_v19 }
   0xa   :  { %v66_v21 = vsel %vm56_vm0, %v55_v18, 0.0 }
   0xb   :  { %v67_v22 = vadd.f32 %v66_v21, %v65_v20 }
   0xc   :  { %1266 = vset.pattern.permute.xlu1 %v1296_v51 }
   0xd   :  { %68 = vadd.xlane.f32.xlu0 %v67_v22  ;;  %150 = vperm.xlu1 %1266, %v140_v52  }
   0xe   :  { %1262 = vset.pattern.permute.xlu2 %v1295_v24 }
   0xf   :  { %206 = vperm.xlu2 %1262, %v142_v54  }
  0x15   :  { %1268 = vset.pattern.permute.xlu1 %v1297_v53 }
  0x16   :  { %272 = vperm.xlu1 %1268, %v141_v23  }
  0x17   :  { %1265 = vset.pattern.permute.xlu2 %v1297_v53 }
  0x18   :  { %276 = vperm.xlu2 %1265, %v142_v54  }
  0x1e   :  { %1270 = vset.pattern.permute.xlu1 %v1296_v51 }
  0x20   :  { %1267 = vset.pattern.permute.xlu2 %v1295_v24 }
  0x21   :  { %198 = vperm.xlu2 %1267, %v140_v52  }
  0x29   :  { %1269 = vset.pattern.permute.xlu2 %v1296_v51 }
  0x2a   :  { %145 = vperm.xlu2 %1269, %v139_v4  }
  0x32   :  { %1272 = vset.pattern.permute.xlu2 %v1297_v53 }
  0x33   :  { %268 = vperm.xlu2 %1272, %v140_v52  }
  0x3b   :  { %1275 = vset.pattern.permute.xlu2 %v1296_v51 }
  0x60   :  { %v1412_v13 = vpop.permute.xlu2 %160 }
  0x69   :  { %v1416_v15 = vpop.permute.xlu2 %206 }
  0x72   :  { %v1420_v18 = vpop.permute.xlu2 %276 }
  0x76   :  { %v1414_v14 = vpop.permute.xlu1 %202 }
  0x7b   :  { %v1424_v20 = vpop.permute.xlu2 %198 }
  0x7f   :  { %v1418_v17 = vpop.permute.xlu1 %150 }
  0x80   :  { %v69_v25 = vpop.xlane.xlu0 %68 }
  0x81   :  { %v1372_v26 = vmul.f32 0.0015384615, %v69_v25 }
  0x83   :  { %v71_v27 = vsub.f32 %v1326_v1, %v1372_v26  ;;  %v72_v28 = vsub.f32 %v1331_v2, %v1372_v26  ;;  %v73_v29 = vsub.f32 %v1336_v3, %v1372_v26  ;;  %v74_v30 = vsub.f32 %v1341_v5, %v1372_v26 }
  0x84   :  { %v76_v31 = vsub.f32 %v1357_v12, %v1372_v26  ;;  %v75_v32 = vsub.f32 %v1352_v10, %v1372_v26  ;;  %v1426_v22 = vpop.permute.xlu2 %145 }
  0x85   :  { %v77_v33 = vmul.f32 %v71_v27, %v71_v27  ;;  %v78_v34 = vmul.f32 %v72_v28, %v72_v28  ;;  %v79_v35 = vmul.f32 %v73_v29, %v73_v29  ;;  %v80_v36 = vmul.f32 %v74_v30, %v74_v30 }
  0x86   :  { %v82_v37 = vmul.f32 %v76_v31, %v76_v31  ;;  %v81_v41 = vmul.f32 %v75_v32, %v75_v32 }
  0x87   :  { %v89_v38 = vsel %vm56_vm0, %v77_v33, 0.0  ;;  %v90_v39 = vsel %vm56_vm0, %v78_v34, 0.0  ;;  %v92_v42 = vsel %vm56_vm0, %v79_v35, 0.0  ;;  %v94_v45 = vsel %vm56_vm0, %v80_v36, 0.0 }
  0x88   :  { %v91_v40 = vadd.f32 %v90_v39, %v89_v38  ;;  %v88_v44 = vmul.f32 %v1361_v16, %v82_v37  ;;  %v96_v47 = vsel %vm56_vm0, %v81_v41, 0.0  ;;  %v1422_v19 = vpop.permute.xlu1 %272 }
  0x8a   :  { %v93_v43 = vadd.f32 %v92_v42, %v91_v40  ;;  %v98_v49 = vsel %vm56_vm0, %v88_v44, 0.0 }
  0x8c   :  { %v95_v46 = vadd.f32 %v94_v45, %v93_v43 }
  0x8e   :  { %v97_v48 = vadd.f32 %v96_v47, %v95_v46 }
  0x90   :  { %v99_v50 = vadd.f32 %v98_v49, %v97_v48  ;;  %v1460_v49 = vpop.permute.xlu2 %268 }
  0x92   :  { %100 = vadd.xlane.f32.xlu0 %v99_v50 }
  0xa6   :  { %155 = vperm.xlu0 %1263, %v141_v23  }
 0x105   :  { %v101_v55 = vpop.xlane.xlu0 %100 }
 0x106   :  { %v102_v56 = vmul.f32 0.0015384615, %v101_v55 }
 0x108   :  { %v103_v57 = vadd.f32 1e-05, %v102_v56 }
 0x10a   :  { %1276 = vrsqrt.f32 %v103_v57  ;;  %vm110_vm3 = vweird.f32 %v103_v57 }
 0x110   :  { %v1277_v58 = vpop.eup %1276 }
 0x111   :  { %v105_v59 = vmul.f32 %v1277_v58, %v103_v57  ;;  %vm111_vm2 = vweird.f32 %v1277_v58 }
 0x112   :  { %vm112_vm4 = vmor %vm110_vm3, %vm111_vm2 }
 0x113   :  { %v106_v60 = vmul.f32 %v1277_v58, %v105_v59 }
 0x115   :  { %v107_v61 = vmul.f32 0.5, %v106_v60 }
 0x117   :  { %v108_v62 = vsub.f32 1.5, %v107_v61 }
 0x118   :  { %v156_v46 = vpop.permute.xlu0 %155 }
 0x119   :  { %v109_v0 = vmul.f32 %v1277_v58, %v108_v62 }
 0x11b   :  { %v113_v6 = vsel %vm112_vm4, %v1277_v58, %v109_v0 }
 0x11c   :  { %v114_v7 = vmul.f32 %v113_v6, %v48_v63 }
 0x11e   :  { %117 = vperm.xlu1 %1270, %v114_v7   ;;  %v126_v8 = vmul.f32 %v114_v7, %v1372_v26 }
 0x120   :  { %v127_v11 = vsub.f32 %v49_v9, %v126_v8 }
 0x126   :  { %130 = vperm.xlu1 %1270, %v127_v11  }
 0x12e   :  { %1271 = vset.pattern.permute.xlu1 %v1295_v24 }
 0x12f   :  { %194 = vperm.xlu1 %1271, %v139_v4  }
 0x137   :  { %1273 = vset.pattern.permute.xlu1 %v1297_v53 }
 0x138   :  { %264 = vperm.xlu1 %1273, %v139_v4  }
 0x140   :  { %1274 = vset.pattern.permute.xlu1 %v1296_v51 }
 0x190   :  { %v118_v21 = vpop.permute.xlu1 %117 }
 0x191   :  { %v120_v23 = vmul.f32 %v118_v21, %v1326_v1  ;;  %v121_v24 = vmul.f32 %v118_v21, %v1331_v2  ;;  %v122_v25 = vmul.f32 %v118_v21, %v1336_v3  ;;  %v123_v26 = vmul.f32 %v118_v21, %v1341_v5 }
 0x192   :  { %v124_v27 = vmul.f32 %v118_v21, %v1352_v10  ;;  %v125_v28 = vmul.f32 %v118_v21, %v1357_v12 }
 0x198   :  { %v131_v29 = vpop.permute.xlu1 %130 }
 0x199   :  { %v133_v30 = vadd.f32 %v131_v29, %v120_v23  ;;  %v134_v31 = vadd.f32 %v131_v29, %v121_v24  ;;  %v135_v32 = vadd.f32 %v131_v29, %v122_v25  ;;  %v136_v33 = vadd.f32 %v131_v29, %v123_v26 }
 0x19a   :  { %v137_v34 = vadd.f32 %v131_v29, %v124_v27  ;;  %v138_v35 = vadd.f32 %v131_v29, %v125_v28 }
 0x19b   :  { %v163_v36 = vperm.slane %v133_v30, 0  ;;  %v164_v37 = vperm.slane %v134_v31, 0  ;;  %v209_v1 = vperm.slane %v133_v30, 1  ;;  %v210_v38 = vperm.slane %v134_v31, 1 }
 0x19c   :  { %v1434_v2 = vperm.slane %v135_v32, 0  ;;  %v1436_v3 = vperm.slane %v136_v33, 0  ;;  %v1438_v5 = vperm.slane %v137_v34, 0  ;;  %v1440_v10 = vperm.slane %v138_v35, 0 }
 0x19d   :  { %v1442_v12 = vperm.slane %v135_v32, 1  ;;  %v1444_v39 = vperm.slane %v136_v33, 1  ;;  %v1446_v40 = vperm.slane %v137_v34, 1  ;;  %v1448_v41 = vperm.slane %v138_v35, 1 }
 0x19e   :  { %v1450_v42 = vperm.slane %v133_v30, 2  ;;  %v1452_v43 = vperm.slane %v134_v31, 2  ;;  %v175_v44 = vmul.f32 %v163_v36, %v1418_v17  ;;  %v176_v45 = vmul.f32 %v164_v37, %v1418_v17 }
 0x19f   :  { %v1456_v47 = vperm.slane %v135_v32, 2  ;;  %v1458_v48 = vperm.slane %v136_v33, 2  ;;  %v221_v50 = vmul.f32 %v209_v1, %v1424_v20  ;;  %v222_v51 = vmul.f32 %v210_v38, %v1424_v20 }
 0x1a0   :  { %v1464_v52 = vperm.slane %v137_v34, 2  ;;  %v1466_v53 = vperm.slane %v138_v35, 2  ;;  %v227_v54 = vmul.f32 %v209_v1, %v1414_v14  ;;  %v228_v55 = vmul.f32 %v210_v38, %v1414_v14 }
 0x1a1   :  { %v195_v56 = vpop.permute.xlu1 %194  ;;  %v245_v57 = vadd.f32 %v221_v50, %v175_v44  ;;  %v246_v58 = vadd.f32 %v222_v51, %v176_v45  ;;  %v229_v59 = vmul.f32 %v1442_v12, %v1414_v14  ;;  %v181_v60 = vmul.f32 %v163_v36, %v156_v46 }
 0x1a2   :  { %v291_v61 = vmul.f32 %v1450_v42, %v1460_v49  ;;  %v292_v62 = vmul.f32 %v1452_v43, %v1460_v49  ;;  %v182_v63 = vmul.f32 %v164_v37, %v156_v46  ;;  %v183_v0 = vmul.f32 %v1434_v2, %v156_v46 }
 0x1a3   :  { %v1479_v4 = vmul.f32 %v1456_v47, %v1460_v49  ;;  %v1483_v6 = vmul.f32 %v1458_v48, %v1460_v49  ;;  %v1486_v7 = vmul.f32 %v1436_v3, %v156_v46  ;;  %v1489_v8 = vmul.f32 %v1438_v5, %v156_v46 }
 0x1a4   :  { %v1491_v9 = vadd.f32 %v291_v61, %v245_v57  ;;  %v1493_v11 = vadd.f32 %v292_v62, %v246_v58  ;;  %v1496_v21 = vmul.f32 %v1440_v10, %v156_v46  ;;  %v1498_v23 = vadd.f32 %v227_v54, %v181_v60 }
 0x1a5   :  { %v1500_v24 = vadd.f32 %v228_v55, %v182_v63  ;;  %v1502_v25 = vadd.f32 %v229_v59, %v183_v0  ;;  %v215_v26 = vmul.f32 %v209_v1, %v195_v56  ;;  %v216_v27 = vmul.f32 %v210_v38, %v195_v56 }
 0x1a6   :  { %v169_v28 = vmul.f32 %v163_v36, %v1426_v22  ;;  %v170_v29 = vmul.f32 %v164_v37, %v1426_v22  ;;  %v171_v30 = vmul.f32 %v1434_v2, %v1426_v22  ;;  %v217_v31 = vmul.f32 %v1442_v12, %v195_v56 }
 0x1a7   :  { %v1510_v32 = vmul.f32 %v1444_v39, %v195_v56  ;;  %v1513_v33 = vmul.f32 %v1446_v40, %v195_v56  ;;  %v187_v34 = vmul.f32 %v163_v36, %v1412_v13  ;;  %v188_v35 = vmul.f32 %v164_v37, %v1412_v13 }
 0x1a8   :  { %v1518_v44 = vmul.f32 %v1448_v41, %v195_v56  ;;  %v239_v45 = vadd.f32 %v215_v26, %v169_v28  ;;  %v1520_v46 = vadd.f32 %v216_v27, %v170_v29  ;;  %v189_v50 = vmul.f32 %v1434_v2, %v1412_v13 }
 0x1a9   :  { %v190_v54 = vmul.f32 %v1436_v3, %v1412_v13  ;;  %v233_v55 = vmul.f32 %v209_v1, %v1416_v15  ;;  %v234_v36 = vmul.f32 %v210_v38, %v1416_v15  ;;  %v235_v37 = vmul.f32 %v1442_v12, %v1416_v15 }
 0x1aa   :  { %v1524_v51 = vpop.permute.xlu1 %264  ;;  %v191_v57 = vmul.f32 %v1438_v5, %v1412_v13  ;;  %v192_v58 = vmul.f32 %v1440_v10, %v1412_v13  ;;  %v236_v59 = vmul.f32 %v1444_v39, %v1416_v15  ;;  %v237_v1 = vmul.f32 %v1446_v40, %v1416_v15 }
 0x1ab   :  { %v285_v56 = vmul.f32 %v1450_v42, %v1524_v51  ;;  %v238_v38 = vmul.f32 %v1448_v41, %v1416_v15  ;;  %v257_v60 = vadd.f32 %v233_v55, %v187_v34  ;;  %v258_v61 = vadd.f32 %v234_v36, %v188_v35 }
 0x1ac   :  { %v1544_v62 = vadd.f32 %v217_v31, %v171_v30  ;;  %v286_v63 = vmul.f32 %v1452_v43, %v1524_v51  ;;  %v1550_v0 = vmul.f32 %v1456_v47, %v1524_v51  ;;  %v259_v13 = vadd.f32 %v235_v37, %v189_v50 }
 0x1ad   :  { %v1554_v26 = vmul.f32 %v1458_v48, %v1524_v51  ;;  %v1556_v27 = vadd.f32 %v285_v56, %v239_v45  ;;  %v303_v15 = vmul.f32 %v1450_v42, %v1420_v18  ;;  %v304_v28 = vmul.f32 %v1452_v43, %v1420_v18 }
 0x1ae   :  { %v260_v29 = vadd.f32 %v236_v59, %v190_v54  ;;  %v261_v30 = vadd.f32 %v237_v1, %v191_v57  ;;  %v262_v31 = vadd.f32 %v238_v38, %v192_v58  ;;  %v305_v34 = vmul.f32 %v1456_v47, %v1420_v18 }
 0x1af   :  { %v306_v35 = vmul.f32 %v1458_v48, %v1420_v18  ;;  %v1566_v50 = vadd.f32 %v303_v15, %v257_v60  ;;  %v1568_v55 = vadd.f32 %v304_v28, %v258_v61  ;;  %v177_v45 = vmul.f32 %v1434_v2, %v1418_v17 }
 0x1b0   :  { %v307_v36 = vmul.f32 %v1464_v52, %v1420_v18  ;;  %v308_v54 = vmul.f32 %v1466_v53, %v1420_v18  ;;  %v1576_v37 = vadd.f32 %v305_v34, %v259_v13  ;;  %v178_v56 = vmul.f32 %v1436_v3, %v1418_v17 }
 0x1b1   :  { %2142 = vst [vmem:[#allocation2_spill] sm:$0xff] %v1568_v55  ;;  %v386_v57 = vadd.f32 %v1568_v55, %v1566_v50  ;;  %v179_v58 = vmul.f32 %v1438_v5, %v1418_v17  ;;  %v180_v2 = vmul.f32 %v1440_v10, %v1418_v17  ;;  %v223_v59 = vmul.f32 %v1442_v12, %v1424_v20 }
 0x1b2   :  { %v1588_v1 = vadd.f32 %v308_v54, %v262_v31  ;;  %v224_v18 = vmul.f32 %v1444_v39, %v1424_v20  ;;  %v225_v38 = vmul.f32 %v1446_v40, %v1424_v20  ;;  %v226_v60 = vmul.f32 %v1448_v41, %v1424_v20 }
 0x1b3   :  { %v1596_v61 = vadd.f32 %v306_v35, %v260_v29  ;;  %v1598_v13 = vadd.f32 %v307_v36, %v261_v30  ;;  %v387_v17 = vadd.f32 %v386_v57, %v1576_v37  ;;  %v247_v15 = vadd.f32 %v223_v59, %v177_v45 }
 0x1b4   :  { %v248_v28 = vadd.f32 %v224_v18, %v178_v56  ;;  %v249_v12 = vadd.f32 %v225_v38, %v179_v58  ;;  %v250_v31 = vadd.f32 %v226_v60, %v180_v2  ;;  %v372_v34 = vadd.f32 %v1493_v11, %v1491_v9 }
 0x1b5   :  { %v388_v54 = vadd.f32 %v387_v17, %v1596_v61  ;;  %v296_v55 = vmul.f32 %v1466_v53, %v1460_v49  ;;  %v1607_v20 = vadd.f32 %v1479_v4, %v247_v15  ;;  %v230_v29 = vmul.f32 %v1444_v39, %v1414_v14 }
 0x1b6   :  { %v364_v30 = vmul.f32 %v1361_v16, %v1588_v1  ;;  %v295_v35 = vmul.f32 %v1464_v52, %v1460_v49  ;;  %v231_v45 = vmul.f32 %v1446_v40, %v1414_v14  ;;  %v232_v36 = vmul.f32 %v1448_v41, %v1414_v14 }
 0x1b7   :  { %v389_v56 = vadd.f32 %v388_v54, %v1598_v13  ;;  %v1621_v4 = vadd.f32 %v1483_v6, %v248_v28  ;;  %v1623_v57 = vadd.f32 %v296_v55, %v250_v31  ;;  %v373_v39 = vadd.f32 %v372_v34, %v1607_v20 }
 0x1b8   :  { %v1627_v58 = vadd.f32 %v286_v63, %v1520_v46  ;;  %v1629_v2 = vadd.f32 %v295_v35, %v249_v12  ;;  %v297_v40 = vmul.f32 %v1450_v42, %v1422_v19  ;;  %v298_v14 = vmul.f32 %v1452_v43, %v1422_v19 }
 0x1b9   :  { %v390_v41 = vadd.f32 %v389_v56, %v364_v30  ;;  %v374_v49 = vadd.f32 %v373_v39, %v1621_v4  ;;  %v254_v6 = vadd.f32 %v230_v29, %v1486_v7  ;;  %v256_v55 = vadd.f32 %v232_v36, %v1496_v21  ;;  %v2143_v36 = vld [vmem:[#allocation2_spill] sm:$0xff] }
 0x1ba   :  { %v255_v59 = vadd.f32 %v231_v45, %v1489_v8  ;;  %v299_v46 = vmul.f32 %v1456_v47, %v1422_v19  ;;  %v1642_v63 = vadd.f32 %v297_v40, %v1498_v23  ;;  %v1645_v42 = vadd.f32 %v298_v14, %v1500_v24 }
 0x1bb   :  { %391 = vadd.xlane.f32.xlu2 %v390_v41  ;;  %v352_v43 = vmul.f32 %v1361_v16, %v1623_v57  ;;  %v375_v18 = vadd.f32 %v374_v49, %v1629_v2  ;;  %v300_v7 = vmul.f32 %v1458_v48, %v1422_v19  ;;  %v302_v8 = vmul.f32 %v1466_v53, %v1422_v19 }
 0x1bc   :  { %v301_v47 = vmul.f32 %v1464_v52, %v1422_v19  ;;  %v1657_v21 = vadd.f32 %v299_v46, %v1502_v25  ;;  %v379_v23 = vadd.f32 %v1645_v42, %v1642_v63  ;;  %v172_v24 = vmul.f32 %v1436_v3, %v1426_v22 }
 0x1bd   :  { %v376_v38 = vadd.f32 %v375_v18, %v352_v43  ;;  %v1663_v60 = vadd.f32 %v300_v7, %v254_v6  ;;  %v1665_v17 = vadd.f32 %v302_v8, %v256_v55  ;;  %v174_v48 = vmul.f32 %v1440_v10, %v1426_v22 }
 0x1be   :  { %v380_v15 = vadd.f32 %v379_v23, %v1657_v21  ;;  %v173_v19 = vmul.f32 %v1438_v5, %v1426_v22  ;;  %v242_v25 = vadd.f32 %v1510_v32, %v172_v24  ;;  %v290_v28 = vmul.f32 %v1466_v53, %v1524_v51 }
 0x1bf   :  { %377 = vadd.xlane.f32.xlu1 %v376_v38  ;;  %v244_v3 = vadd.f32 %v1518_v44, %v174_v48  ;;  %v289_v12 = vmul.f32 %v1464_v52, %v1524_v51  ;;  %v1680_v31 = vadd.f32 %v1550_v0, %v1544_v62  ;;  %v365_v10 = vadd.f32 %v1627_v58, %v1556_v27 }
 0x1c0   :  { %v1684_v34 = vadd.f32 %v301_v47, %v255_v59  ;;  %v381_v22 = vadd.f32 %v380_v15, %v1663_v60  ;;  %v243_v5 = vadd.f32 %v1513_v33, %v173_v19  ;;  %v1689_v53 = vadd.f32 %v1554_v26, %v242_v25 }
 0x1c1   :  { %v1691_v32 = vadd.f32 %v290_v28, %v244_v3  ;;  %v366_v52 = vadd.f32 %v365_v10, %v1680_v31  ;;  %v358_v44 = vmul.f32 %v1361_v16, %v1665_v17 }
 0x1c2   :  { %v382_v51 = vadd.f32 %v381_v22, %v1684_v34  ;;  %v1697_v62 = vadd.f32 %v289_v12, %v243_v5 }
 0x1c3   :  { %v367_v0 = vadd.f32 %v366_v52, %v1689_v53  ;;  %v346_v33 = vmul.f32 %v1361_v16, %v1691_v32 }
 0x1c4   :  { %v383_v54 = vadd.f32 %v382_v51, %v358_v44 }
 0x1c5   :  { %v368_v26 = vadd.f32 %v367_v0, %v1697_v62 }
 0x1c6   :  { %384 = vadd.xlane.f32.xlu0 %v383_v54 }
 0x1c7   :  { %v369_v29 = vadd.f32 %v368_v26, %v346_v33 }
 0x1c9   :  { %370 = vadd.xlane.f32.xlu2 %v369_v29 }
 0x22e   :  { %v392_v30 = vpop.xlane.xlu2 %391 }
 0x22f   :  { %v1703_v35 = vmul.f32 0.0015384615, %v392_v30 }
 0x231   :  { %v415_v45 = vsub.f32 %v1566_v50, %v1703_v35  ;;  %v416_v56 = vsub.f32 %v2143_v36, %v1703_v35  ;;  %v417_v39 = vsub.f32 %v1576_v37, %v1703_v35  ;;  %v418_v14 = vsub.f32 %v1596_v61, %v1703_v35 }
 0x232   :  { %v378_v40 = vpop.xlane.xlu1 %377  ;;  %v420_v41 = vsub.f32 %v1588_v1, %v1703_v35  ;;  %v419_v59 = vsub.f32 %v1598_v13, %v1703_v35 }
 0x233   :  { %v1715_v49 = vmul.f32 0.0015384615, %v378_v40  ;;  %v439_v6 = vmul.f32 %v415_v45, %v415_v45  ;;  %v440_v55 = vmul.f32 %v416_v56, %v416_v56  ;;  %v441_v46 = vmul.f32 %v417_v39, %v417_v39 }
 0x234   :  { %v442_v47 = vmul.f32 %v418_v14, %v418_v14  ;;  %v444_v23 = vmul.f32 %v420_v41, %v420_v41  ;;  %v443_v3 = vmul.f32 %v419_v59, %v419_v59 }
 0x235   :  { %v490_v43 = vadd.f32 %v440_v55, %v439_v6  ;;  %v403_v18 = vsub.f32 %v1491_v9, %v1715_v49  ;;  %v404_v7 = vsub.f32 %v1493_v11, %v1715_v49  ;;  %v405_v8 = vsub.f32 %v1607_v20, %v1715_v49 }
 0x236   :  { %v406_v24 = vsub.f32 %v1621_v4, %v1715_v49  ;;  %v408_v48 = vsub.f32 %v1623_v57, %v1715_v49  ;;  %v407_v25 = vsub.f32 %v1629_v2, %v1715_v49  ;;  %v468_v52 = vmul.f32 %v1361_v16, %v444_v23 }
 0x237   :  { %v491_v38 = vadd.f32 %v490_v43, %v441_v46  ;;  %v427_v15 = vmul.f32 %v403_v18, %v403_v18  ;;  %v428_v19 = vmul.f32 %v404_v7, %v404_v7  ;;  %v429_v10 = vmul.f32 %v405_v8, %v405_v8 }
 0x238   :  { %v430_v51 = vmul.f32 %v406_v24, %v406_v24  ;;  %v432_v0 = vmul.f32 %v408_v48, %v408_v48  ;;  %v431_v26 = vmul.f32 %v407_v25, %v407_v25 }
 0x239   :  { %v385_v28 = vpop.xlane.xlu0 %384  ;;  %v492_v12 = vadd.f32 %v491_v38, %v442_v47  ;;  %v476_v22 = vadd.f32 %v428_v19, %v427_v15 }
 0x23a   :  { %v1731_v5 = vmul.f32 0.0015384615, %v385_v28  ;;  %v456_v59 = vmul.f32 %v1361_v16, %v432_v0 }
 0x23b   :  { %v493_v44 = vadd.f32 %v492_v12, %v443_v3  ;;  %v477_v54 = vadd.f32 %v476_v22, %v429_v10 }
 0x23c   :  { %v371_v33 = vpop.xlane.xlu2 %370  ;;  %v409_v29 = vsub.f32 %v1642_v63, %v1731_v5  ;;  %v410_v30 = vsub.f32 %v1645_v42, %v1731_v5  ;;  %v411_v45 = vsub.f32 %v1657_v21, %v1731_v5  ;;  %v412_v14 = vsub.f32 %v1663_v60, %v1731_v5 }
 0x23d   :  { %v1740_v56 = vmul.f32 0.0015384615, %v371_v33  ;;  %v494_v39 = vadd.f32 %v493_v44, %v468_v52  ;;  %v478_v40 = vadd.f32 %v477_v54, %v430_v51  ;;  %v414_v41 = vsub.f32 %v1665_v17, %v1731_v5 }
 0x23e   :  { %v433_v6 = vmul.f32 %v409_v29, %v409_v29  ;;  %v434_v55 = vmul.f32 %v410_v30, %v410_v30  ;;  %v413_v43 = vsub.f32 %v1684_v34, %v1731_v5  ;;  %v435_v7 = vmul.f32 %v411_v45, %v411_v45 }
 0x23f   :  { %495 = vadd.xlane.f32.xlu2 %v494_v39  ;;  %v479_v46 = vadd.f32 %v478_v40, %v431_v26  ;;  %v397_v18 = vsub.f32 %v1556_v27, %v1740_v56  ;;  %v398_v47 = vsub.f32 %v1627_v58, %v1740_v56  ;;  %v399_v23 = vsub.f32 %v1680_v31, %v1740_v56 }
 0x240   :  { %v483_v8 = vadd.f32 %v434_v55, %v433_v6  ;;  %v436_v38 = vmul.f32 %v412_v14, %v412_v14  ;;  %v438_v48 = vmul.f32 %v414_v41, %v414_v41  ;;  %v400_v15 = vsub.f32 %v1689_v53, %v1740_v56 }
 0x241   :  { %v480_v24 = vadd.f32 %v479_v46, %v456_v59  ;;  %v402_v25 = vsub.f32 %v1691_v32, %v1740_v56  ;;  %v421_v28 = vmul.f32 %v397_v18, %v397_v18  ;;  %v422_v3 = vmul.f32 %v398_v47, %v398_v47 }
 0x242   :  { %v484_v19 = vadd.f32 %v483_v8, %v435_v7  ;;  %v437_v12 = vmul.f32 %v413_v43, %v413_v43  ;;  %v401_v22 = vsub.f32 %v1697_v62, %v1740_v56  ;;  %v423_v52 = vmul.f32 %v399_v23, %v399_v23 }
 0x243   :  { %481 = vadd.xlane.f32.xlu1 %v480_v24  ;;  %v469_v44 = vadd.f32 %v422_v3, %v421_v28  ;;  %v462_v51 = vmul.f32 %v1361_v16, %v438_v48  ;;  %v424_v54 = vmul.f32 %v400_v15, %v400_v15  ;;  %v426_v33 = vmul.f32 %v402_v25, %v402_v25 }
 0x244   :  { %v485_v10 = vadd.f32 %v484_v19, %v436_v38  ;;  %v425_v30 = vmul.f32 %v401_v22, %v401_v22  ;;  %v336_v22 = vld [vmem:[%s2137_s1 + $0x1e] sm:$0xff] }
 0x245   :  { %v470_v26 = vadd.f32 %v469_v44, %v423_v52  ;;  %v450_v39 = vmul.f32 %v1361_v16, %v426_v33 }
 0x246   :  { %v486_v0 = vadd.f32 %v485_v10, %v437_v12 }
 0x247   :  { %v471_v45 = vadd.f32 %v470_v26, %v424_v54  ;;  %v340_v26 = vld [vmem:[%s2137_s1 + $0x3e] sm:$0xff] }
 0x248   :  { %v487_v29 = vadd.f32 %v486_v0, %v462_v51 }
 0x249   :  { %v472_v40 = vadd.f32 %v471_v45, %v425_v30 }
 0x24a   :  { %488 = vadd.xlane.f32.xlu0 %v487_v29  ;;  %v334_v29 = vld [vmem:[%s2137_s1 + $0xe] sm:$0xff] }
 0x24b   :  { %v473_v14 = vadd.f32 %v472_v40, %v450_v39 }
 0x24d   :  { %474 = vadd.xlane.f32.xlu2 %v473_v14 }
 0x2b2   :  { %v496_v41 = vpop.xlane.xlu2 %495 }
 0x2b3   :  { %v500_v6 = vmul.f32 0.0015384615, %v496_v41 }
 0x2b5   :  { %v504_v55 = vadd.f32 1e-05, %v500_v6 }
 0x2b6   :  { %v482_v59 = vpop.xlane.xlu1 %481 }
 0x2b7   :  { %1278 = vrsqrt.f32 %v504_v55  ;;  %v498_v46 = vmul.f32 0.0015384615, %v482_v59  ;;  %vm541_vm6 = vweird.f32 %v504_v55 }
 0x2b9   :  { %v502_v43 = vadd.f32 1e-05, %v498_v46 }
 0x2bb   :  { %1280 = vrsqrt.f32 %v502_v43  ;;  %vm521_vm9 = vweird.f32 %v502_v43 }
 0x2bd   :  { %v1279_v18 = vpop.eup %1278  ;;  %v489_v7 = vpop.xlane.xlu0 %488 }
 0x2be   :  { %v536_v8 = vmul.f32 %v1279_v18, %v504_v55  ;;  %v499_v47 = vmul.f32 0.0015384615, %v489_v7  ;;  %vm542_vm5 = vweird.f32 %v1279_v18 }
 0x2bf   :  { %vm543_vm7 = vmor %vm541_vm6, %vm542_vm5 }
 0x2c0   :  { %v537_v23 = vmul.f32 %v1279_v18, %v536_v8  ;;  %v503_v24 = vadd.f32 1e-05, %v499_v47  ;;  %v475_v48 = vpop.xlane.xlu2 %474  ;;  %v338_v47 = vld [vmem:[%s2137_s1 + $0x2e] sm:$0xff] }
 0x2c1   :  { %v1281_v38 = vpop.eup %1280  ;;  %v497_v25 = vmul.f32 0.0015384615, %v475_v48 }
 0x2c2   :  { %v538_v15 = vmul.f32 0.5, %v537_v23  ;;  %v516_v19 = vmul.f32 %v1281_v38, %v502_v43  ;;  %1282 = vrsqrt.f32 %v503_v24  ;;  %vm522_vm8 = vweird.f32 %v1281_v38 }
 0x2c3   :  { %v501_v12 = vadd.f32 1e-05, %v497_v25  ;;  %vm523_vm10 = vmor %vm521_vm9, %vm522_vm8  ;;  %vm531_vm12 = vweird.f32 %v503_v24 }
 0x2c4   :  { %v539_v28 = vsub.f32 1.5, %v538_v15  ;;  %v517_v3 = vmul.f32 %v1281_v38, %v516_v19 }
 0x2c5   :  { %1284 = vrsqrt.f32 %v501_v12  ;;  %vm511_vm15 = vweird.f32 %v501_v12 }
 0x2c6   :  { %v518_v10 = vmul.f32 0.5, %v517_v3  ;;  %v540_v52 = vmul.f32 %v1279_v18, %v539_v28  ;;  %v339_v28 = vld [vmem:[%s2137_s1 + $0x36] sm:$0xff] }
 0x2c8   :  { %v1283_v44 = vpop.eup %1282  ;;  %v519_v51 = vsub.f32 1.5, %v518_v10  ;;  %v544_v0 = vsel %vm543_vm7, %v1279_v18, %v540_v52  ;;  %v335_v18 = vld [vmem:[%s2137_s1 + $0x16] sm:$0xff] }
 0x2c9   :  { %v526_v54 = vmul.f32 %v1283_v44, %v503_v24  ;;  %v548_v33 = vmul.f32 %v544_v0, %v336_v22  ;;  %vm532_vm11 = vweird.f32 %v1283_v44  ;;  %v333_v24 = vld [vmem:[%s2137_s1 + $0x6] sm:$0xff] }
 0x2ca   :  { %v520_v30 = vmul.f32 %v1281_v38, %v519_v51  ;;  %vm533_vm13 = vmor %vm531_vm12, %vm532_vm11  ;;  %v337_v22 = vld [vmem:[%s2137_s1 + $0x26] sm:$0xff] }
 0x2cb   :  { %v527_v45 = vmul.f32 %v1283_v44, %v526_v54  ;;  %566 = vperm.xlu0 %1263, %v548_v33   ;;  %v596_v39 = vmul.f32 %v548_v33, %v1703_v35  ;;  %v1285_v14 = vpop.eup %1284 }
 0x2cc   :  { %v524_v40 = vsel %vm523_vm10, %v1281_v38, %v520_v30  ;;  %v506_v59 = vmul.f32 %v1285_v14, %v501_v12  ;;  %vm512_vm14 = vweird.f32 %v1285_v14 }
 0x2cd   :  { %v528_v41 = vmul.f32 0.5, %v527_v45  ;;  %v600_v6 = vsub.f32 %v340_v26, %v596_v39  ;;  %v546_v55 = vmul.f32 %v524_v40, %v334_v29  ;;  %vm513_vm0 = vmor %vm511_vm15, %vm512_vm14 }
 0x2ce   :  { %v507_v43 = vmul.f32 %v1285_v14, %v506_v59 }
 0x2cf   :  { %v529_v46 = vsub.f32 1.5, %v528_v41  ;;  %618 = vperm.xlu2 %1275, %v600_v6   ;;  %v594_v8 = vmul.f32 %v546_v55, %v1715_v49 }
 0x2d0   :  { %v508_v35 = vmul.f32 0.5, %v507_v43 }
 0x2d1   :  { %v530_v7 = vmul.f32 %v1283_v44, %v529_v46  ;;  %v598_v15 = vsub.f32 %v338_v47, %v594_v8 }
 0x2d2   :  { %v509_v38 = vsub.f32 1.5, %v508_v35 }
 0x2d3   :  { %v534_v23 = vsel %vm533_vm13, %v1283_v44, %v530_v7  ;;  %556 = vperm.xlu0 %1263, %v546_v55  }
 0x2d4   :  { %v547_v48 = vmul.f32 %v534_v23, %v335_v18  ;;  %v510_v19 = vmul.f32 %v1285_v14, %v509_v38 }
 0x2d6   :  { %561 = vperm.xlu1 %1274, %v547_v48   ;;  %v595_v49 = vmul.f32 %v547_v48, %v1731_v5  ;;  %v514_v25 = vsel %vm513_vm0, %v1285_v14, %v510_v19 }
 0x2d7   :  { %608 = vperm.xlu2 %1275, %v598_v15   ;;  %v545_v3 = vmul.f32 %v514_v25, %v333_v24 }
 0x2d8   :  { %v599_v10 = vsub.f32 %v339_v28, %v595_v49 }
 0x2d9   :  { %v593_v12 = vmul.f32 %v545_v3, %v1740_v56 }
 0x2db   :  { %551 = vperm.xlu0 %1263, %v545_v3   ;;  %v597_v52 = vsub.f32 %v337_v22, %v593_v12 }
 0x2de   :  { %613 = vperm.xlu1 %1274, %v599_v10  }
 0x2e6   :  { %603 = vperm.xlu1 %1274, %v597_v52  }
 0x329   :  { %v619_v0 = vpop.permute.xlu2 %618 }
 0x331   :  { %v1795_v40 = vpop.permute.xlu2 %608 }
 0x33d   :  { %v567_v44 = vpop.permute.xlu0 %566 }
 0x33e   :  { %v587_v5 = vmul.f32 %v567_v44, %v1566_v50  ;;  %v588_v51 = vmul.f32 %v567_v44, %v2143_v36  ;;  %v589_v43 = vmul.f32 %v567_v44, %v1576_v37 }
 0x340   :  { %v639_v54 = vadd.f32 %v619_v0, %v587_v5  ;;  %v640_v33 = vadd.f32 %v619_v0, %v588_v51  ;;  %v641_v37 = vadd.f32 %v619_v0, %v589_v43 }
 0x342   :  { %v663_v26 = vmax.f32 %v639_v54, 0.0  ;;  %v664_v29 = vmax.f32 %v640_v33, 0.0 }
 0x344   :  { %698 = vmatpush.msra.mxu0 %v663_v26  ;;  %1249 = vmatpush.msra.mxu2 %v663_v26 }
 0x345   :  { %727 = vmatpush.msra.mxu1 %v664_v29  ;;  %1253 = vmatpush.msra.mxu3 %v664_v29  ;;  %v557_v30 = vpop.permute.xlu0 %556 }
 0x346   :  { %v575_v45 = vmul.f32 %v557_v30, %v1491_v9  ;;  %v576_v39 = vmul.f32 %v557_v30, %v1493_v11  ;;  %v590_v11 = vmul.f32 %v567_v44, %v1596_v61  ;;  %v580_v25 = vmul.f32 %v557_v30, %v1623_v57 }
 0x348   :  { %v562_v56 = vpop.permute.xlu1 %561  ;;  %v627_v14 = vadd.f32 %v1795_v40, %v575_v45  ;;  %v628_v6 = vadd.f32 %v1795_v40, %v576_v39  ;;  %v642_v23 = vadd.f32 %v619_v0, %v590_v11 }
 0x349   :  { %v581_v50 = vmul.f32 %v562_v56, %v1642_v63  ;;  %v582_v36 = vmul.f32 %v562_v56, %v1645_v42  ;;  %v591_v63 = vmul.f32 %v567_v44, %v1598_v13  ;;  %v592_v42 = vmul.f32 %v567_v44, %v1588_v1 }
 0x34a   :  { %v651_v7 = vmax.f32 %v627_v14, 0.0  ;;  %v652_v8 = vmax.f32 %v628_v6, 0.0  ;;  %v577_v1 = vmul.f32 %v557_v30, %v1607_v20  ;;  %v583_v24 = vmul.f32 %v562_v56, %v1657_v21 }
 0x34b   :  { %v643_v38 = vadd.f32 %v619_v0, %v591_v63  ;;  %v644_v13 = vadd.f32 %v619_v0, %v592_v42  ;;  %v584_v19 = vmul.f32 %v562_v56, %v1663_v60  ;;  %v585_v49 = vmul.f32 %v562_v56, %v1684_v34 }
 0x34c   :  { %v586_v10 = vmul.f32 %v562_v56, %v1665_v17  ;;  %v665_v17 = vmax.f32 %v641_v37, 0.0  ;;  %v629_v52 = vadd.f32 %v1795_v40, %v577_v1 }
 0x34d   :  { %v552_v46 = vpop.permute.xlu0 %551 }
 0x34e   :  { %v569_v35 = vmul.f32 %v552_v46, %v1556_v27  ;;  %v570_v47 = vmul.f32 %v552_v46, %v1627_v58  ;;  %v578_v27 = vmul.f32 %v557_v30, %v1621_v4  ;;  %v579_v58 = vmul.f32 %v557_v30, %v1629_v2  ;;  %v1819_v4 = vld [vmem:[%s2138_s3 + $0x10] sm:$0xff] }
 0x34f   :  { %v571_v20 = vmul.f32 %v552_v46, %v1680_v31  ;;  %v572_v21 = vmul.f32 %v552_v46, %v1689_v53  ;;  %v573_v60 = vmul.f32 %v552_v46, %v1697_v62  ;;  %v574_v22 = vmul.f32 %v552_v46, %v1691_v32  ;;  %v670_v46 = vld [vmem:[%s2138_s3 + $0x8] sm:$0xff] }
 0x350   :  { %v614_v41 = vpop.permute.xlu1 %613  ;;  %v666_v31 = vmax.f32 %v642_v23, 0.0  ;;  %v630_v44 = vadd.f32 %v1795_v40, %v578_v27  ;;  %v667_v53 = vmax.f32 %v643_v38, 0.0  ;;  %v668_v62 = vmax.f32 %v644_v13, 0.0 }
 0x351   :  { %v633_v55 = vadd.f32 %v614_v41, %v581_v50  ;;  %v634_v59 = vadd.f32 %v614_v41, %v582_v36  ;;  %v635_v2 = vadd.f32 %v614_v41, %v583_v24  ;;  %v636_v12 = vadd.f32 %v614_v41, %v584_v19 }
 0x352   :  { %v637_v57 = vadd.f32 %v614_v41, %v585_v49  ;;  %v638_v34 = vadd.f32 %v614_v41, %v586_v10  ;;  %v631_v5 = vadd.f32 %v1795_v40, %v579_v58  ;;  %v632_v32 = vadd.f32 %v1795_v40, %v580_v25 }
 0x353   :  { %v657_v18 = vmax.f32 %v633_v55, 0.0  ;;  %v658_v9 = vmax.f32 %v634_v59, 0.0  ;;  %v659_v51 = vmax.f32 %v635_v2, 0.0  ;;  %v660_v0 = vmax.f32 %v636_v12, 0.0  ;;  %v672_v55 = vld [vmem:[%s2138_s3 + $0x18] sm:$0xff]  ;;  %v669_v59 = vld [vmem:[%s2138_s3] sm:$0xff] }
 0x354   :  { %v661_v26 = vmax.f32 %v637_v57, 0.0  ;;  %v662_v29 = vmax.f32 %v638_v34, 0.0  ;;  %v653_v45 = vmax.f32 %v629_v52, 0.0  ;;  %v654_v39 = vmax.f32 %v630_v44, 0.0 }
 0x355   :  { %699 = vmatpush.msra.mxu0 %v657_v18  ;;  %1250 = vmatpush.msra.mxu2 %v657_v18  ;;  %v655_v50 = vmax.f32 %v631_v5, 0.0  ;;  %v656_v40 = vmax.f32 %v632_v32, 0.0 }
 0x356   :  { %728 = vmatpush.msra.mxu1 %v658_v9  ;;  %1254 = vmatpush.msra.mxu3 %v658_v9 }
 0x357   :  { %700 = vmatpush.msra.mxu0 %v651_v7  ;;  %1251 = vmatpush.msra.mxu2 %v651_v7 }
 0x358   :  { %729 = vmatpush.msra.mxu1 %v652_v8  ;;  %1255 = vmatpush.msra.mxu3 %v652_v8  ;;  %v604_v61 = vpop.permute.xlu1 %603 }
 0x359   :  { %v621_v48 = vadd.f32 %v604_v61, %v569_v35  ;;  %v622_v15 = vadd.f32 %v604_v61, %v570_v47  ;;  %v623_v54 = vadd.f32 %v604_v61, %v571_v20  ;;  %v624_v33 = vadd.f32 %v604_v61, %v572_v21 }
 0x35a   :  { %v625_v56 = vadd.f32 %v604_v61, %v573_v60  ;;  %v626_v30 = vadd.f32 %v604_v61, %v574_v22 }
 0x35b   :  { %v645_v28 = vmax.f32 %v621_v48, 0.0  ;;  %v646_v3 = vmax.f32 %v622_v15, 0.0  ;;  %v647_v36 = vmax.f32 %v623_v54, 0.0  ;;  %v648_v14 = vmax.f32 %v624_v33, 0.0 }
 0x35c   :  { %v649_v41 = vmax.f32 %v625_v56, 0.0  ;;  %v650_v6 = vmax.f32 %v626_v30, 0.0 }
 0x35d   :  { %701 = vmatpush.msra.mxu0 %v645_v28  ;;  %1252 = vmatpush.msra.mxu2 %v645_v28 }
 0x35e   :  { %730 = vmatpush.msra.mxu1 %v646_v3  ;;  %1256 = vmatpush.msra.mxu3 %v646_v3 }
 0x35f   :  { %1227 = vmatmul.msk.f32.vlgmr.msra.gmra.mxu2 %vm673_vm1, %v1819_v4  ;;  %1231 = vmatmul.msk.f32.vlgmr.msra.gmra.mxu3 %vm673_vm1, %v1819_v4 }
 0x360   :  { %756 = vmatpush.msrb.mxu2 %v665_v17  ;;  %785 = vmatpush.msrb.mxu3 %v666_v31 }
 0x361   :  { %814 = vmatpush.msrb.mxu0 %v667_v53  ;;  %843 = vmatpush.msrb.mxu1 %v668_v62 }
 0x362   :  { %757 = vmatpush.msrb.mxu2 %v659_v51  ;;  %786 = vmatpush.msrb.mxu3 %v660_v0 }
 0x363   :  { %815 = vmatpush.msrb.mxu0 %v661_v26  ;;  %844 = vmatpush.msrb.mxu1 %v662_v29 }
 0x364   :  { %758 = vmatpush.msrb.mxu2 %v653_v45  ;;  %787 = vmatpush.msrb.mxu3 %v654_v39 }
 0x365   :  { %816 = vmatpush.msrb.mxu0 %v655_v50  ;;  %845 = vmatpush.msrb.mxu1 %v656_v40 }
 0x366   :  { %759 = vmatpush.msrb.mxu2 %v647_v36  ;;  %788 = vmatpush.msrb.mxu3 %v648_v14 }
 0x367   :  { %817 = vmatpush.msrb.mxu0 %v649_v41  ;;  %846 = vmatpush.msrb.mxu1 %v650_v6 }
 0x368   :  { %1228 = vmatmul.msk.f32.gmra.mxu2 %vm673_vm1, %v672_v55  ;;  %1232 = vmatmul.msk.f32.gmra.mxu3 %vm673_vm1, %v672_v55 }
 0x369   :  { %1225 = vmatmul.msk.f32.vlgmr.msra.gmra.mxu0 %vm673_vm1, %v669_v59  ;;  %1229 = vmatmul.msk.f32.vlgmr.msra.gmra.mxu1 %vm673_vm1, %v669_v59 }
 0x370   :  { %1233 = vmatmul.msk.f32.vlgmr.msrb.gmra.mxu2 %vm673_vm1, %v669_v59  ;;  %1237 = vmatmul.msk.f32.vlgmr.msrb.gmra.mxu3 %vm673_vm1, %v669_v59 }
 0x371   :  { %1226 = vmatmul.msk.f32.gmra.mxu0 %vm673_vm1, %v670_v46  ;;  %1230 = vmatmul.msk.f32.gmra.mxu1 %vm673_vm1, %v670_v46 }
 0x378   :  { %1234 = vmatmul.msk.f32.gmra.mxu2 %vm673_vm1, %v670_v46  ;;  %1238 = vmatmul.msk.f32.gmra.mxu3 %vm673_vm1, %v670_v46 }
 0x379   :  { %1241 = vmatmul.msk.f32.vlgmr.msrb.gmra.mxu0 %vm673_vm1, %v669_v59  ;;  %1245 = vmatmul.msk.f32.vlgmr.msrb.gmra.mxu1 %vm673_vm1, %v669_v59 }
 0x380   :  { %1235 = vmatmul.msk.f32.gmra.mxu2 %vm673_vm1, %v1819_v4  ;;  %1239 = vmatmul.msk.f32.gmra.mxu3 %vm673_vm1, %v1819_v4 }
 0x381   :  { %1242 = vmatmul.msk.f32.gmra.mxu0 %vm673_vm1, %v670_v46  ;;  %1246 = vmatmul.msk.f32.gmra.mxu1 %vm673_vm1, %v670_v46 }
 0x388   :  { %1236 = vmatmul.msk.f32.gmra.mxu2 %vm673_vm1, %v672_v55  ;;  %1240 = vmatmul.msk.f32.gmra.mxu3 %vm673_vm1, %v672_v55 }
 0x389   :  { %1243 = vmatmul.msk.f32.gmra.mxu0 %vm673_vm1, %v1819_v4  ;;  %1247 = vmatmul.msk.f32.gmra.mxu1 %vm673_vm1, %v1819_v4 }
 0x391   :  { %1244 = vmatmul.msk.f32.gmra.mxu0 %vm673_vm1, %v672_v55  ;;  %1248 = vmatmul.msk.f32.gmra.mxu1 %vm673_vm1, %v672_v55 }
 0x3e2   :  { %v1867_v43 = vpop.f32.mrf.mxu2  ;;  %v1869_v18 = vpop.f32.mrf.mxu3 }
 0x3e3   :  { %v906_v20 = vadd.f32 %v1869_v18, %v1867_v43 }
 0x3e6   :  { %v1871_v9 = vpop.f32.mrf.mxu0  ;;  %v1873_v7 = vpop.f32.mrf.mxu1 }
 0x3e7   :  { %v892_v35 = vadd.f32 %v1873_v7, %v1871_v9 }
 0x3eb   :  { %v1875_v11 = vpop.f32.mrf.mxu2  ;;  %v1877_v8 = vpop.f32.mrf.mxu3 }
 0x3ec   :  { %v913_v31 = vadd.f32 %v1877_v8, %v1875_v11 }
 0x3ee   :  { %v1879_v63 = vpop.f32.mrf.mxu0  ;;  %v1881_v42 = vpop.f32.mrf.mxu1 }
 0x3ef   :  { %v899_v15 = vadd.f32 %v1881_v42, %v1879_v63 }
 0x3f3   :  { %v1885_v47 = vpop.f32.mrf.mxu2  ;;  %v1887_v37 = vpop.f32.mrf.mxu3 }
 0x3f4   :  { %v893_v23 = vadd.f32 %v892_v35, %v1885_v47 }
 0x3f6   :  { %v894_v61 = vadd.f32 %v893_v23, %v1887_v37  ;;  %v1891_v38 = vpop.f32.mrf.mxu0  ;;  %v1893_v13 = vpop.f32.mrf.mxu1 }
 0x3f7   :  { %v873_v1 = vmul.f32 %v1361_v16, %v1893_v13 }
 0x3f8   :  { %v895_v48 = vadd.f32 %v894_v61, %v1891_v38 }
 0x3fa   :  { %v896_v27 = vadd.f32 %v895_v48, %v873_v1 }
 0x3fb   :  { %v1900_v58 = vpop.f32.mrf.mxu2  ;;  %v1902_v24 = vpop.f32.mrf.mxu3 }
 0x3fc   :  { %v900_v19 = vadd.f32 %v899_v15, %v1900_v58  ;;  %897 = vadd.xlane.f32.xlu0 %v896_v27 }
 0x3fe   :  { %v901_v49 = vadd.f32 %v900_v19, %v1902_v24  ;;  %v1906_v25 = vpop.f32.mrf.mxu0  ;;  %v1908_v28 = vpop.f32.mrf.mxu1 }
 0x3ff   :  { %v879_v3 = vmul.f32 %v1361_v16, %v1908_v28 }
 0x400   :  { %v902_v10 = vadd.f32 %v901_v49, %v1906_v25 }
 0x402   :  { %v903_v4 = vadd.f32 %v902_v10, %v879_v3 }
 0x403   :  { %v1915_v2 = vpop.f32.mrf.mxu2  ;;  %v1917_v12 = vpop.f32.mrf.mxu3 }
 0x404   :  { %v907_v21 = vadd.f32 %v906_v20, %v1915_v2  ;;  %904 = vadd.xlane.f32.xlu2 %v903_v4 }
 0x406   :  { %v908_v60 = vadd.f32 %v907_v21, %v1917_v12  ;;  %v1921_v57 = vpop.f32.mrf.mxu0  ;;  %v1923_v34 = vpop.f32.mrf.mxu1 }
 0x407   :  { %v885_v22 = vmul.f32 %v1361_v16, %v1923_v34 }
 0x408   :  { %v909_v17 = vadd.f32 %v908_v60, %v1921_v57 }
 0x40a   :  { %v910_v52 = vadd.f32 %v909_v17, %v885_v22 }
 0x40b   :  { %v1930_v44 = vpop.f32.mrf.mxu2  ;;  %v1932_v53 = vpop.f32.mrf.mxu3 }
 0x40c   :  { %v914_v62 = vadd.f32 %v913_v31, %v1930_v44  ;;  %911 = vadd.xlane.f32.xlu1 %v910_v52 }
 0x40e   :  { %v915_v5 = vadd.f32 %v914_v62, %v1932_v53  ;;  %v1936_v32 = vpop.f32.mrf.mxu0  ;;  %v1938_v51 = vpop.f32.mrf.mxu1 }
 0x40f   :  { %v891_v0 = vmul.f32 %v1361_v16, %v1938_v51 }
 0x410   :  { %v916_v54 = vadd.f32 %v915_v5, %v1936_v32 }
 0x412   :  { %v917_v33 = vadd.f32 %v916_v54, %v891_v0 }
 0x414   :  { %918 = vadd.xlane.f32.xlu0 %v917_v33 }
 0x46f   :  { %v898_v26 = vpop.xlane.xlu0 %897 }
 0x470   :  { %v1943_v29 = vmul.f32 0.0015384615, %v898_v26 }
 0x472   :  { %v924_v56 = vsub.f32 %v1871_v9, %v1943_v29  ;;  %v925_v30 = vsub.f32 %v1873_v7, %v1943_v29  ;;  %v926_v45 = vsub.f32 %v1885_v47, %v1943_v29  ;;  %v929_v39 = vsub.f32 %v1893_v13, %v1943_v29 }
 0x473   :  { %v927_v50 = vsub.f32 %v1887_v37, %v1943_v29  ;;  %v928_v14 = vsub.f32 %v1891_v38, %v1943_v29 }
 0x474   :  { %v948_v40 = vmul.f32 %v924_v56, %v924_v56  ;;  %v949_v36 = vmul.f32 %v925_v30, %v925_v30  ;;  %v950_v41 = vmul.f32 %v926_v45, %v926_v45  ;;  %v953_v59 = vmul.f32 %v929_v39, %v929_v39 }
 0x475   :  { %v951_v35 = vmul.f32 %v927_v50, %v927_v50  ;;  %v952_v61 = vmul.f32 %v928_v14, %v928_v14 }
 0x476   :  { %v996_v6 = vadd.f32 %v949_v36, %v948_v40  ;;  %v977_v19 = vmul.f32 %v1361_v16, %v953_v59 }
 0x477   :  { %v905_v55 = vpop.xlane.xlu2 %904 }
 0x478   :  { %v1957_v46 = vmul.f32 0.0015384615, %v905_v55  ;;  %v997_v23 = vadd.f32 %v996_v6, %v950_v41 }
 0x47a   :  { %v998_v1 = vadd.f32 %v997_v23, %v951_v35  ;;  %v930_v48 = vsub.f32 %v1879_v63, %v1957_v46  ;;  %v931_v15 = vsub.f32 %v1881_v42, %v1957_v46  ;;  %v932_v27 = vsub.f32 %v1900_v58, %v1957_v46 }
 0x47b   :  { %v935_v49 = vsub.f32 %v1908_v28, %v1957_v46  ;;  %v933_v10 = vsub.f32 %v1902_v24, %v1957_v46  ;;  %v934_v21 = vsub.f32 %v1906_v25, %v1957_v46 }
 0x47c   :  { %v999_v3 = vadd.f32 %v998_v1, %v952_v61  ;;  %v954_v20 = vmul.f32 %v930_v48, %v930_v48  ;;  %v955_v4 = vmul.f32 %v931_v15, %v931_v15  ;;  %v956_v22 = vmul.f32 %v932_v27, %v932_v27 }
 0x47d   :  { %v959_v52 = vmul.f32 %v935_v49, %v935_v49  ;;  %v957_v5 = vmul.f32 %v933_v10, %v933_v10  ;;  %v958_v54 = vmul.f32 %v934_v21, %v934_v21 }
 0x47e   :  { %v1000_v60 = vadd.f32 %v999_v3, %v977_v19  ;;  %v1003_v17 = vadd.f32 %v955_v4, %v954_v20 }
 0x47f   :  { %v912_v31 = vpop.xlane.xlu1 %911  ;;  %v983_v45 = vmul.f32 %v1361_v16, %v959_v52 }
 0x480   :  { %v1972_v62 = vmul.f32 0.0015384615, %v912_v31  ;;  %1001 = vadd.xlane.f32.xlu2 %v1000_v60  ;;  %v1004_v0 = vadd.f32 %v1003_v17, %v956_v22 }
 0x482   :  { %v1005_v33 = vadd.f32 %v1004_v0, %v957_v5  ;;  %v936_v26 = vsub.f32 %v1867_v43, %v1972_v62  ;;  %v937_v56 = vsub.f32 %v1869_v18, %v1972_v62  ;;  %v938_v30 = vsub.f32 %v1915_v2, %v1972_v62 }
 0x483   :  { %v941_v39 = vsub.f32 %v1923_v34, %v1972_v62  ;;  %v939_v40 = vsub.f32 %v1917_v12, %v1972_v62  ;;  %v940_v41 = vsub.f32 %v1921_v57, %v1972_v62 }
 0x484   :  { %v1006_v50 = vadd.f32 %v1005_v33, %v958_v54  ;;  %v960_v36 = vmul.f32 %v936_v26, %v936_v26  ;;  %v961_v14 = vmul.f32 %v937_v56, %v937_v56  ;;  %v962_v55 = vmul.f32 %v938_v30, %v938_v30 }
 0x485   :  { %v965_v23 = vmul.f32 %v941_v39, %v941_v39  ;;  %v963_v1 = vmul.f32 %v939_v40, %v939_v40  ;;  %v964_v15 = vmul.f32 %v940_v41, %v940_v41 }
 0x486   :  { %v1007_v6 = vadd.f32 %v1006_v50, %v983_v45  ;;  %v1010_v59 = vadd.f32 %v961_v14, %v960_v36 }
 0x487   :  { %v919_v35 = vpop.xlane.xlu0 %918  ;;  %v989_v10 = vmul.f32 %v1361_v16, %v965_v23 }
 0x488   :  { %v1987_v61 = vmul.f32 0.0015384615, %v919_v35  ;;  %1008 = vadd.xlane.f32.xlu1 %v1007_v6  ;;  %v1011_v48 = vadd.f32 %v1010_v59, %v962_v55 }
 0x48a   :  { %v1012_v27 = vadd.f32 %v1011_v48, %v963_v1  ;;  %v942_v19 = vsub.f32 %v1875_v11, %v1987_v61  ;;  %v943_v49 = vsub.f32 %v1877_v8, %v1987_v61  ;;  %v944_v3 = vsub.f32 %v1930_v44, %v1987_v61 }
 0x48b   :  { %v945_v20 = vsub.f32 %v1932_v53, %v1987_v61  ;;  %v947_v21 = vsub.f32 %v1938_v51, %v1987_v61  ;;  %v946_v31 = vsub.f32 %v1936_v32, %v1987_v61 }
 0x48c   :  { %v1013_v4 = vadd.f32 %v1012_v27, %v964_v15  ;;  %v966_v60 = vmul.f32 %v942_v19, %v942_v19  ;;  %v967_v22 = vmul.f32 %v943_v49, %v943_v49  ;;  %v968_v52 = vmul.f32 %v944_v3, %v944_v3  ;;  %v860_v49 = vld [vmem:[%s2137_s1 + $0x46] sm:$0xff] }
 0x48d   :  { %v969_v0 = vmul.f32 %v945_v20, %v945_v20  ;;  %v971_v54 = vmul.f32 %v947_v21, %v947_v21  ;;  %v970_v26 = vmul.f32 %v946_v31, %v946_v31 }
 0x48e   :  { %v1014_v17 = vadd.f32 %v1013_v4, %v989_v10  ;;  %v1017_v5 = vadd.f32 %v967_v22, %v966_v60 }
 0x48f   :  { %v995_v30 = vmul.f32 %v1361_v16, %v971_v54  ;;  %v864_v54 = vld [vmem:[%s2137_s1 + $0x66] sm:$0xff] }
 0x490   :  { %1015 = vadd.xlane.f32.xlu0 %v1014_v17  ;;  %v1018_v33 = vadd.f32 %v1017_v5, %v968_v52 }
 0x492   :  { %v1019_v56 = vadd.f32 %v1018_v33, %v969_v0  ;;  %v861_v33 = vld [vmem:[%s2137_s1 + $0x4e] sm:$0xff] }
 0x494   :  { %v1020_v45 = vadd.f32 %v1019_v56, %v970_v26 }
 0x496   :  { %v1021_v39 = vadd.f32 %v1020_v45, %v995_v30 }
 0x498   :  { %1022 = vadd.xlane.f32.xlu2 %v1021_v39 }
 0x4f3   :  { %v1002_v50 = vpop.xlane.xlu2 %1001 }
 0x4f4   :  { %v1024_v40 = vmul.f32 0.0015384615, %v1002_v50 }
 0x4f6   :  { %v1028_v36 = vadd.f32 1e-05, %v1024_v40 }
 0x4f8   :  { %1286 = vrsqrt.f32 %v1028_v36  ;;  %vm1038_vm3 = vweird.f32 %v1028_v36 }
 0x4fb   :  { %v1009_v14 = vpop.xlane.xlu1 %1008 }
 0x4fc   :  { %v1025_v41 = vmul.f32 0.0015384615, %v1009_v14  ;;  %v862_v14 = vld [vmem:[%s2137_s1 + $0x56] sm:$0xff] }
 0x4fe   :  { %v1287_v6 = vpop.eup %1286  ;;  %v1029_v55 = vadd.f32 1e-05, %v1025_v41 }
 0x4ff   :  { %v1033_v59 = vmul.f32 %v1287_v6, %v1028_v36  ;;  %vm1039_vm2 = vweird.f32 %v1287_v6 }
 0x500   :  { %1288 = vrsqrt.f32 %v1029_v55  ;;  %vm1040_vm4 = vmor %vm1038_vm3, %vm1039_vm2  ;;  %vm1048_vm6 = vweird.f32 %v1029_v55 }
 0x501   :  { %v1034_v35 = vmul.f32 %v1287_v6, %v1033_v59 }
 0x503   :  { %v1035_v23 = vmul.f32 0.5, %v1034_v35  ;;  %v1016_v1 = vpop.xlane.xlu0 %1015 }
 0x504   :  { %v1026_v48 = vmul.f32 0.0015384615, %v1016_v1 }
 0x505   :  { %v1036_v15 = vsub.f32 1.5, %v1035_v23 }
 0x506   :  { %v1289_v16 = vpop.eup %1288  ;;  %v1030_v27 = vadd.f32 1e-05, %v1026_v48  ;;  %v863_v48 = vld [vmem:[%s2137_s1 + $0x5e] sm:$0xff] }
 0x507   :  { %v1043_v19 = vmul.f32 %v1289_v16, %v1029_v55  ;;  %v1037_v3 = vmul.f32 %v1287_v6, %v1036_v15  ;;  %vm1049_vm5 = vweird.f32 %v1289_v16 }
 0x508   :  { %1290 = vrsqrt.f32 %v1030_v27  ;;  %vm1050_vm7 = vmor %vm1048_vm6, %vm1049_vm5  ;;  %vm1058_vm9 = vweird.f32 %v1030_v27 }
 0x509   :  { %v1044_v10 = vmul.f32 %v1289_v16, %v1043_v19  ;;  %v1041_v20 = vsel %vm1040_vm4, %v1287_v6, %v1037_v3  ;;  %v867_v3 = vld [vmem:[%s2137_s1 + $0x7e] sm:$0xff] }
 0x50a   :  { %v1072_v4 = vmul.f32 %v1041_v20, %v860_v49 }
 0x50b   :  { %v1045_v21 = vmul.f32 0.5, %v1044_v10  ;;  %v1023_v60 = vpop.xlane.xlu2 %1022 }
 0x50c   :  { %v1027_v22 = vmul.f32 0.0015384615, %v1023_v60  ;;  %1078 = vperm.xlu1 %1274, %v1072_v4   ;;  %v1120_v5 = vmul.f32 %v1072_v4, %v1943_v29  ;;  %v866_v4 = vld [vmem:[%s2137_s1 + $0x76] sm:$0xff] }
 0x50d   :  { %v1046_v17 = vsub.f32 1.5, %v1045_v21 }
 0x50e   :  { %v1291_v31 = vpop.eup %1290  ;;  %v1031_v52 = vadd.f32 1e-05, %v1027_v22  ;;  %v1124_v45 = vsub.f32 %v864_v54, %v1120_v5 }
 0x50f   :  { %v1053_v0 = vmul.f32 %v1291_v31, %v1030_v27  ;;  %v1047_v26 = vmul.f32 %v1289_v16, %v1046_v17  ;;  %vm1059_vm8 = vweird.f32 %v1291_v31 }
 0x510   :  { %1292 = vrsqrt.f32 %v1031_v52  ;;  %vm1060_vm10 = vmor %vm1058_vm9, %vm1059_vm8  ;;  %vm1068_vm12 = vweird.f32 %v1031_v52 }
 0x511   :  { %v1054_v56 = vmul.f32 %v1291_v31, %v1053_v0  ;;  %v1051_v30 = vsel %vm1050_vm7, %v1289_v16, %v1047_v26  ;;  %v865_v16 = vld [vmem:[%s2137_s1 + $0x6e] sm:$0xff] }
 0x512   :  { %v1073_v39 = vmul.f32 %v1051_v30, %v861_v33 }
 0x513   :  { %v1055_v50 = vmul.f32 0.5, %v1054_v56 }
 0x514   :  { %1130 = vperm.xlu1 %1274, %v1124_v45   ;;  %1083 = vperm.xlu0 %1263, %v1073_v39   ;;  %v1121_v1 = vmul.f32 %v1073_v39, %v1957_v46 }
 0x515   :  { %v1056_v29 = vsub.f32 1.5, %v1055_v50 }
 0x516   :  { %v1293_v40 = vpop.eup %1292  ;;  %v1125_v49 = vsub.f32 %v865_v16, %v1121_v1 }
 0x517   :  { %v1063_v36 = vmul.f32 %v1293_v40, %v1031_v52  ;;  %v1057_v41 = vmul.f32 %v1291_v31, %v1056_v29  ;;  %vm1069_vm11 = vweird.f32 %v1293_v40 }
 0x518   :  { %vm1070_vm13 = vmor %vm1068_vm12, %vm1069_vm11 }
 0x519   :  { %v1064_v6 = vmul.f32 %v1293_v40, %v1063_v36  ;;  %v1061_v55 = vsel %vm1060_vm10, %v1291_v31, %v1057_v41 }
 0x51a   :  { %v1074_v59 = vmul.f32 %v1061_v55, %v862_v14 }
 0x51b   :  { %v1065_v35 = vmul.f32 0.5, %v1064_v6 }
 0x51c   :  { %1088 = vperm.xlu2 %1275, %v1074_v59   ;;  %v1122_v20 = vmul.f32 %v1074_v59, %v1972_v62 }
 0x51d   :  { %v1066_v23 = vsub.f32 1.5, %v1065_v35 }
 0x51e   :  { %v1126_v21 = vsub.f32 %v866_v4, %v1122_v20 }
 0x51f   :  { %v1067_v15 = vmul.f32 %v1293_v40, %v1066_v23 }
 0x521   :  { %v1071_v27 = vsel %vm1070_vm13, %v1293_v40, %v1067_v15 }
 0x522   :  { %v1075_v19 = vmul.f32 %v1071_v27, %v863_v48 }
 0x524   :  { %1093 = vperm.xlu0 %1263, %v1075_v19   ;;  %1135 = vperm.xlu2 %1275, %v1125_v49   ;;  %v1123_v46 = vmul.f32 %v1075_v19, %v1987_v61 }
 0x526   :  { %v1127_v10 = vsub.f32 %v867_v3, %v1123_v46 }
 0x528   :  { %1145 = vperm.xlu1 %1274, %v1127_v10  }
 0x52c   :  { %1140 = vperm.xlu0 %1263, %v1126_v21  }
 0x576   :  { %v2031_v22 = vpop.permute.xlu2 %1088 }
 0x57e   :  { %v1079_v60 = vpop.permute.xlu1 %1078 }
 0x57f   :  { %v1096_v17 = vmul.f32 %v1079_v60, %v1871_v9  ;;  %v1097_v31 = vmul.f32 %v1079_v60, %v1873_v7  ;;  %v1098_v52 = vmul.f32 %v1079_v60, %v1885_v47  ;;  %v1099_v61 = vmul.f32 %v1079_v60, %v1887_v37  ;;  %v1136_v37 = vpop.permute.xlu2 %1135 }
 0x580   :  { %v1100_v62 = vmul.f32 %v1079_v60, %v1891_v38  ;;  %v1101_v5 = vmul.f32 %v1079_v60, %v1893_v13 }
 0x586   :  { %v1131_v0 = vpop.permute.xlu1 %1130  ;;  %v1084_v54 = vpop.permute.xlu0 %1083 }
 0x587   :  { %v1148_v33 = vadd.f32 %v1131_v0, %v1096_v17  ;;  %v1149_v26 = vadd.f32 %v1131_v0, %v1097_v31  ;;  %v1150_v56 = vadd.f32 %v1131_v0, %v1098_v52  ;;  %v1151_v30 = vadd.f32 %v1131_v0, %v1099_v61 }
 0x588   :  { %v1152_v45 = vadd.f32 %v1131_v0, %v1100_v62  ;;  %v1153_v39 = vadd.f32 %v1131_v0, %v1101_v5  ;;  %v1102_v9 = vmul.f32 %v1084_v54, %v1879_v63  ;;  %v1103_v7 = vmul.f32 %v1084_v54, %v1881_v42 }
 0x589   :  { %v1172_v50 = vmax.f32 %v1148_v33, 0.0  ;;  %v1173_v47 = vmax.f32 %v1149_v26, 0.0  ;;  %v1174_v29 = vmax.f32 %v1150_v56, 0.0  ;;  %v1175_v40 = vmax.f32 %v1151_v30, 0.0 }
 0x58a   :  { %v1176_v38 = vmax.f32 %v1152_v45, 0.0  ;;  %v1104_v13 = vmul.f32 %v1084_v54, %v1900_v58  ;;  %v1105_v36 = vmul.f32 %v1084_v54, %v1902_v24  ;;  %v1106_v14 = vmul.f32 %v1084_v54, %v1906_v25 }
 0x58b   :  { %1196 = vst [vmem:[%s2139_s4] sm:$0xff] %v1172_v50  ;;  %v1107_v63 = vmul.f32 %v1084_v54, %v1908_v28  ;;  %v1154_v41 = vadd.f32 %v1136_v37, %v1102_v9  ;;  %v1155_v42 = vadd.f32 %v1136_v37, %v1103_v7  ;;  %v1177_v6 = vmax.f32 %v1153_v39, 0.0 }
 0x58c   :  { %1197 = vst [vmem:[%s2139_s4 + $0x8] sm:$0xff] %v1173_v47  ;;  %v1156_v55 = vadd.f32 %v1136_v37, %v1104_v13  ;;  %v1157_v59 = vadd.f32 %v1136_v37, %v1105_v36  ;;  %v1158_v58 = vadd.f32 %v1136_v37, %v1106_v14  ;;  %v1112_v62 = vmul.f32 %v2031_v22, %v1921_v57 }
 0x58d   :  { %1198 = vst [vmem:[%s2139_s4 + $0x10] sm:$0xff] %v1174_v29  ;;  %v1178_v24 = vmax.f32 %v1154_v41, 0.0  ;;  %v1159_v25 = vadd.f32 %v1136_v37, %v1107_v63  ;;  %v1179_v28 = vmax.f32 %v1155_v42, 0.0 }
 0x58e   :  { %1199 = vst [vmem:[%s2139_s4 + $0x18] sm:$0xff] %v1175_v40  ;;  %v1180_v35 = vmax.f32 %v1156_v55, 0.0  ;;  %v1181_v23 = vmax.f32 %v1157_v59, 0.0  ;;  %v1182_v1 = vmax.f32 %v1158_v58, 0.0 }
 0x58f   :  { %1200 = vst [vmem:[%s2139_s4 + $0x20] sm:$0xff] %v1176_v38  ;;  %v1183_v48 = vmax.f32 %v1159_v25, 0.0 }
 0x590   :  { %1201 = vst [vmem:[%s2139_s4 + $0x28] sm:$0xff] %v1177_v6 }
 0x591   :  { %1202 = vst [vmem:[%s2139_s4 + $0x30] sm:$0xff] %v1178_v24 }
 0x592   :  { %1203 = vst [vmem:[%s2139_s4 + $0x38] sm:$0xff] %v1179_v28 }
 0x593   :  { %1204 = vst [vmem:[%s2139_s4 + $0x40] sm:$0xff] %v1180_v35 }
 0x594   :  { %1205 = vst [vmem:[%s2139_s4 + $0x48] sm:$0xff] %v1181_v23 }
 0x595   :  { %1206 = vst [vmem:[%s2139_s4 + $0x50] sm:$0xff] %v1182_v1 }
 0x596   :  { %1207 = vst [vmem:[%s2139_s4 + $0x58] sm:$0xff] %v1183_v48  ;;  %v1094_v15 = vpop.permute.xlu0 %1093 }
 0x597   :  { %v1114_v16 = vmul.f32 %v1094_v15, %v1875_v11  ;;  %v1115_v27 = vmul.f32 %v1094_v15, %v1877_v8  ;;  %v1116_v19 = vmul.f32 %v1094_v15, %v1930_v44  ;;  %v1117_v49 = vmul.f32 %v1094_v15, %v1932_v53 }
 0x598   :  { %v1118_v46 = vmul.f32 %v1094_v15, %v1936_v32  ;;  %v1119_v10 = vmul.f32 %v1094_v15, %v1938_v51  ;;  %v1108_v11 = vmul.f32 %v2031_v22, %v1867_v43  ;;  %v1109_v8 = vmul.f32 %v2031_v22, %v1869_v18 }
 0x599   :  { %v1110_v32 = vmul.f32 %v2031_v22, %v1915_v2  ;;  %v1111_v51 = vmul.f32 %v2031_v22, %v1917_v12  ;;  %v1113_v2 = vmul.f32 %v2031_v22, %v1923_v34 }
 0x59a   :  { %v1146_v3 = vpop.permute.xlu1 %1145 }
 0x59b   :  { %v1166_v20 = vadd.f32 %v1146_v3, %v1114_v16  ;;  %v1167_v4 = vadd.f32 %v1146_v3, %v1115_v27  ;;  %v1168_v21 = vadd.f32 %v1146_v3, %v1116_v19  ;;  %v1169_v60 = vadd.f32 %v1146_v3, %v1117_v49 }
 0x59c   :  { %v1170_v17 = vadd.f32 %v1146_v3, %v1118_v46  ;;  %v1171_v31 = vadd.f32 %v1146_v3, %v1119_v10 }
 0x59d   :  { %v1190_v44 = vmax.f32 %v1166_v20, 0.0  ;;  %v1191_v52 = vmax.f32 %v1167_v4, 0.0  ;;  %v1192_v53 = vmax.f32 %v1168_v21, 0.0  ;;  %v1193_v61 = vmax.f32 %v1169_v60, 0.0 }
 0x59e   :  { %v1141_v5 = vpop.permute.xlu0 %1140  ;;  %v1194_v0 = vmax.f32 %v1170_v17, 0.0  ;;  %v1195_v33 = vmax.f32 %v1171_v31, 0.0 }
 0x59f   :  { %1214 = vst [vmem:[%s2139_s4 + $0x90] sm:$0xff] %v1190_v44  ;;  %v1160_v43 = vadd.f32 %v1141_v5, %v1108_v11  ;;  %v1161_v18 = vadd.f32 %v1141_v5, %v1109_v8  ;;  %v1162_v54 = vadd.f32 %v1141_v5, %v1110_v32  ;;  %v1163_v12 = vadd.f32 %v1141_v5, %v1111_v51 }
 0x5a0   :  { %1215 = vst [vmem:[%s2139_s4 + $0x98] sm:$0xff] %v1191_v52  ;;  %v1164_v57 = vadd.f32 %v1141_v5, %v1112_v62  ;;  %v1165_v56 = vadd.f32 %v1141_v5, %v1113_v2 }
 0x5a1   :  { %1216 = vst [vmem:[%s2139_s4 + $0xa0] sm:$0xff] %v1192_v53  ;;  %v1184_v26 = vmax.f32 %v1160_v43, 0.0  ;;  %v1185_v30 = vmax.f32 %v1161_v18, 0.0  ;;  %v1186_v45 = vmax.f32 %v1162_v54, 0.0  ;;  %v1187_v34 = vmax.f32 %v1163_v12, 0.0 }
 0x5a2   :  { %1217 = vst [vmem:[%s2139_s4 + $0xa8] sm:$0xff] %v1193_v61  ;;  %v1188_v22 = vmax.f32 %v1164_v57, 0.0  ;;  %v1189_v39 = vmax.f32 %v1165_v56, 0.0 }
 0x5a3   :  { %1218 = vst [vmem:[%s2139_s4 + $0xb0] sm:$0xff] %v1194_v0 }
 0x5a4   :  { %1219 = vst [vmem:[%s2139_s4 + $0xb8] sm:$0xff] %v1195_v33 }
 0x5a5   :  { %1208 = vst [vmem:[%s2139_s4 + $0x60] sm:$0xff] %v1184_v26 }
 0x5a6   :  { %1209 = vst [vmem:[%s2139_s4 + $0x68] sm:$0xff] %v1185_v30 }
 0x5a7   :  { %1210 = vst [vmem:[%s2139_s4 + $0x70] sm:$0xff] %v1186_v45 }
 0x5a8   :  { %1211 = vst [vmem:[%s2139_s4 + $0x78] sm:$0xff] %v1187_v34 }
 0x5a9   :  { %1212 = vst [vmem:[%s2139_s4 + $0x80] sm:$0xff] %v1188_v22 }
 0x5aa   :  { %1213 = vst [vmem:[%s2139_s4 + $0x88] sm:$0xff] %v1189_v39 }

</bundles_post_ra>
